<compile_context>
chip_gen: v7x
topology: tpu7x:2x2x1
jax: 0.10.0
libtpu: 0.0.40
codegen_flags: <defaults>
</compile_context>

<pallas_src>
import functools

import jax
import jax.numpy as jnp
from jax.experimental import pallas as pl
from jax.experimental.pallas import tpu as pltpu

# ---------------- mini-BERT config (stand-in for bert-base-multilingual-uncased) ----
VOCAB = 100
HIDDEN = 32
N_LAYERS = 2
N_HEADS = 2
HEAD_DIM = HIDDEN // N_HEADS
INTERMEDIATE = 4 * HIDDEN
MAX_POS = 16
TYPE_VOCAB = 2
N_CLASSES = 3
N_PAD = 128            # lane-dense padding for the classifier-head output
LN_EPS = 1e-12


# ---------------------------------------------------------------------------
# Fused forward kernel (whole model in one program)
# ---------------------------------------------------------------------------
def _forward_kernel(
    ids_ref,                                                    # scalar prefetch: (B*S,) int32 in SMEM
    mask_ref, word_ref, pos_ref, type_ref, embg_ref, embb_ref,  # embeddings / mask
    wq_ref, wk_ref, wv_ref, bq_ref, bk_ref, bv_ref,             # per-layer attention weights
    wo_ref, bo_ref, ln1g_ref, ln1b_ref,
    wff1_ref, bff1_ref, wff2_ref, bff2_ref, ln2g_ref, ln2b_ref, # per-layer FFN weights
    pw_ref, pb_ref, ow_ref, ob_ref,                             # pooler + classifier head
    o_ref,                                                      # (B, N_PAD) output
    emb_scratch,                                                # VMEM (B*S, HIDDEN) f32
    *, batch, seq,
):
    n_tok = batch * seq
    nbh = batch * N_HEADS
    scale = 1.0 / (HEAD_DIM ** 0.5)

    def layernorm(h, g, b):
        mu = jnp.mean(h, axis=-1, keepdims=True)
        var = jnp.mean(jnp.square(h - mu), axis=-1, keepdims=True)
        return (h - mu) * jax.lax.rsqrt(var + LN_EPS) * g + b

    # ---- embeddings: in-kernel gather of word rows via scalar-prefetched ids ----
    type_row = type_ref[0:1, :]                                 # token_type_ids == 0
    for i in range(n_tok):
        tok = ids_ref[i]                                        # SMEM scalar read
        w_row = word_ref[pl.ds(tok, 1), :]                      # dynamic row gather (1, HIDDEN)
        p_row = pos_ref[(i % seq):(i % seq) + 1, :]
        emb_scratch[i:i + 1, :] = w_row + p_row + type_row
    x = layernorm(emb_scratch[...], embg_ref[...], embb_ref[...])        # (B*S, HIDDEN) f32

    # ---- HF-style additive attention mask, built in-kernel, shaped (B*H, 1, S) ----
    neg = (1.0 - mask_ref[...].astype(jnp.float32)) * -10000.0           # (B, S)
    mask_n = jnp.broadcast_to(neg[:, None, None, :],
                              (batch, N_HEADS, 1, seq)).reshape(nbh, 1, seq)

    def tile_heads(w_l, trailing):
        # (H, a, b) -> (B*H, a, b): replicate per-head weights across batch (leading-axis only,
        # layout-trivial).  At real scale keep weights (H, a, b) and batch over B in the grid.
        return jnp.broadcast_to(w_l[None], (batch, N_HEADS) + trailing).reshape((nbh,) + trailing)

    for l in range(N_LAYERS):
        # Heads / batches live on the leading axis of 3-D batched matmuls: no sub-128 lane
        # slicing, no concatenation, no transposes inside the layer.
        x_bh = jnp.broadcast_to(
            x.reshape(batch, 1, seq, HIDDEN), (batch, N_HEADS, seq, HIDDEN)
        ).reshape(nbh, seq, HIDDEN).astype(jnp.bfloat16)                 # (B*H, S, HIDDEN)

        wq = tile_heads(wq_ref[l], (HIDDEN, HEAD_DIM))
        wk = tile_heads(wk_ref[l], (HIDDEN, HEAD_DIM))
        wv = tile_heads(wv_ref[l], (HIDDEN, HEAD_DIM))
        bq = tile_heads(bq_ref[l], (1, HEAD_DIM))
        bk = tile_heads(bk_ref[l], (1, HEAD_DIM))
        bv = tile_heads(bv_ref[l], (1, HEAD_DIM))
        wo = tile_heads(wo_ref[l], (HEAD_DIM, HIDDEN))

        q = jnp.einsum('nsh,nhd->nsd', x_bh, wq, preferred_element_type=jnp.float32) + bq
        k = jnp.einsum('nsh,nhd->nsd', x_bh, wk, preferred_element_type=jnp.float32) + bk
        v = jnp.einsum('nsh,nhd->nsd', x_bh, wv, preferred_element_type=jnp.float32) + bv

        s = jnp.einsum('nsd,ntd->nst', q.astype(jnp.bfloat16), k.astype(jnp.bfloat16),
                       preferred_element_type=jnp.float32) * scale + mask_n
        s = s - jnp.max(s, axis=-1, keepdims=True)
        p = jnp.exp(s)
        p = p * pl.reciprocal(jnp.sum(p, axis=-1, keepdims=True), approx=True)
        ctx = jnp.einsum('nst,ntd->nsd', p.astype(jnp.bfloat16), v.astype(jnp.bfloat16),
                         preferred_element_type=jnp.float32)             # (B*H, S, Dh)

        # Head merge folded into the output projection: per-head projection, then sum over heads.
        attn = jnp.einsum('nsd,ndk->nsk', ctx.astype(jnp.bfloat16), wo,
                          preferred_element_type=jnp.float32)            # (B*H, S, HIDDEN)
        attn = attn.reshape(batch, N_HEADS, seq, HIDDEN).sum(axis=1).reshape(n_tok, HIDDEN)
        attn = attn + bo_ref[l]

        h1 = layernorm(x + attn, ln1g_ref[l], ln1b_ref[l])

        ff = jnp.dot(h1.astype(jnp.bfloat16), wff1_ref[l],
                     preferred_element_type=jnp.float32) + bff1_ref[l]
        # TODO(synk): HF BERT uses exact (erf) GELU; tanh-approx kept (Mosaic-safe, EUP-friendly).
        ff = jax.nn.gelu(ff)
        ff = jnp.dot(ff.astype(jnp.bfloat16), wff2_ref[l],
                     preferred_element_type=jnp.float32) + bff2_ref[l]
        x = layernorm(h1 + ff, ln2g_ref[l], ln2b_ref[l])

    # ---- [CLS] rows -> tanh pooler -> dropout(identity) -> classifier head ----
    cls = jnp.concatenate([x[b * seq:b * seq + 1, :] for b in range(batch)], axis=0)  # (B, HIDDEN)
    pooled = jnp.tanh(jnp.dot(cls.astype(jnp.bfloat16), pw_ref[...],
                              preferred_element_type=jnp.float32) + pb_ref[...])
    # TODO(synk): nn.Dropout(p=0.5) is stochastic; applied as identity (inference/eval mode).
    o_ref[...] = jnp.dot(pooled.astype(jnp.bfloat16), ow_ref[...],
                         preferred_element_type=jnp.float32) + ob_ref[...]            # (B, N_PAD)


# ---------------------------------------------------------------------------
# Parameters (deterministic synthetic init); per-layer weights stacked on a leading
# N_LAYERS axis and pre-split per head so the kernel never slices the lane axis.
# ---------------------------------------------------------------------------
def init_params(key):
    def nrm(k, shape, dtype=jnp.float32):
        return (jax.random.normal(k, shape, jnp.float32) * 0.02).astype(dtype)

    keys = iter(jax.random.split(key, 64))
    zeros = lambda *s: jnp.zeros(s, jnp.float32)
    ones = lambda *s: jnp.ones(s, jnp.float32)

    p = {
        "word_emb": nrm(next(keys), (VOCAB, HIDDEN)),
        "pos_emb": nrm(next(keys), (MAX_POS, HIDDEN)),
        "type_emb": nrm(next(keys), (TYPE_VOCAB, HIDDEN)),
        "emb_ln_g": ones(1, HIDDEN),
        "emb_ln_b": zeros(1, HIDDEN),
        "pooler_w": nrm(next(keys), (HIDDEN, HIDDEN), jnp.bfloat16),
        "pooler_b": zeros(1, HIDDEN),
    }
    out_w = nrm(next(keys), (HIDDEN, N_CLASSES), jnp.bfloat16)
    p["out_w_pad"] = jnp.zeros((HIDDEN, N_PAD), jnp.bfloat16).at[:, :N_CLASSES].set(out_w)
    p["out_b_pad"] = zeros(1, N_PAD)

    def split_in(w):    # (HIDDEN, HIDDEN): head h uses output cols [h*Dh, (h+1)*Dh)
        return w.reshape(HIDDEN, N_HEADS, HEAD_DIM).transpose(1, 0, 2)

    def split_out(w):   # (HIDDEN, HIDDEN): head h uses input rows [h*Dh, (h+1)*Dh)
        return w.reshape(N_HEADS, HEAD_DIM, HIDDEN)

    wq, wk, wv, wo = [], [], [], []
    bq, bk, bv, bo = [], [], [], []
    ln1g, ln1b, ln2g, ln2b = [], [], [], []
    wff1, bff1, wff2, bff2 = [], [], [], []
    for _ in range(N_LAYERS):
        wq.append(split_in(nrm(next(keys), (HIDDEN, HIDDEN))).astype(jnp.bfloat16))
        wk.append(split_in(nrm(next(keys), (HIDDEN, HIDDEN))).astype(jnp.bfloat16))
        wv.append(split_in(nrm(next(keys), (HIDDEN, HIDDEN))).astype(jnp.bfloat16))
        bq.append(jnp.zeros((N_HEADS, 1, HEAD_DIM), jnp.float32))
        bk.append(jnp.zeros((N_HEADS, 1, HEAD_DIM), jnp.float32))
        bv.append(jnp.zeros((N_HEADS, 1, HEAD_DIM), jnp.float32))
        wo.append(split_out(nrm(next(keys), (HIDDEN, HIDDEN))).astype(jnp.bfloat16))
        bo.append(zeros(1, HIDDEN))
        ln1g.append(ones(1, HIDDEN)); ln1b.append(zeros(1, HIDDEN))
        wff1.append(nrm(next(keys), (HIDDEN, INTERMEDIATE), jnp.bfloat16))
        bff1.append(zeros(1, INTERMEDIATE))
        wff2.append(nrm(next(keys), (INTERMEDIATE, HIDDEN), jnp.bfloat16))
        bff2.append(zeros(1, HIDDEN))
        ln2g.append(ones(1, HIDDEN)); ln2b.append(zeros(1, HIDDEN))

    p.update({
        "wq": jnp.stack(wq), "wk": jnp.stack(wk), "wv": jnp.stack(wv),
        "bq": jnp.stack(bq), "bk": jnp.stack(bk), "bv": jnp.stack(bv),
        "wo": jnp.stack(wo), "bo": jnp.stack(bo),
        "ln1_g": jnp.stack(ln1g), "ln1_b": jnp.stack(ln1b),
        "w_ff1": jnp.stack(wff1), "b_ff1": jnp.stack(bff1),
        "w_ff2": jnp.stack(wff2), "b_ff2": jnp.stack(bff2),
        "ln2_g": jnp.stack(ln2g), "ln2_b": jnp.stack(ln2b),
    })
    return p


# ---------------------------------------------------------------------------
# Forward pass: one pallas_call for the whole model
# ---------------------------------------------------------------------------
def match_classifier_forward(params, input_ids, attention_mask):
    B, S = input_ids.shape
    ids_flat = input_ids.reshape(B * S).astype(jnp.int32)
    mask_i = attention_mask.astype(jnp.int32)

    args = (
        mask_i,
        params["word_emb"], params["pos_emb"], params["type_emb"],
        params["emb_ln_g"], params["emb_ln_b"],
        params["wq"], params["wk"], params["wv"],
        params["bq"], params["bk"], params["bv"],
        params["wo"], params["bo"], params["ln1_g"], params["ln1_b"],
        params["w_ff1"], params["b_ff1"], params["w_ff2"], params["b_ff2"],
        params["ln2_g"], params["ln2_b"],
        params["pooler_w"], params["pooler_b"],
        params["out_w_pad"], params["out_b_pad"],
    )

    def full_spec(a):
        nd = a.ndim
        return pl.BlockSpec(a.shape, lambda i, ids: (0,) * nd)

    kern = functools.partial(_forward_kernel, batch=B, seq=S)
    logits_pad = pl.pallas_call(
        kern,
        out_shape=jax.ShapeDtypeStruct((B, N_PAD), jnp.float32),
        grid_spec=pltpu.PrefetchScalarGridSpec(
            num_scalar_prefetch=1,                      # input_ids -> SMEM
            grid=(1,),
            in_specs=[full_spec(a) for a in args],
            out_specs=pl.BlockSpec((B, N_PAD), lambda i, ids: (0, 0)),
            scratch_shapes=[pltpu.VMEM((B * S, HIDDEN), jnp.float32)],
        ),
        compiler_params=pltpu.CompilerParams(
            dimension_semantics=("arbitrary",),
            vmem_limit_bytes=32 * 1024 * 1024,
        ),
    )(ids_flat, *args)
    return logits_pad[:, :N_CLASSES]                    # (B, N_CLASSES)


if __name__ == "__main__":
    key = jax.random.PRNGKey(0)
    pkey, ikey = jax.random.split(key)
    params = init_params(pkey)

    B, S = 2, 8
    input_ids = jax.random.randint(ikey, (B, S), 0, VOCAB)
    attention_mask = jnp.ones((B, S), jnp.int32).at[1, 6:].set(0)

    fwd = jax.jit(lambda ids, m: match_classifier_forward(params, ids, m))
    logits = fwd(input_ids, attention_mask)
    jax.block_until_ready(logits)
    assert logits.shape == (B, N_CLASSES)
    print("KERNEL_OK")
</pallas_src>

<mosaic_0001>
module attributes {stable_mosaic.version = 11 : i64} {
  func.func @_forward_kernel(%arg0: i32, %arg1: memref<16xi32, #tpu.memory_space<smem>>, %arg2: memref<2x8xi32, #tpu.memory_space<vmem>>, %arg3: memref<100x32xf32, #tpu.memory_space<vmem>>, %arg4: memref<16x32xf32, #tpu.memory_space<vmem>>, %arg5: memref<2x32xf32, #tpu.memory_space<vmem>>, %arg6: memref<1x32xf32, #tpu.memory_space<vmem>>, %arg7: memref<1x32xf32, #tpu.memory_space<vmem>>, %arg8: memref<2x2x32x16xbf16, #tpu.memory_space<vmem>>, %arg9: memref<2x2x32x16xbf16, #tpu.memory_space<vmem>>, %arg10: memref<2x2x32x16xbf16, #tpu.memory_space<vmem>>, %arg11: memref<2x2x1x16xf32, #tpu.memory_space<vmem>>, %arg12: memref<2x2x1x16xf32, #tpu.memory_space<vmem>>, %arg13: memref<2x2x1x16xf32, #tpu.memory_space<vmem>>, %arg14: memref<2x2x16x32xbf16, #tpu.memory_space<vmem>>, %arg15: memref<2x1x32xf32, #tpu.memory_space<vmem>>, %arg16: memref<2x1x32xf32, #tpu.memory_space<vmem>>, %arg17: memref<2x1x32xf32, #tpu.memory_space<vmem>>, %arg18: memref<2x32x128xbf16, #tpu.memory_space<vmem>>, %arg19: memref<2x1x128xf32, #tpu.memory_space<vmem>>, %arg20: memref<2x128x32xbf16, #tpu.memory_space<vmem>>, %arg21: memref<2x1x32xf32, #tpu.memory_space<vmem>>, %arg22: memref<2x1x32xf32, #tpu.memory_space<vmem>>, %arg23: memref<2x1x32xf32, #tpu.memory_space<vmem>>, %arg24: memref<32x32xbf16, #tpu.memory_space<vmem>>, %arg25: memref<1x32xf32, #tpu.memory_space<vmem>>, %arg26: memref<32x128xbf16, #tpu.memory_space<vmem>>, %arg27: memref<1x128xf32, #tpu.memory_space<vmem>>, %arg28: memref<2x128xf32, #tpu.memory_space<vmem>>, %arg29: memref<16x32xf32, #tpu.memory_space<vmem>>) attributes {dimension_semantics = [#tpu.dimension_semantics<arbitrary>], iteration_bounds = array<i64: 1>, scalar_prefetch = 1 : i64, scratch_operands = 1 : i64, tpu.core_type = #tpu.core_type<tc>, window_params = [{pipeline_mode = #tpu.pipeline_mode<synchronous>, transform_indices = @transform_0, window_bounds = array<i64: 2, 8>}, {pipeline_mode = #tpu.pipeline_mode<synchronous>, transform_indices = @transform_1, window_bounds = array<i64: 100, 32>}, {pipeline_mode = #tpu.pipeline_mode<synchronous>, transform_indices = @transform_2, window_bounds = array<i64: 16, 32>}, {pipeline_mode = #tpu.pipeline_mode<synchronous>, transform_indices = @transform_3, window_bounds = array<i64: 2, 32>}, {pipeline_mode = #tpu.pipeline_mode<synchronous>, transform_indices = @transform_4, window_bounds = array<i64: 1, 32>}, {pipeline_mode = #tpu.pipeline_mode<synchronous>, transform_indices = @transform_5, window_bounds = array<i64: 1, 32>}, {pipeline_mode = #tpu.pipeline_mode<synchronous>, transform_indices = @transform_6, window_bounds = array<i64: 2, 2, 32, 16>}, {pipeline_mode = #tpu.pipeline_mode<synchronous>, transform_indices = @transform_7, window_bounds = array<i64: 2, 2, 32, 16>}, {pipeline_mode = #tpu.pipeline_mode<synchronous>, transform_indices = @transform_8, window_bounds = array<i64: 2, 2, 32, 16>}, {pipeline_mode = #tpu.pipeline_mode<synchronous>, transform_indices = @transform_9, window_bounds = array<i64: 2, 2, 1, 16>}, {pipeline_mode = #tpu.pipeline_mode<synchronous>, transform_indices = @transform_10, window_bounds = array<i64: 2, 2, 1, 16>}, {pipeline_mode = #tpu.pipeline_mode<synchronous>, transform_indices = @transform_11, window_bounds = array<i64: 2, 2, 1, 16>}, {pipeline_mode = #tpu.pipeline_mode<synchronous>, transform_indices = @transform_12, window_bounds = array<i64: 2, 2, 16, 32>}, {pipeline_mode = #tpu.pipeline_mode<synchronous>, transform_indices = @transform_13, window_bounds = array<i64: 2, 1, 32>}, {pipeline_mode = #tpu.pipeline_mode<synchronous>, transform_indices = @transform_14, window_bounds = array<i64: 2, 1, 32>}, {pipeline_mode = #tpu.pipeline_mode<synchronous>, transform_indices = @transform_15, window_bounds = array<i64: 2, 1, 32>}, {pipeline_mode = #tpu.pipeline_mode<synchronous>, transform_indices = @transform_16, window_bounds = array<i64: 2, 32, 128>}, {pipeline_mode = #tpu.pipeline_mode<synchronous>, transform_indices = @transform_17, window_bounds = array<i64: 2, 1, 128>}, {pipeline_mode = #tpu.pipeline_mode<synchronous>, transform_indices = @transform_18, window_bounds = array<i64: 2, 128, 32>}, {pipeline_mode = #tpu.pipeline_mode<synchronous>, transform_indices = @transform_19, window_bounds = array<i64: 2, 1, 32>}, {pipeline_mode = #tpu.pipeline_mode<synchronous>, transform_indices = @transform_20, window_bounds = array<i64: 2, 1, 32>}, {pipeline_mode = #tpu.pipeline_mode<synchronous>, transform_indices = @transform_21, window_bounds = array<i64: 2, 1, 32>}, {pipeline_mode = #tpu.pipeline_mode<synchronous>, transform_indices = @transform_22, window_bounds = array<i64: 32, 32>}, {pipeline_mode = #tpu.pipeline_mode<synchronous>, transform_indices = @transform_23, window_bounds = array<i64: 1, 32>}, {pipeline_mode = #tpu.pipeline_mode<synchronous>, transform_indices = @transform_24, window_bounds = array<i64: 32, 128>}, {pipeline_mode = #tpu.pipeline_mode<synchronous>, transform_indices = @transform_25, window_bounds = array<i64: 1, 128>}, {pipeline_mode = #tpu.pipeline_mode<synchronous>, transform_indices = @transform_26, window_bounds = array<i64: 2, 128>}]} {
    %c0 = arith.constant 0 : index
    %c0_0 = arith.constant 0 : index
    %0 = vector.load %arg5[%c0, %c0_0] : memref<2x32xf32, #tpu.memory_space<vmem>>, vector<1x32xf32>
    %c0_1 = arith.constant 0 : index
    %1 = memref.load %arg1[%c0_1] : memref<16xi32, #tpu.memory_space<smem>>
    %2 = arith.index_cast %1 : i32 to index
    %c0_2 = arith.constant 0 : index
    %3 = vector.load %arg3[%2, %c0_2] : memref<100x32xf32, #tpu.memory_space<vmem>>, vector<1x32xf32>
    %c0_3 = arith.constant 0 : index
    %c0_4 = arith.constant 0 : index
    %4 = vector.load %arg4[%c0_3, %c0_4] : memref<16x32xf32, #tpu.memory_space<vmem>>, vector<1x32xf32>
    %5 = arith.addf %3, %4 : vector<1x32xf32>
    %6 = arith.addf %5, %0 : vector<1x32xf32>
    %c0_5 = arith.constant 0 : index
    %c0_6 = arith.constant 0 : index
    %7 = vector.load %arg29[%c0_5, %c0_6] : memref<16x32xf32, #tpu.memory_space<vmem>>, vector<1x32xf32>
    tpu.vector_store %arg29[%c0_5, %c0_6], %6 {strides = array<i32>} : memref<16x32xf32, #tpu.memory_space<vmem>>, vector<1x32xf32>,
    %c1 = arith.constant 1 : index
    %8 = memref.load %arg1[%c1] : memref<16xi32, #tpu.memory_space<smem>>
    %9 = arith.index_cast %8 : i32 to index
    %c0_7 = arith.constant 0 : index
    %10 = vector.load %arg3[%9, %c0_7] : memref<100x32xf32, #tpu.memory_space<vmem>>, vector<1x32xf32>
    %c1_8 = arith.constant 1 : index
    %c0_9 = arith.constant 0 : index
    %11 = vector.load %arg4[%c1_8, %c0_9] : memref<16x32xf32, #tpu.memory_space<vmem>>, vector<1x32xf32>
    %12 = arith.addf %10, %11 : vector<1x32xf32>
    %13 = arith.addf %12, %0 : vector<1x32xf32>
    %c1_10 = arith.constant 1 : index
    %c0_11 = arith.constant 0 : index
    %14 = vector.load %arg29[%c1_10, %c0_11] : memref<16x32xf32, #tpu.memory_space<vmem>>, vector<1x32xf32>
    tpu.vector_store %arg29[%c1_10, %c0_11], %13 {strides = array<i32>} : memref<16x32xf32, #tpu.memory_space<vmem>>, vector<1x32xf32>,
    %c2 = arith.constant 2 : index
    %15 = memref.load %arg1[%c2] : memref<16xi32, #tpu.memory_space<smem>>
    %16 = arith.index_cast %15 : i32 to index
    %c0_12 = arith.constant 0 : index
    %17 = vector.load %arg3[%16, %c0_12] : memref<100x32xf32, #tpu.memory_space<vmem>>, vector<1x32xf32>
    %c2_13 = arith.constant 2 : index
    %c0_14 = arith.constant 0 : index
    %18 = vector.load %arg4[%c2_13, %c0_14] : memref<16x32xf32, #tpu.memory_space<vmem>>, vector<1x32xf32>
    %19 = arith.addf %17, %18 : vector<1x32xf32>
    %20 = arith.addf %19, %0 : vector<1x32xf32>
    %c2_15 = arith.constant 2 : index
    %c0_16 = arith.constant 0 : index
    %21 = vector.load %arg29[%c2_15, %c0_16] : memref<16x32xf32, #tpu.memory_space<vmem>>, vector<1x32xf32>
    tpu.vector_store %arg29[%c2_15, %c0_16], %20 {strides = array<i32>} : memref<16x32xf32, #tpu.memory_space<vmem>>, vector<1x32xf32>,
    %c3 = arith.constant 3 : index
    %22 = memref.load %arg1[%c3] : memref<16xi32, #tpu.memory_space<smem>>
    %23 = arith.index_cast %22 : i32 to index
    %c0_17 = arith.constant 0 : index
    %24 = vector.load %arg3[%23, %c0_17] : memref<100x32xf32, #tpu.memory_space<vmem>>, vector<1x32xf32>
    %c3_18 = arith.constant 3 : index
    %c0_19 = arith.constant 0 : index
    %25 = vector.load %arg4[%c3_18, %c0_19] : memref<16x32xf32, #tpu.memory_space<vmem>>, vector<1x32xf32>
    %26 = arith.addf %24, %25 : vector<1x32xf32>
    %27 = arith.addf %26, %0 : vector<1x32xf32>
    %c3_20 = arith.constant 3 : index
    %c0_21 = arith.constant 0 : index
    %28 = vector.load %arg29[%c3_20, %c0_21] : memref<16x32xf32, #tpu.memory_space<vmem>>, vector<1x32xf32>
    tpu.vector_store %arg29[%c3_20, %c0_21], %27 {strides = array<i32>} : memref<16x32xf32, #tpu.memory_space<vmem>>, vector<1x32xf32>,
    %c4 = arith.constant 4 : index
    %29 = memref.load %arg1[%c4] : memref<16xi32, #tpu.memory_space<smem>>
    %30 = arith.index_cast %29 : i32 to index
    %c0_22 = arith.constant 0 : index
    %31 = vector.load %arg3[%30, %c0_22] : memref<100x32xf32, #tpu.memory_space<vmem>>, vector<1x32xf32>
    %c4_23 = arith.constant 4 : index
    %c0_24 = arith.constant 0 : index
    %32 = vector.load %arg4[%c4_23, %c0_24] : memref<16x32xf32, #tpu.memory_space<vmem>>, vector<1x32xf32>
    %33 = arith.addf %31, %32 : vector<1x32xf32>
    %34 = arith.addf %33, %0 : vector<1x32xf32>
    %c4_25 = arith.constant 4 : index
    %c0_26 = arith.constant 0 : index
    %35 = vector.load %arg29[%c4_25, %c0_26] : memref<16x32xf32, #tpu.memory_space<vmem>>, vector<1x32xf32>
    tpu.vector_store %arg29[%c4_25, %c0_26], %34 {strides = array<i32>} : memref<16x32xf32, #tpu.memory_space<vmem>>, vector<1x32xf32>,
    %c5 = arith.constant 5 : index
    %36 = memref.load %arg1[%c5] : memref<16xi32, #tpu.memory_space<smem>>
    %37 = arith.index_cast %36 : i32 to index
    %c0_27 = arith.constant 0 : index
    %38 = vector.load %arg3[%37, %c0_27] : memref<100x32xf32, #tpu.memory_space<vmem>>, vector<1x32xf32>
    %c5_28 = arith.constant 5 : index
    %c0_29 = arith.constant 0 : index
    %39 = vector.load %arg4[%c5_28, %c0_29] : memref<16x32xf32, #tpu.memory_space<vmem>>, vector<1x32xf32>
    %40 = arith.addf %38, %39 : vector<1x32xf32>
    %41 = arith.addf %40, %0 : vector<1x32xf32>
    %c5_30 = arith.constant 5 : index
    %c0_31 = arith.constant 0 : index
    %42 = vector.load %arg29[%c5_30, %c0_31] : memref<16x32xf32, #tpu.memory_space<vmem>>, vector<1x32xf32>
    tpu.vector_store %arg29[%c5_30, %c0_31], %41 {strides = array<i32>} : memref<16x32xf32, #tpu.memory_space<vmem>>, vector<1x32xf32>,
    %c6 = arith.constant 6 : index
    %43 = memref.load %arg1[%c6] : memref<16xi32, #tpu.memory_space<smem>>
    %44 = arith.index_cast %43 : i32 to index
    %c0_32 = arith.constant 0 : index
    %45 = vector.load %arg3[%44, %c0_32] : memref<100x32xf32, #tpu.memory_space<vmem>>, vector<1x32xf32>
    %c6_33 = arith.constant 6 : index
    %c0_34 = arith.constant 0 : index
    %46 = vector.load %arg4[%c6_33, %c0_34] : memref<16x32xf32, #tpu.memory_space<vmem>>, vector<1x32xf32>
    %47 = arith.addf %45, %46 : vector<1x32xf32>
    %48 = arith.addf %47, %0 : vector<1x32xf32>
    %c6_35 = arith.constant 6 : index
    %c0_36 = arith.constant 0 : index
    %49 = vector.load %arg29[%c6_35, %c0_36] : memref<16x32xf32, #tpu.memory_space<vmem>>, vector<1x32xf32>
    tpu.vector_store %arg29[%c6_35, %c0_36], %48 {strides = array<i32>} : memref<16x32xf32, #tpu.memory_space<vmem>>, vector<1x32xf32>,
    %c7 = arith.constant 7 : index
    %50 = memref.load %arg1[%c7] : memref<16xi32, #tpu.memory_space<smem>>
    %51 = arith.index_cast %50 : i32 to index
    %c0_37 = arith.constant 0 : index
    %52 = vector.load %arg3[%51, %c0_37] : memref<100x32xf32, #tpu.memory_space<vmem>>, vector<1x32xf32>
    %c7_38 = arith.constant 7 : index
    %c0_39 = arith.constant 0 : index
    %53 = vector.load %arg4[%c7_38, %c0_39] : memref<16x32xf32, #tpu.memory_space<vmem>>, vector<1x32xf32>
    %54 = arith.addf %52, %53 : vector<1x32xf32>
    %55 = arith.addf %54, %0 : vector<1x32xf32>
    %c7_40 = arith.constant 7 : index
    %c0_41 = arith.constant 0 : index
    %56 = vector.load %arg29[%c7_40, %c0_41] : memref<16x32xf32, #tpu.memory_space<vmem>>, vector<1x32xf32>
    tpu.vector_store %arg29[%c7_40, %c0_41], %55 {strides = array<i32>} : memref<16x32xf32, #tpu.memory_space<vmem>>, vector<1x32xf32>,
    %c8 = arith.constant 8 : index
    %57 = memref.load %arg1[%c8] : memref<16xi32, #tpu.memory_space<smem>>
    %58 = arith.index_cast %57 : i32 to index
    %c0_42 = arith.constant 0 : index
    %59 = vector.load %arg3[%58, %c0_42] : memref<100x32xf32, #tpu.memory_space<vmem>>, vector<1x32xf32>
    %c0_43 = arith.constant 0 : index
    %c0_44 = arith.constant 0 : index
    %60 = vector.load %arg4[%c0_43, %c0_44] : memref<16x32xf32, #tpu.memory_space<vmem>>, vector<1x32xf32>
    %61 = arith.addf %59, %60 : vector<1x32xf32>
    %62 = arith.addf %61, %0 : vector<1x32xf32>
    %c8_45 = arith.constant 8 : index
    %c0_46 = arith.constant 0 : index
    %63 = vector.load %arg29[%c8_45, %c0_46] : memref<16x32xf32, #tpu.memory_space<vmem>>, vector<1x32xf32>
    tpu.vector_store %arg29[%c8_45, %c0_46], %62 {strides = array<i32>} : memref<16x32xf32, #tpu.memory_space<vmem>>, vector<1x32xf32>,
    %c9 = arith.constant 9 : index
    %64 = memref.load %arg1[%c9] : memref<16xi32, #tpu.memory_space<smem>>
    %65 = arith.index_cast %64 : i32 to index
    %c0_47 = arith.constant 0 : index
    %66 = vector.load %arg3[%65, %c0_47] : memref<100x32xf32, #tpu.memory_space<vmem>>, vector<1x32xf32>
    %c1_48 = arith.constant 1 : index
    %c0_49 = arith.constant 0 : index
    %67 = vector.load %arg4[%c1_48, %c0_49] : memref<16x32xf32, #tpu.memory_space<vmem>>, vector<1x32xf32>
    %68 = arith.addf %66, %67 : vector<1x32xf32>
    %69 = arith.addf %68, %0 : vector<1x32xf32>
    %c9_50 = arith.constant 9 : index
    %c0_51 = arith.constant 0 : index
    %70 = vector.load %arg29[%c9_50, %c0_51] : memref<16x32xf32, #tpu.memory_space<vmem>>, vector<1x32xf32>
    tpu.vector_store %arg29[%c9_50, %c0_51], %69 {strides = array<i32>} : memref<16x32xf32, #tpu.memory_space<vmem>>, vector<1x32xf32>,
    %c10 = arith.constant 10 : index
    %71 = memref.load %arg1[%c10] : memref<16xi32, #tpu.memory_space<smem>>
    %72 = arith.index_cast %71 : i32 to index
    %c0_52 = arith.constant 0 : index
    %73 = vector.load %arg3[%72, %c0_52] : memref<100x32xf32, #tpu.memory_space<vmem>>, vector<1x32xf32>
    %c2_53 = arith.constant 2 : index
    %c0_54 = arith.constant 0 : index
    %74 = vector.load %arg4[%c2_53, %c0_54] : memref<16x32xf32, #tpu.memory_space<vmem>>, vector<1x32xf32>
    %75 = arith.addf %73, %74 : vector<1x32xf32>
    %76 = arith.addf %75, %0 : vector<1x32xf32>
    %c10_55 = arith.constant 10 : index
    %c0_56 = arith.constant 0 : index
    %77 = vector.load %arg29[%c10_55, %c0_56] : memref<16x32xf32, #tpu.memory_space<vmem>>, vector<1x32xf32>
    tpu.vector_store %arg29[%c10_55, %c0_56], %76 {strides = array<i32>} : memref<16x32xf32, #tpu.memory_space<vmem>>, vector<1x32xf32>,
    %c11 = arith.constant 11 : index
    %78 = memref.load %arg1[%c11] : memref<16xi32, #tpu.memory_space<smem>>
    %79 = arith.index_cast %78 : i32 to index
    %c0_57 = arith.constant 0 : index
    %80 = vector.load %arg3[%79, %c0_57] : memref<100x32xf32, #tpu.memory_space<vmem>>, vector<1x32xf32>
    %c3_58 = arith.constant 3 : index
    %c0_59 = arith.constant 0 : index
    %81 = vector.load %arg4[%c3_58, %c0_59] : memref<16x32xf32, #tpu.memory_space<vmem>>, vector<1x32xf32>
    %82 = arith.addf %80, %81 : vector<1x32xf32>
    %83 = arith.addf %82, %0 : vector<1x32xf32>
    %c11_60 = arith.constant 11 : index
    %c0_61 = arith.constant 0 : index
    %84 = vector.load %arg29[%c11_60, %c0_61] : memref<16x32xf32, #tpu.memory_space<vmem>>, vector<1x32xf32>
    tpu.vector_store %arg29[%c11_60, %c0_61], %83 {strides = array<i32>} : memref<16x32xf32, #tpu.memory_space<vmem>>, vector<1x32xf32>,
    %c12 = arith.constant 12 : index
    %85 = memref.load %arg1[%c12] : memref<16xi32, #tpu.memory_space<smem>>
    %86 = arith.index_cast %85 : i32 to index
    %c0_62 = arith.constant 0 : index
    %87 = vector.load %arg3[%86, %c0_62] : memref<100x32xf32, #tpu.memory_space<vmem>>, vector<1x32xf32>
    %c4_63 = arith.constant 4 : index
    %c0_64 = arith.constant 0 : index
    %88 = vector.load %arg4[%c4_63, %c0_64] : memref<16x32xf32, #tpu.memory_space<vmem>>, vector<1x32xf32>
    %89 = arith.addf %87, %88 : vector<1x32xf32>
    %90 = arith.addf %89, %0 : vector<1x32xf32>
    %c12_65 = arith.constant 12 : index
    %c0_66 = arith.constant 0 : index
    %91 = vector.load %arg29[%c12_65, %c0_66] : memref<16x32xf32, #tpu.memory_space<vmem>>, vector<1x32xf32>
    tpu.vector_store %arg29[%c12_65, %c0_66], %90 {strides = array<i32>} : memref<16x32xf32, #tpu.memory_space<vmem>>, vector<1x32xf32>,
    %c13 = arith.constant 13 : index
    %92 = memref.load %arg1[%c13] : memref<16xi32, #tpu.memory_space<smem>>
    %93 = arith.index_cast %92 : i32 to index
    %c0_67 = arith.constant 0 : index
    %94 = vector.load %arg3[%93, %c0_67] : memref<100x32xf32, #tpu.memory_space<vmem>>, vector<1x32xf32>
    %c5_68 = arith.constant 5 : index
    %c0_69 = arith.constant 0 : index
    %95 = vector.load %arg4[%c5_68, %c0_69] : memref<16x32xf32, #tpu.memory_space<vmem>>, vector<1x32xf32>
    %96 = arith.addf %94, %95 : vector<1x32xf32>
    %97 = arith.addf %96, %0 : vector<1x32xf32>
    %c13_70 = arith.constant 13 : index
    %c0_71 = arith.constant 0 : index
    %98 = vector.load %arg29[%c13_70, %c0_71] : memref<16x32xf32, #tpu.memory_space<vmem>>, vector<1x32xf32>
    tpu.vector_store %arg29[%c13_70, %c0_71], %97 {strides = array<i32>} : memref<16x32xf32, #tpu.memory_space<vmem>>, vector<1x32xf32>,
    %c14 = arith.constant 14 : index
    %99 = memref.load %arg1[%c14] : memref<16xi32, #tpu.memory_space<smem>>
    %100 = arith.index_cast %99 : i32 to index
    %c0_72 = arith.constant 0 : index
    %101 = vector.load %arg3[%100, %c0_72] : memref<100x32xf32, #tpu.memory_space<vmem>>, vector<1x32xf32>
    %c6_73 = arith.constant 6 : index
    %c0_74 = arith.constant 0 : index
    %102 = vector.load %arg4[%c6_73, %c0_74] : memref<16x32xf32, #tpu.memory_space<vmem>>, vector<1x32xf32>
    %103 = arith.addf %101, %102 : vector<1x32xf32>
    %104 = arith.addf %103, %0 : vector<1x32xf32>
    %c14_75 = arith.constant 14 : index
    %c0_76 = arith.constant 0 : index
    %105 = vector.load %arg29[%c14_75, %c0_76] : memref<16x32xf32, #tpu.memory_space<vmem>>, vector<1x32xf32>
    tpu.vector_store %arg29[%c14_75, %c0_76], %104 {strides = array<i32>} : memref<16x32xf32, #tpu.memory_space<vmem>>, vector<1x32xf32>,
    %c15 = arith.constant 15 : index
    %106 = memref.load %arg1[%c15] : memref<16xi32, #tpu.memory_space<smem>>
    %107 = arith.index_cast %106 : i32 to index
    %c0_77 = arith.constant 0 : index
    %108 = vector.load %arg3[%107, %c0_77] : memref<100x32xf32, #tpu.memory_space<vmem>>, vector<1x32xf32>
    %c7_78 = arith.constant 7 : index
    %c0_79 = arith.constant 0 : index
    %109 = vector.load %arg4[%c7_78, %c0_79] : memref<16x32xf32, #tpu.memory_space<vmem>>, vector<1x32xf32>
    %110 = arith.addf %108, %109 : vector<1x32xf32>
    %111 = arith.addf %110, %0 : vector<1x32xf32>
    %c15_80 = arith.constant 15 : index
    %c0_81 = arith.constant 0 : index
    %112 = vector.load %arg29[%c15_80, %c0_81] : memref<16x32xf32, #tpu.memory_space<vmem>>, vector<1x32xf32>
    tpu.vector_store %arg29[%c15_80, %c0_81], %111 {strides = array<i32>} : memref<16x32xf32, #tpu.memory_space<vmem>>, vector<1x32xf32>,
    %c0_82 = arith.constant 0 : index
    %c0_83 = arith.constant 0 : index
    %113 = vector.load %arg29[%c0_82, %c0_83] : memref<16x32xf32, #tpu.memory_space<vmem>>, vector<16x32xf32>
    %c0_84 = arith.constant 0 : index
    %c0_85 = arith.constant 0 : index
    %114 = vector.load %arg6[%c0_84, %c0_85] : memref<1x32xf32, #tpu.memory_space<vmem>>, vector<1x32xf32>
    %c0_86 = arith.constant 0 : index
    %c0_87 = arith.constant 0 : index
    %115 = vector.load %arg7[%c0_86, %c0_87] : memref<1x32xf32, #tpu.memory_space<vmem>>, vector<1x32xf32>
    %cst = arith.constant dense<0.000000e+00> : vector<16xf32>
    %116 = vector.multi_reduction <add>, %113, %cst [1] : vector<16x32xf32> to vector<16xf32>
    %117 = vector.shape_cast %116 : vector<16xf32> to vector<16x1xf32>
    %cst_88 = arith.constant 3.200000e+01 : f32
    %118 = vector.broadcast %cst_88 : f32 to vector<16x1xf32>
    %119 = arith.divf %117, %118 : vector<16x1xf32>
    %120 = vector.broadcast %119 : vector<16x1xf32> to vector<16x32xf32>
    %121 = arith.subf %113, %120 : vector<16x32xf32>
    %122 = arith.mulf %121, %121 : vector<16x32xf32>
    %cst_89 = arith.constant dense<0.000000e+00> : vector<16xf32>
    %123 = vector.multi_reduction <add>, %122, %cst_89 [1] : vector<16x32xf32> to vector<16xf32>
    %124 = vector.shape_cast %123 : vector<16xf32> to vector<16x1xf32>
    %cst_90 = arith.constant 3.200000e+01 : f32
    %125 = vector.broadcast %cst_90 : f32 to vector<16x1xf32>
    %126 = arith.divf %124, %125 : vector<16x1xf32>
    %127 = vector.broadcast %119 : vector<16x1xf32> to vector<16x32xf32>
    %128 = arith.subf %113, %127 : vector<16x32xf32>
    %cst_91 = arith.constant 9.99999996E-13 : f32
    %129 = vector.broadcast %cst_91 : f32 to vector<16x1xf32>
    %130 = arith.addf %126, %129 : vector<16x1xf32>
    %131 = math.rsqrt %130 : vector<16x1xf32>
    %132 = vector.broadcast %131 : vector<16x1xf32> to vector<16x32xf32>
    %133 = arith.mulf %128, %132 : vector<16x32xf32>
    %134 = vector.broadcast %114 : vector<1x32xf32> to vector<16x32xf32>
    %135 = arith.mulf %133, %134 : vector<16x32xf32>
    %136 = vector.broadcast %115 : vector<1x32xf32> to vector<16x32xf32>
    %137 = arith.addf %135, %136 : vector<16x32xf32>
    %c0_92 = arith.constant 0 : index
    %c0_93 = arith.constant 0 : index
    %138 = vector.load %arg2[%c0_92, %c0_93] : memref<2x8xi32, #tpu.memory_space<vmem>>, vector<2x8xi32>
    %139 = arith.sitofp %138 : vector<2x8xi32> to vector<2x8xf32>
    %cst_94 = arith.constant 1.000000e+00 : f32
    %140 = vector.broadcast %cst_94 : f32 to vector<2x8xf32>
    %141 = arith.subf %140, %139 : vector<2x8xf32>
    %cst_95 = arith.constant -1.000000e+04 : f32
    %142 = vector.broadcast %cst_95 : f32 to vector<2x8xf32>
    %143 = arith.mulf %141, %142 : vector<2x8xf32>
    %144 = vector.shape_cast %143 : vector<2x8xf32> to vector<2x1x1x8xf32>
    %145 = vector.shape_cast %144 : vector<2x1x1x8xf32> to vector<2x1x1x8xf32>
    %146 = vector.broadcast %145 : vector<2x1x1x8xf32> to vector<2x2x1x8xf32>
    %147 = vector.shape_cast %146 : vector<2x2x1x8xf32> to vector<4x1x8xf32>
    %148 = vector.shape_cast %137 : vector<16x32xf32> to vector<2x1x8x32xf32>
    %149 = vector.shape_cast %148 : vector<2x1x8x32xf32> to vector<2x1x8x32xf32>
    %150 = vector.broadcast %149 : vector<2x1x8x32xf32> to vector<2x2x8x32xf32>
    %151 = vector.shape_cast %150 : vector<2x2x8x32xf32> to vector<4x8x32xf32>
    %152 = arith.truncf %151 : vector<4x8x32xf32> to vector<4x8x32xbf16>
    %c0_96 = arith.constant 0 : index
    %c0_97 = arith.constant 0 : index
    %c0_98 = arith.constant 0 : index
    %c0_99 = arith.constant 0 : index
    %153 = vector.load %arg8[%c0_96, %c0_97, %c0_98, %c0_99] : memref<2x2x32x16xbf16, #tpu.memory_space<vmem>>, vector<1x2x32x16xbf16>
    %154 = vector.shape_cast %153 : vector<1x2x32x16xbf16> to vector<2x32x16xbf16>
    %155 = vector.shape_cast %154 : vector<2x32x16xbf16> to vector<1x2x32x16xbf16>
    %156 = vector.shape_cast %155 : vector<1x2x32x16xbf16> to vector<1x2x32x16xbf16>
    %157 = vector.broadcast %156 : vector<1x2x32x16xbf16> to vector<2x2x32x16xbf16>
    %158 = vector.shape_cast %157 : vector<2x2x32x16xbf16> to vector<4x32x16xbf16>
    %c0_100 = arith.constant 0 : index
    %c0_101 = arith.constant 0 : index
    %c0_102 = arith.constant 0 : index
    %c0_103 = arith.constant 0 : index
    %159 = vector.load %arg9[%c0_100, %c0_101, %c0_102, %c0_103] : memref<2x2x32x16xbf16, #tpu.memory_space<vmem>>, vector<1x2x32x16xbf16>
    %160 = vector.shape_cast %159 : vector<1x2x32x16xbf16> to vector<2x32x16xbf16>
    %161 = vector.shape_cast %160 : vector<2x32x16xbf16> to vector<1x2x32x16xbf16>
    %162 = vector.shape_cast %161 : vector<1x2x32x16xbf16> to vector<1x2x32x16xbf16>
    %163 = vector.broadcast %162 : vector<1x2x32x16xbf16> to vector<2x2x32x16xbf16>
    %164 = vector.shape_cast %163 : vector<2x2x32x16xbf16> to vector<4x32x16xbf16>
    %c0_104 = arith.constant 0 : index
    %c0_105 = arith.constant 0 : index
    %c0_106 = arith.constant 0 : index
    %c0_107 = arith.constant 0 : index
    %165 = vector.load %arg10[%c0_104, %c0_105, %c0_106, %c0_107] : memref<2x2x32x16xbf16, #tpu.memory_space<vmem>>, vector<1x2x32x16xbf16>
    %166 = vector.shape_cast %165 : vector<1x2x32x16xbf16> to vector<2x32x16xbf16>
    %167 = vector.shape_cast %166 : vector<2x32x16xbf16> to vector<1x2x32x16xbf16>
    %168 = vector.shape_cast %167 : vector<1x2x32x16xbf16> to vector<1x2x32x16xbf16>
    %169 = vector.broadcast %168 : vector<1x2x32x16xbf16> to vector<2x2x32x16xbf16>
    %170 = vector.shape_cast %169 : vector<2x2x32x16xbf16> to vector<4x32x16xbf16>
    %c0_108 = arith.constant 0 : index
    %c0_109 = arith.constant 0 : index
    %c0_110 = arith.constant 0 : index
    %c0_111 = arith.constant 0 : index
    %171 = vector.load %arg11[%c0_108, %c0_109, %c0_110, %c0_111] : memref<2x2x1x16xf32, #tpu.memory_space<vmem>>, vector<1x2x1x16xf32>
    %172 = vector.shape_cast %171 : vector<1x2x1x16xf32> to vector<2x1x16xf32>
    %173 = vector.shape_cast %172 : vector<2x1x16xf32> to vector<1x2x1x16xf32>
    %174 = vector.shape_cast %173 : vector<1x2x1x16xf32> to vector<1x2x1x16xf32>
    %175 = vector.broadcast %174 : vector<1x2x1x16xf32> to vector<2x2x1x16xf32>
    %176 = vector.shape_cast %175 : vector<2x2x1x16xf32> to vector<4x1x16xf32>
    %c0_112 = arith.constant 0 : index
    %c0_113 = arith.constant 0 : index
    %c0_114 = arith.constant 0 : index
    %c0_115 = arith.constant 0 : index
    %177 = vector.load %arg12[%c0_112, %c0_113, %c0_114, %c0_115] : memref<2x2x1x16xf32, #tpu.memory_space<vmem>>, vector<1x2x1x16xf32>
    %178 = vector.shape_cast %177 : vector<1x2x1x16xf32> to vector<2x1x16xf32>
    %179 = vector.shape_cast %178 : vector<2x1x16xf32> to vector<1x2x1x16xf32>
    %180 = vector.shape_cast %179 : vector<1x2x1x16xf32> to vector<1x2x1x16xf32>
    %181 = vector.broadcast %180 : vector<1x2x1x16xf32> to vector<2x2x1x16xf32>
    %182 = vector.shape_cast %181 : vector<2x2x1x16xf32> to vector<4x1x16xf32>
    %c0_116 = arith.constant 0 : index
    %c0_117 = arith.constant 0 : index
    %c0_118 = arith.constant 0 : index
    %c0_119 = arith.constant 0 : index
    %183 = vector.load %arg13[%c0_116, %c0_117, %c0_118, %c0_119] : memref<2x2x1x16xf32, #tpu.memory_space<vmem>>, vector<1x2x1x16xf32>
    %184 = vector.shape_cast %183 : vector<1x2x1x16xf32> to vector<2x1x16xf32>
    %185 = vector.shape_cast %184 : vector<2x1x16xf32> to vector<1x2x1x16xf32>
    %186 = vector.shape_cast %185 : vector<1x2x1x16xf32> to vector<1x2x1x16xf32>
    %187 = vector.broadcast %186 : vector<1x2x1x16xf32> to vector<2x2x1x16xf32>
    %188 = vector.shape_cast %187 : vector<2x2x1x16xf32> to vector<4x1x16xf32>
    %c0_120 = arith.constant 0 : index
    %c0_121 = arith.constant 0 : index
    %c0_122 = arith.constant 0 : index
    %c0_123 = arith.constant 0 : index
    %189 = vector.load %arg14[%c0_120, %c0_121, %c0_122, %c0_123] : memref<2x2x16x32xbf16, #tpu.memory_space<vmem>>, vector<1x2x16x32xbf16>
    %190 = vector.shape_cast %189 : vector<1x2x16x32xbf16> to vector<2x16x32xbf16>
    %191 = vector.shape_cast %190 : vector<2x16x32xbf16> to vector<1x2x16x32xbf16>
    %192 = vector.shape_cast %191 : vector<1x2x16x32xbf16> to vector<1x2x16x32xbf16>
    %193 = vector.broadcast %192 : vector<1x2x16x32xbf16> to vector<2x2x16x32xbf16>
    %194 = vector.shape_cast %193 : vector<2x2x16x32xbf16> to vector<4x16x32xbf16>
    "tpu.trace_start"() <{level = 10 : i32, message = "nsh,nhd->nsd"}> : () -> ()
    %cst_124 = arith.constant dense<0.000000e+00> : vector<4x8x16xf32>
    %195 = tpu.matmul %152, %158, %cst_124 {dimension_numbers = #tpu.dot_dimension_numbers<[2], [1], [1], [2], [0, 0, 0, 1, 1, 2], [0], [0]>} : vector<4x8x32xbf16>, vector<4x32x16xbf16>, vector<4x8x16xf32> -> vector<4x8x16xf32>
    "tpu.trace_stop"() : () -> ()
    %196 = vector.broadcast %176 : vector<4x1x16xf32> to vector<4x8x16xf32>
    %197 = arith.addf %195, %196 : vector<4x8x16xf32>
    "tpu.trace_start"() <{level = 10 : i32, message = "nsh,nhd->nsd"}> : () -> ()
    %cst_125 = arith.constant dense<0.000000e+00> : vector<4x8x16xf32>
    %198 = tpu.matmul %152, %164, %cst_125 {dimension_numbers = #tpu.dot_dimension_numbers<[2], [1], [1], [2], [0, 0, 0, 1, 1, 2], [0], [0]>} : vector<4x8x32xbf16>, vector<4x32x16xbf16>, vector<4x8x16xf32> -> vector<4x8x16xf32>
    "tpu.trace_stop"() : () -> ()
    %199 = vector.broadcast %182 : vector<4x1x16xf32> to vector<4x8x16xf32>
    %200 = arith.addf %198, %199 : vector<4x8x16xf32>
    "tpu.trace_start"() <{level = 10 : i32, message = "nsh,nhd->nsd"}> : () -> ()
    %cst_126 = arith.constant dense<0.000000e+00> : vector<4x8x16xf32>
    %201 = tpu.matmul %152, %170, %cst_126 {dimension_numbers = #tpu.dot_dimension_numbers<[2], [1], [1], [2], [0, 0, 0, 1, 1, 2], [0], [0]>} : vector<4x8x32xbf16>, vector<4x32x16xbf16>, vector<4x8x16xf32> -> vector<4x8x16xf32>
    "tpu.trace_stop"() : () -> ()
    %202 = vector.broadcast %188 : vector<4x1x16xf32> to vector<4x8x16xf32>
    %203 = arith.addf %201, %202 : vector<4x8x16xf32>
    %204 = arith.truncf %197 : vector<4x8x16xf32> to vector<4x8x16xbf16>
    %205 = arith.truncf %200 : vector<4x8x16xf32> to vector<4x8x16xbf16>
    "tpu.trace_start"() <{level = 10 : i32, message = "nsd,ntd->nst"}> : () -> ()
    %cst_127 = arith.constant dense<0.000000e+00> : vector<4x8x8xf32>
    %206 = tpu.matmul %204, %205, %cst_127 {dimension_numbers = #tpu.dot_dimension_numbers<[2], [2], [1], [1], [0, 0, 0, 1, 1, 1], [0], [0]>} : vector<4x8x16xbf16>, vector<4x8x16xbf16>, vector<4x8x8xf32> -> vector<4x8x8xf32>
    "tpu.trace_stop"() : () -> ()
    %cst_128 = arith.constant 2.500000e-01 : f32
    %207 = vector.broadcast %cst_128 : f32 to vector<4x8x8xf32>
    %208 = arith.mulf %206, %207 : vector<4x8x8xf32>
    %209 = vector.broadcast %147 : vector<4x1x8xf32> to vector<4x8x8xf32>
    %210 = arith.addf %208, %209 : vector<4x8x8xf32>
    %cst_129 = arith.constant dense<0xFF800000> : vector<4x8xf32>
    %211 = vector.multi_reduction <maximumf>, %210, %cst_129 [2] : vector<4x8x8xf32> to vector<4x8xf32>
    %212 = vector.shape_cast %211 : vector<4x8xf32> to vector<4x8x1xf32>
    %213 = vector.broadcast %212 : vector<4x8x1xf32> to vector<4x8x8xf32>
    %214 = arith.subf %210, %213 : vector<4x8x8xf32>
    %215 = math.exp %214 : vector<4x8x8xf32>
    %cst_130 = arith.constant dense<0.000000e+00> : vector<4x8xf32>
    %216 = vector.multi_reduction <add>, %215, %cst_130 [2] : vector<4x8x8xf32> to vector<4x8xf32>
    %217 = vector.shape_cast %216 : vector<4x8xf32> to vector<4x8x1xf32>
    %218 = tpu.reciprocal %217 {approx = true} : vector<4x8x1xf32> -> vector<4x8x1xf32>
    %219 = vector.broadcast %218 : vector<4x8x1xf32> to vector<4x8x8xf32>
    %220 = arith.mulf %215, %219 : vector<4x8x8xf32>
    %221 = arith.truncf %220 : vector<4x8x8xf32> to vector<4x8x8xbf16>
    %222 = arith.truncf %203 : vector<4x8x16xf32> to vector<4x8x16xbf16>
    "tpu.trace_start"() <{level = 10 : i32, message = "nst,ntd->nsd"}> : () -> ()
    %cst_131 = arith.constant dense<0.000000e+00> : vector<4x8x16xf32>
    %223 = tpu.matmul %221, %222, %cst_131 {dimension_numbers = #tpu.dot_dimension_numbers<[2], [1], [1], [2], [0, 0, 0, 1, 1, 2], [0], [0]>} : vector<4x8x8xbf16>, vector<4x8x16xbf16>, vector<4x8x16xf32> -> vector<4x8x16xf32>
    "tpu.trace_stop"() : () -> ()
    %224 = arith.truncf %223 : vector<4x8x16xf32> to vector<4x8x16xbf16>
    "tpu.trace_start"() <{level = 10 : i32, message = "nsd,ndk->nsk"}> : () -> ()
    %cst_132 = arith.constant dense<0.000000e+00> : vector<4x8x32xf32>
    %225 = tpu.matmul %224, %194, %cst_132 {dimension_numbers = #tpu.dot_dimension_numbers<[2], [1], [1], [2], [0, 0, 0, 1, 1, 2], [0], [0]>} : vector<4x8x16xbf16>, vector<4x16x32xbf16>, vector<4x8x32xf32> -> vector<4x8x32xf32>
    "tpu.trace_stop"() : () -> ()
    %226 = vector.shape_cast %225 : vector<4x8x32xf32> to vector<2x2x8x32xf32>
    %cst_133 = arith.constant dense<0.000000e+00> : vector<2x8x32xf32>
    %227 = vector.multi_reduction <add>, %226, %cst_133 [1] : vector<2x2x8x32xf32> to vector<2x8x32xf32>
    %228 = vector.shape_cast %227 : vector<2x8x32xf32> to vector<16x32xf32>
    %c0_134 = arith.constant 0 : index
    %c0_135 = arith.constant 0 : index
    %c0_136 = arith.constant 0 : index
    %229 = vector.load %arg15[%c0_134, %c0_135, %c0_136] : memref<2x1x32xf32, #tpu.memory_space<vmem>>, vector<1x1x32xf32>
    %230 = vector.shape_cast %229 : vector<1x1x32xf32> to vector<1x32xf32>
    %231 = vector.broadcast %230 : vector<1x32xf32> to vector<16x32xf32>
    %232 = arith.addf %228, %231 : vector<16x32xf32>
    %233 = arith.addf %137, %232 : vector<16x32xf32>
    %c0_137 = arith.constant 0 : index
    %c0_138 = arith.constant 0 : index
    %c0_139 = arith.constant 0 : index
    %234 = vector.load %arg16[%c0_137, %c0_138, %c0_139] : memref<2x1x32xf32, #tpu.memory_space<vmem>>, vector<1x1x32xf32>
    %235 = vector.shape_cast %234 : vector<1x1x32xf32> to vector<1x32xf32>
    %c0_140 = arith.constant 0 : index
    %c0_141 = arith.constant 0 : index
    %c0_142 = arith.constant 0 : index
    %236 = vector.load %arg17[%c0_140, %c0_141, %c0_142] : memref<2x1x32xf32, #tpu.memory_space<vmem>>, vector<1x1x32xf32>
    %237 = vector.shape_cast %236 : vector<1x1x32xf32> to vector<1x32xf32>
    %cst_143 = arith.constant dense<0.000000e+00> : vector<16xf32>
    %238 = vector.multi_reduction <add>, %233, %cst_143 [1] : vector<16x32xf32> to vector<16xf32>
    %239 = vector.shape_cast %238 : vector<16xf32> to vector<16x1xf32>
    %cst_144 = arith.constant 3.200000e+01 : f32
    %240 = vector.broadcast %cst_144 : f32 to vector<16x1xf32>
    %241 = arith.divf %239, %240 : vector<16x1xf32>
    %242 = vector.broadcast %241 : vector<16x1xf32> to vector<16x32xf32>
    %243 = arith.subf %233, %242 : vector<16x32xf32>
    %244 = arith.mulf %243, %243 : vector<16x32xf32>
    %cst_145 = arith.constant dense<0.000000e+00> : vector<16xf32>
    %245 = vector.multi_reduction <add>, %244, %cst_145 [1] : vector<16x32xf32> to vector<16xf32>
    %246 = vector.shape_cast %245 : vector<16xf32> to vector<16x1xf32>
    %cst_146 = arith.constant 3.200000e+01 : f32
    %247 = vector.broadcast %cst_146 : f32 to vector<16x1xf32>
    %248 = arith.divf %246, %247 : vector<16x1xf32>
    %249 = vector.broadcast %241 : vector<16x1xf32> to vector<16x32xf32>
    %250 = arith.subf %233, %249 : vector<16x32xf32>
    %cst_147 = arith.constant 9.99999996E-13 : f32
    %251 = vector.broadcast %cst_147 : f32 to vector<16x1xf32>
    %252 = arith.addf %248, %251 : vector<16x1xf32>
    %253 = math.rsqrt %252 : vector<16x1xf32>
    %254 = vector.broadcast %253 : vector<16x1xf32> to vector<16x32xf32>
    %255 = arith.mulf %250, %254 : vector<16x32xf32>
    %256 = vector.broadcast %235 : vector<1x32xf32> to vector<16x32xf32>
    %257 = arith.mulf %255, %256 : vector<16x32xf32>
    %258 = vector.broadcast %237 : vector<1x32xf32> to vector<16x32xf32>
    %259 = arith.addf %257, %258 : vector<16x32xf32>
    %260 = arith.truncf %259 : vector<16x32xf32> to vector<16x32xbf16>
    %c0_148 = arith.constant 0 : index
    %c0_149 = arith.constant 0 : index
    %c0_150 = arith.constant 0 : index
    %261 = vector.load %arg18[%c0_148, %c0_149, %c0_150] : memref<2x32x128xbf16, #tpu.memory_space<vmem>>, vector<1x32x128xbf16>
    %262 = vector.shape_cast %261 : vector<1x32x128xbf16> to vector<32x128xbf16>
    %cst_151 = arith.constant dense<0.000000e+00> : vector<16x128xf32>
    %263 = tpu.matmul %260, %262, %cst_151 {dimension_numbers = #tpu.dot_dimension_numbers<[1], [0], [0], [1], [0, 0, 1, 1], [], []>} : vector<16x32xbf16>, vector<32x128xbf16>, vector<16x128xf32> -> vector<16x128xf32>
    %c0_152 = arith.constant 0 : index
    %c0_153 = arith.constant 0 : index
    %c0_154 = arith.constant 0 : index
    %264 = vector.load %arg19[%c0_152, %c0_153, %c0_154] : memref<2x1x128xf32, #tpu.memory_space<vmem>>, vector<1x1x128xf32>
    %265 = vector.shape_cast %264 : vector<1x1x128xf32> to vector<1x128xf32>
    %266 = vector.broadcast %265 : vector<1x128xf32> to vector<16x128xf32>
    %267 = arith.addf %263, %266 : vector<16x128xf32>
    %268 = arith.mulf %267, %267 : vector<16x128xf32>
    %269 = arith.mulf %267, %268 : vector<16x128xf32>
    %cst_155 = arith.constant 4.471500e-02 : f32
    %270 = vector.broadcast %cst_155 : f32 to vector<16x128xf32>
    %271 = arith.mulf %270, %269 : vector<16x128xf32>
    %272 = arith.addf %267, %271 : vector<16x128xf32>
    %cst_156 = arith.constant 0.797884583 : f32
    %273 = vector.broadcast %cst_156 : f32 to vector<16x128xf32>
    %274 = arith.mulf %273, %272 : vector<16x128xf32>
    %275 = math.tanh %274 : vector<16x128xf32>
    %cst_157 = arith.constant 1.000000e+00 : f32
    %276 = vector.broadcast %cst_157 : f32 to vector<16x128xf32>
    %277 = arith.addf %276, %275 : vector<16x128xf32>
    %cst_158 = arith.constant 5.000000e-01 : f32
    %278 = vector.broadcast %cst_158 : f32 to vector<16x128xf32>
    %279 = arith.mulf %278, %277 : vector<16x128xf32>
    %280 = arith.mulf %267, %279 : vector<16x128xf32>
    %281 = arith.truncf %280 : vector<16x128xf32> to vector<16x128xbf16>
    %c0_159 = arith.constant 0 : index
    %c0_160 = arith.constant 0 : index
    %c0_161 = arith.constant 0 : index
    %282 = vector.load %arg20[%c0_159, %c0_160, %c0_161] : memref<2x128x32xbf16, #tpu.memory_space<vmem>>, vector<1x128x32xbf16>
    %283 = vector.shape_cast %282 : vector<1x128x32xbf16> to vector<128x32xbf16>
    %cst_162 = arith.constant dense<0.000000e+00> : vector<16x32xf32>
    %284 = tpu.matmul %281, %283, %cst_162 {dimension_numbers = #tpu.dot_dimension_numbers<[1], [0], [0], [1], [0, 0, 1, 1], [], []>} : vector<16x128xbf16>, vector<128x32xbf16>, vector<16x32xf32> -> vector<16x32xf32>
    %c0_163 = arith.constant 0 : index
    %c0_164 = arith.constant 0 : index
    %c0_165 = arith.constant 0 : index
    %285 = vector.load %arg21[%c0_163, %c0_164, %c0_165] : memref<2x1x32xf32, #tpu.memory_space<vmem>>, vector<1x1x32xf32>
    %286 = vector.shape_cast %285 : vector<1x1x32xf32> to vector<1x32xf32>
    %287 = vector.broadcast %286 : vector<1x32xf32> to vector<16x32xf32>
    %288 = arith.addf %284, %287 : vector<16x32xf32>
    %289 = arith.addf %259, %288 : vector<16x32xf32>
    %c0_166 = arith.constant 0 : index
    %c0_167 = arith.constant 0 : index
    %c0_168 = arith.constant 0 : index
    %290 = vector.load %arg22[%c0_166, %c0_167, %c0_168] : memref<2x1x32xf32, #tpu.memory_space<vmem>>, vector<1x1x32xf32>
    %291 = vector.shape_cast %290 : vector<1x1x32xf32> to vector<1x32xf32>
    %c0_169 = arith.constant 0 : index
    %c0_170 = arith.constant 0 : index
    %c0_171 = arith.constant 0 : index
    %292 = vector.load %arg23[%c0_169, %c0_170, %c0_171] : memref<2x1x32xf32, #tpu.memory_space<vmem>>, vector<1x1x32xf32>
    %293 = vector.shape_cast %292 : vector<1x1x32xf32> to vector<1x32xf32>
    %cst_172 = arith.constant dense<0.000000e+00> : vector<16xf32>
    %294 = vector.multi_reduction <add>, %289, %cst_172 [1] : vector<16x32xf32> to vector<16xf32>
    %295 = vector.shape_cast %294 : vector<16xf32> to vector<16x1xf32>
    %cst_173 = arith.constant 3.200000e+01 : f32
    %296 = vector.broadcast %cst_173 : f32 to vector<16x1xf32>
    %297 = arith.divf %295, %296 : vector<16x1xf32>
    %298 = vector.broadcast %297 : vector<16x1xf32> to vector<16x32xf32>
    %299 = arith.subf %289, %298 : vector<16x32xf32>
    %300 = arith.mulf %299, %299 : vector<16x32xf32>
    %cst_174 = arith.constant dense<0.000000e+00> : vector<16xf32>
    %301 = vector.multi_reduction <add>, %300, %cst_174 [1] : vector<16x32xf32> to vector<16xf32>
    %302 = vector.shape_cast %301 : vector<16xf32> to vector<16x1xf32>
    %cst_175 = arith.constant 3.200000e+01 : f32
    %303 = vector.broadcast %cst_175 : f32 to vector<16x1xf32>
    %304 = arith.divf %302, %303 : vector<16x1xf32>
    %305 = vector.broadcast %297 : vector<16x1xf32> to vector<16x32xf32>
    %306 = arith.subf %289, %305 : vector<16x32xf32>
    %cst_176 = arith.constant 9.99999996E-13 : f32
    %307 = vector.broadcast %cst_176 : f32 to vector<16x1xf32>
    %308 = arith.addf %304, %307 : vector<16x1xf32>
    %309 = math.rsqrt %308 : vector<16x1xf32>
    %310 = vector.broadcast %309 : vector<16x1xf32> to vector<16x32xf32>
    %311 = arith.mulf %306, %310 : vector<16x32xf32>
    %312 = vector.broadcast %291 : vector<1x32xf32> to vector<16x32xf32>
    %313 = arith.mulf %311, %312 : vector<16x32xf32>
    %314 = vector.broadcast %293 : vector<1x32xf32> to vector<16x32xf32>
    %315 = arith.addf %313, %314 : vector<16x32xf32>
    %316 = vector.shape_cast %315 : vector<16x32xf32> to vector<2x1x8x32xf32>
    %317 = vector.shape_cast %316 : vector<2x1x8x32xf32> to vector<2x1x8x32xf32>
    %318 = vector.broadcast %317 : vector<2x1x8x32xf32> to vector<2x2x8x32xf32>
    %319 = vector.shape_cast %318 : vector<2x2x8x32xf32> to vector<4x8x32xf32>
    %320 = arith.truncf %319 : vector<4x8x32xf32> to vector<4x8x32xbf16>
    %c1_177 = arith.constant 1 : index
    %c0_178 = arith.constant 0 : index
    %c0_179 = arith.constant 0 : index
    %c0_180 = arith.constant 0 : index
    %321 = vector.load %arg8[%c1_177, %c0_178, %c0_179, %c0_180] : memref<2x2x32x16xbf16, #tpu.memory_space<vmem>>, vector<1x2x32x16xbf16>
    %322 = vector.shape_cast %321 : vector<1x2x32x16xbf16> to vector<2x32x16xbf16>
    %323 = vector.shape_cast %322 : vector<2x32x16xbf16> to vector<1x2x32x16xbf16>
    %324 = vector.shape_cast %323 : vector<1x2x32x16xbf16> to vector<1x2x32x16xbf16>
    %325 = vector.broadcast %324 : vector<1x2x32x16xbf16> to vector<2x2x32x16xbf16>
    %326 = vector.shape_cast %325 : vector<2x2x32x16xbf16> to vector<4x32x16xbf16>
    %c1_181 = arith.constant 1 : index
    %c0_182 = arith.constant 0 : index
    %c0_183 = arith.constant 0 : index
    %c0_184 = arith.constant 0 : index
    %327 = vector.load %arg9[%c1_181, %c0_182, %c0_183, %c0_184] : memref<2x2x32x16xbf16, #tpu.memory_space<vmem>>, vector<1x2x32x16xbf16>
    %328 = vector.shape_cast %327 : vector<1x2x32x16xbf16> to vector<2x32x16xbf16>
    %329 = vector.shape_cast %328 : vector<2x32x16xbf16> to vector<1x2x32x16xbf16>
    %330 = vector.shape_cast %329 : vector<1x2x32x16xbf16> to vector<1x2x32x16xbf16>
    %331 = vector.broadcast %330 : vector<1x2x32x16xbf16> to vector<2x2x32x16xbf16>
    %332 = vector.shape_cast %331 : vector<2x2x32x16xbf16> to vector<4x32x16xbf16>
    %c1_185 = arith.constant 1 : index
    %c0_186 = arith.constant 0 : index
    %c0_187 = arith.constant 0 : index
    %c0_188 = arith.constant 0 : index
    %333 = vector.load %arg10[%c1_185, %c0_186, %c0_187, %c0_188] : memref<2x2x32x16xbf16, #tpu.memory_space<vmem>>, vector<1x2x32x16xbf16>
    %334 = vector.shape_cast %333 : vector<1x2x32x16xbf16> to vector<2x32x16xbf16>
    %335 = vector.shape_cast %334 : vector<2x32x16xbf16> to vector<1x2x32x16xbf16>
    %336 = vector.shape_cast %335 : vector<1x2x32x16xbf16> to vector<1x2x32x16xbf16>
    %337 = vector.broadcast %336 : vector<1x2x32x16xbf16> to vector<2x2x32x16xbf16>
    %338 = vector.shape_cast %337 : vector<2x2x32x16xbf16> to vector<4x32x16xbf16>
    %c1_189 = arith.constant 1 : index
    %c0_190 = arith.constant 0 : index
    %c0_191 = arith.constant 0 : index
    %c0_192 = arith.constant 0 : index
    %339 = vector.load %arg11[%c1_189, %c0_190, %c0_191, %c0_192] : memref<2x2x1x16xf32, #tpu.memory_space<vmem>>, vector<1x2x1x16xf32>
    %340 = vector.shape_cast %339 : vector<1x2x1x16xf32> to vector<2x1x16xf32>
    %341 = vector.shape_cast %340 : vector<2x1x16xf32> to vector<1x2x1x16xf32>
    %342 = vector.shape_cast %341 : vector<1x2x1x16xf32> to vector<1x2x1x16xf32>
    %343 = vector.broadcast %342 : vector<1x2x1x16xf32> to vector<2x2x1x16xf32>
    %344 = vector.shape_cast %343 : vector<2x2x1x16xf32> to vector<4x1x16xf32>
    %c1_193 = arith.constant 1 : index
    %c0_194 = arith.constant 0 : index
    %c0_195 = arith.constant 0 : index
    %c0_196 = arith.constant 0 : index
    %345 = vector.load %arg12[%c1_193, %c0_194, %c0_195, %c0_196] : memref<2x2x1x16xf32, #tpu.memory_space<vmem>>, vector<1x2x1x16xf32>
    %346 = vector.shape_cast %345 : vector<1x2x1x16xf32> to vector<2x1x16xf32>
    %347 = vector.shape_cast %346 : vector<2x1x16xf32> to vector<1x2x1x16xf32>
    %348 = vector.shape_cast %347 : vector<1x2x1x16xf32> to vector<1x2x1x16xf32>
    %349 = vector.broadcast %348 : vector<1x2x1x16xf32> to vector<2x2x1x16xf32>
    %350 = vector.shape_cast %349 : vector<2x2x1x16xf32> to vector<4x1x16xf32>
    %c1_197 = arith.constant 1 : index
    %c0_198 = arith.constant 0 : index
    %c0_199 = arith.constant 0 : index
    %c0_200 = arith.constant 0 : index
    %351 = vector.load %arg13[%c1_197, %c0_198, %c0_199, %c0_200] : memref<2x2x1x16xf32, #tpu.memory_space<vmem>>, vector<1x2x1x16xf32>
    %352 = vector.shape_cast %351 : vector<1x2x1x16xf32> to vector<2x1x16xf32>
    %353 = vector.shape_cast %352 : vector<2x1x16xf32> to vector<1x2x1x16xf32>
    %354 = vector.shape_cast %353 : vector<1x2x1x16xf32> to vector<1x2x1x16xf32>
    %355 = vector.broadcast %354 : vector<1x2x1x16xf32> to vector<2x2x1x16xf32>
    %356 = vector.shape_cast %355 : vector<2x2x1x16xf32> to vector<4x1x16xf32>
    %c1_201 = arith.constant 1 : index
    %c0_202 = arith.constant 0 : index
    %c0_203 = arith.constant 0 : index
    %c0_204 = arith.constant 0 : index
    %357 = vector.load %arg14[%c1_201, %c0_202, %c0_203, %c0_204] : memref<2x2x16x32xbf16, #tpu.memory_space<vmem>>, vector<1x2x16x32xbf16>
    %358 = vector.shape_cast %357 : vector<1x2x16x32xbf16> to vector<2x16x32xbf16>
    %359 = vector.shape_cast %358 : vector<2x16x32xbf16> to vector<1x2x16x32xbf16>
    %360 = vector.shape_cast %359 : vector<1x2x16x32xbf16> to vector<1x2x16x32xbf16>
    %361 = vector.broadcast %360 : vector<1x2x16x32xbf16> to vector<2x2x16x32xbf16>
    %362 = vector.shape_cast %361 : vector<2x2x16x32xbf16> to vector<4x16x32xbf16>
    "tpu.trace_start"() <{level = 10 : i32, message = "nsh,nhd->nsd"}> : () -> ()
    %cst_205 = arith.constant dense<0.000000e+00> : vector<4x8x16xf32>
    %363 = tpu.matmul %320, %326, %cst_205 {dimension_numbers = #tpu.dot_dimension_numbers<[2], [1], [1], [2], [0, 0, 0, 1, 1, 2], [0], [0]>} : vector<4x8x32xbf16>, vector<4x32x16xbf16>, vector<4x8x16xf32> -> vector<4x8x16xf32>
    "tpu.trace_stop"() : () -> ()
    %364 = vector.broadcast %344 : vector<4x1x16xf32> to vector<4x8x16xf32>
    %365 = arith.addf %363, %364 : vector<4x8x16xf32>
    "tpu.trace_start"() <{level = 10 : i32, message = "nsh,nhd->nsd"}> : () -> ()
    %cst_206 = arith.constant dense<0.000000e+00> : vector<4x8x16xf32>
    %366 = tpu.matmul %320, %332, %cst_206 {dimension_numbers = #tpu.dot_dimension_numbers<[2], [1], [1], [2], [0, 0, 0, 1, 1, 2], [0], [0]>} : vector<4x8x32xbf16>, vector<4x32x16xbf16>, vector<4x8x16xf32> -> vector<4x8x16xf32>
    "tpu.trace_stop"() : () -> ()
    %367 = vector.broadcast %350 : vector<4x1x16xf32> to vector<4x8x16xf32>
    %368 = arith.addf %366, %367 : vector<4x8x16xf32>
    "tpu.trace_start"() <{level = 10 : i32, message = "nsh,nhd->nsd"}> : () -> ()
    %cst_207 = arith.constant dense<0.000000e+00> : vector<4x8x16xf32>
    %369 = tpu.matmul %320, %338, %cst_207 {dimension_numbers = #tpu.dot_dimension_numbers<[2], [1], [1], [2], [0, 0, 0, 1, 1, 2], [0], [0]>} : vector<4x8x32xbf16>, vector<4x32x16xbf16>, vector<4x8x16xf32> -> vector<4x8x16xf32>
    "tpu.trace_stop"() : () -> ()
    %370 = vector.broadcast %356 : vector<4x1x16xf32> to vector<4x8x16xf32>
    %371 = arith.addf %369, %370 : vector<4x8x16xf32>
    %372 = arith.truncf %365 : vector<4x8x16xf32> to vector<4x8x16xbf16>
    %373 = arith.truncf %368 : vector<4x8x16xf32> to vector<4x8x16xbf16>
    "tpu.trace_start"() <{level = 10 : i32, message = "nsd,ntd->nst"}> : () -> ()
    %cst_208 = arith.constant dense<0.000000e+00> : vector<4x8x8xf32>
    %374 = tpu.matmul %372, %373, %cst_208 {dimension_numbers = #tpu.dot_dimension_numbers<[2], [2], [1], [1], [0, 0, 0, 1, 1, 1], [0], [0]>} : vector<4x8x16xbf16>, vector<4x8x16xbf16>, vector<4x8x8xf32> -> vector<4x8x8xf32>
    "tpu.trace_stop"() : () -> ()
    %cst_209 = arith.constant 2.500000e-01 : f32
    %375 = vector.broadcast %cst_209 : f32 to vector<4x8x8xf32>
    %376 = arith.mulf %374, %375 : vector<4x8x8xf32>
    %377 = vector.broadcast %147 : vector<4x1x8xf32> to vector<4x8x8xf32>
    %378 = arith.addf %376, %377 : vector<4x8x8xf32>
    %cst_210 = arith.constant dense<0xFF800000> : vector<4x8xf32>
    %379 = vector.multi_reduction <maximumf>, %378, %cst_210 [2] : vector<4x8x8xf32> to vector<4x8xf32>
    %380 = vector.shape_cast %379 : vector<4x8xf32> to vector<4x8x1xf32>
    %381 = vector.broadcast %380 : vector<4x8x1xf32> to vector<4x8x8xf32>
    %382 = arith.subf %378, %381 : vector<4x8x8xf32>
    %383 = math.exp %382 : vector<4x8x8xf32>
    %cst_211 = arith.constant dense<0.000000e+00> : vector<4x8xf32>
    %384 = vector.multi_reduction <add>, %383, %cst_211 [2] : vector<4x8x8xf32> to vector<4x8xf32>
    %385 = vector.shape_cast %384 : vector<4x8xf32> to vector<4x8x1xf32>
    %386 = tpu.reciprocal %385 {approx = true} : vector<4x8x1xf32> -> vector<4x8x1xf32>
    %387 = vector.broadcast %386 : vector<4x8x1xf32> to vector<4x8x8xf32>
    %388 = arith.mulf %383, %387 : vector<4x8x8xf32>
    %389 = arith.truncf %388 : vector<4x8x8xf32> to vector<4x8x8xbf16>
    %390 = arith.truncf %371 : vector<4x8x16xf32> to vector<4x8x16xbf16>
    "tpu.trace_start"() <{level = 10 : i32, message = "nst,ntd->nsd"}> : () -> ()
    %cst_212 = arith.constant dense<0.000000e+00> : vector<4x8x16xf32>
    %391 = tpu.matmul %389, %390, %cst_212 {dimension_numbers = #tpu.dot_dimension_numbers<[2], [1], [1], [2], [0, 0, 0, 1, 1, 2], [0], [0]>} : vector<4x8x8xbf16>, vector<4x8x16xbf16>, vector<4x8x16xf32> -> vector<4x8x16xf32>
    "tpu.trace_stop"() : () -> ()
    %392 = arith.truncf %391 : vector<4x8x16xf32> to vector<4x8x16xbf16>
    "tpu.trace_start"() <{level = 10 : i32, message = "nsd,ndk->nsk"}> : () -> ()
    %cst_213 = arith.constant dense<0.000000e+00> : vector<4x8x32xf32>
    %393 = tpu.matmul %392, %362, %cst_213 {dimension_numbers = #tpu.dot_dimension_numbers<[2], [1], [1], [2], [0, 0, 0, 1, 1, 2], [0], [0]>} : vector<4x8x16xbf16>, vector<4x16x32xbf16>, vector<4x8x32xf32> -> vector<4x8x32xf32>
    "tpu.trace_stop"() : () -> ()
    %394 = vector.shape_cast %393 : vector<4x8x32xf32> to vector<2x2x8x32xf32>
    %cst_214 = arith.constant dense<0.000000e+00> : vector<2x8x32xf32>
    %395 = vector.multi_reduction <add>, %394, %cst_214 [1] : vector<2x2x8x32xf32> to vector<2x8x32xf32>
    %396 = vector.shape_cast %395 : vector<2x8x32xf32> to vector<16x32xf32>
    %c1_215 = arith.constant 1 : index
    %c0_216 = arith.constant 0 : index
    %c0_217 = arith.constant 0 : index
    %397 = vector.load %arg15[%c1_215, %c0_216, %c0_217] : memref<2x1x32xf32, #tpu.memory_space<vmem>>, vector<1x1x32xf32>
    %398 = vector.shape_cast %397 : vector<1x1x32xf32> to vector<1x32xf32>
    %399 = vector.broadcast %398 : vector<1x32xf32> to vector<16x32xf32>
    %400 = arith.addf %396, %399 : vector<16x32xf32>
    %401 = arith.addf %315, %400 : vector<16x32xf32>
    %c1_218 = arith.constant 1 : index
    %c0_219 = arith.constant 0 : index
    %c0_220 = arith.constant 0 : index
    %402 = vector.load %arg16[%c1_218, %c0_219, %c0_220] : memref<2x1x32xf32, #tpu.memory_space<vmem>>, vector<1x1x32xf32>
    %403 = vector.shape_cast %402 : vector<1x1x32xf32> to vector<1x32xf32>
    %c1_221 = arith.constant 1 : index
    %c0_222 = arith.constant 0 : index
    %c0_223 = arith.constant 0 : index
    %404 = vector.load %arg17[%c1_221, %c0_222, %c0_223] : memref<2x1x32xf32, #tpu.memory_space<vmem>>, vector<1x1x32xf32>
    %405 = vector.shape_cast %404 : vector<1x1x32xf32> to vector<1x32xf32>
    %cst_224 = arith.constant dense<0.000000e+00> : vector<16xf32>
    %406 = vector.multi_reduction <add>, %401, %cst_224 [1] : vector<16x32xf32> to vector<16xf32>
    %407 = vector.shape_cast %406 : vector<16xf32> to vector<16x1xf32>
    %cst_225 = arith.constant 3.200000e+01 : f32
    %408 = vector.broadcast %cst_225 : f32 to vector<16x1xf32>
    %409 = arith.divf %407, %408 : vector<16x1xf32>
    %410 = vector.broadcast %409 : vector<16x1xf32> to vector<16x32xf32>
    %411 = arith.subf %401, %410 : vector<16x32xf32>
    %412 = arith.mulf %411, %411 : vector<16x32xf32>
    %cst_226 = arith.constant dense<0.000000e+00> : vector<16xf32>
    %413 = vector.multi_reduction <add>, %412, %cst_226 [1] : vector<16x32xf32> to vector<16xf32>
    %414 = vector.shape_cast %413 : vector<16xf32> to vector<16x1xf32>
    %cst_227 = arith.constant 3.200000e+01 : f32
    %415 = vector.broadcast %cst_227 : f32 to vector<16x1xf32>
    %416 = arith.divf %414, %415 : vector<16x1xf32>
    %417 = vector.broadcast %409 : vector<16x1xf32> to vector<16x32xf32>
    %418 = arith.subf %401, %417 : vector<16x32xf32>
    %cst_228 = arith.constant 9.99999996E-13 : f32
    %419 = vector.broadcast %cst_228 : f32 to vector<16x1xf32>
    %420 = arith.addf %416, %419 : vector<16x1xf32>
    %421 = math.rsqrt %420 : vector<16x1xf32>
    %422 = vector.broadcast %421 : vector<16x1xf32> to vector<16x32xf32>
    %423 = arith.mulf %418, %422 : vector<16x32xf32>
    %424 = vector.broadcast %403 : vector<1x32xf32> to vector<16x32xf32>
    %425 = arith.mulf %423, %424 : vector<16x32xf32>
    %426 = vector.broadcast %405 : vector<1x32xf32> to vector<16x32xf32>
    %427 = arith.addf %425, %426 : vector<16x32xf32>
    %428 = arith.truncf %427 : vector<16x32xf32> to vector<16x32xbf16>
    %c1_229 = arith.constant 1 : index
    %c0_230 = arith.constant 0 : index
    %c0_231 = arith.constant 0 : index
    %429 = vector.load %arg18[%c1_229, %c0_230, %c0_231] : memref<2x32x128xbf16, #tpu.memory_space<vmem>>, vector<1x32x128xbf16>
    %430 = vector.shape_cast %429 : vector<1x32x128xbf16> to vector<32x128xbf16>
    %cst_232 = arith.constant dense<0.000000e+00> : vector<16x128xf32>
    %431 = tpu.matmul %428, %430, %cst_232 {dimension_numbers = #tpu.dot_dimension_numbers<[1], [0], [0], [1], [0, 0, 1, 1], [], []>} : vector<16x32xbf16>, vector<32x128xbf16>, vector<16x128xf32> -> vector<16x128xf32>
    %c1_233 = arith.constant 1 : index
    %c0_234 = arith.constant 0 : index
    %c0_235 = arith.constant 0 : index
    %432 = vector.load %arg19[%c1_233, %c0_234, %c0_235] : memref<2x1x128xf32, #tpu.memory_space<vmem>>, vector<1x1x128xf32>
    %433 = vector.shape_cast %432 : vector<1x1x128xf32> to vector<1x128xf32>
    %434 = vector.broadcast %433 : vector<1x128xf32> to vector<16x128xf32>
    %435 = arith.addf %431, %434 : vector<16x128xf32>
    %436 = arith.mulf %435, %435 : vector<16x128xf32>
    %437 = arith.mulf %435, %436 : vector<16x128xf32>
    %cst_236 = arith.constant 4.471500e-02 : f32
    %438 = vector.broadcast %cst_236 : f32 to vector<16x128xf32>
    %439 = arith.mulf %438, %437 : vector<16x128xf32>
    %440 = arith.addf %435, %439 : vector<16x128xf32>
    %cst_237 = arith.constant 0.797884583 : f32
    %441 = vector.broadcast %cst_237 : f32 to vector<16x128xf32>
    %442 = arith.mulf %441, %440 : vector<16x128xf32>
    %443 = math.tanh %442 : vector<16x128xf32>
    %cst_238 = arith.constant 1.000000e+00 : f32
    %444 = vector.broadcast %cst_238 : f32 to vector<16x128xf32>
    %445 = arith.addf %444, %443 : vector<16x128xf32>
    %cst_239 = arith.constant 5.000000e-01 : f32
    %446 = vector.broadcast %cst_239 : f32 to vector<16x128xf32>
    %447 = arith.mulf %446, %445 : vector<16x128xf32>
    %448 = arith.mulf %435, %447 : vector<16x128xf32>
    %449 = arith.truncf %448 : vector<16x128xf32> to vector<16x128xbf16>
    %c1_240 = arith.constant 1 : index
    %c0_241 = arith.constant 0 : index
    %c0_242 = arith.constant 0 : index
    %450 = vector.load %arg20[%c1_240, %c0_241, %c0_242] : memref<2x128x32xbf16, #tpu.memory_space<vmem>>, vector<1x128x32xbf16>
    %451 = vector.shape_cast %450 : vector<1x128x32xbf16> to vector<128x32xbf16>
    %cst_243 = arith.constant dense<0.000000e+00> : vector<16x32xf32>
    %452 = tpu.matmul %449, %451, %cst_243 {dimension_numbers = #tpu.dot_dimension_numbers<[1], [0], [0], [1], [0, 0, 1, 1], [], []>} : vector<16x128xbf16>, vector<128x32xbf16>, vector<16x32xf32> -> vector<16x32xf32>
    %c1_244 = arith.constant 1 : index
    %c0_245 = arith.constant 0 : index
    %c0_246 = arith.constant 0 : index
    %453 = vector.load %arg21[%c1_244, %c0_245, %c0_246] : memref<2x1x32xf32, #tpu.memory_space<vmem>>, vector<1x1x32xf32>
    %454 = vector.shape_cast %453 : vector<1x1x32xf32> to vector<1x32xf32>
    %455 = vector.broadcast %454 : vector<1x32xf32> to vector<16x32xf32>
    %456 = arith.addf %452, %455 : vector<16x32xf32>
    %457 = arith.addf %427, %456 : vector<16x32xf32>
    %c1_247 = arith.constant 1 : index
    %c0_248 = arith.constant 0 : index
    %c0_249 = arith.constant 0 : index
    %458 = vector.load %arg22[%c1_247, %c0_248, %c0_249] : memref<2x1x32xf32, #tpu.memory_space<vmem>>, vector<1x1x32xf32>
    %459 = vector.shape_cast %458 : vector<1x1x32xf32> to vector<1x32xf32>
    %c1_250 = arith.constant 1 : index
    %c0_251 = arith.constant 0 : index
    %c0_252 = arith.constant 0 : index
    %460 = vector.load %arg23[%c1_250, %c0_251, %c0_252] : memref<2x1x32xf32, #tpu.memory_space<vmem>>, vector<1x1x32xf32>
    %461 = vector.shape_cast %460 : vector<1x1x32xf32> to vector<1x32xf32>
    %cst_253 = arith.constant dense<0.000000e+00> : vector<16xf32>
    %462 = vector.multi_reduction <add>, %457, %cst_253 [1] : vector<16x32xf32> to vector<16xf32>
    %463 = vector.shape_cast %462 : vector<16xf32> to vector<16x1xf32>
    %cst_254 = arith.constant 3.200000e+01 : f32
    %464 = vector.broadcast %cst_254 : f32 to vector<16x1xf32>
    %465 = arith.divf %463, %464 : vector<16x1xf32>
    %466 = vector.broadcast %465 : vector<16x1xf32> to vector<16x32xf32>
    %467 = arith.subf %457, %466 : vector<16x32xf32>
    %468 = arith.mulf %467, %467 : vector<16x32xf32>
    %cst_255 = arith.constant dense<0.000000e+00> : vector<16xf32>
    %469 = vector.multi_reduction <add>, %468, %cst_255 [1] : vector<16x32xf32> to vector<16xf32>
    %470 = vector.shape_cast %469 : vector<16xf32> to vector<16x1xf32>
    %cst_256 = arith.constant 3.200000e+01 : f32
    %471 = vector.broadcast %cst_256 : f32 to vector<16x1xf32>
    %472 = arith.divf %470, %471 : vector<16x1xf32>
    %473 = vector.broadcast %465 : vector<16x1xf32> to vector<16x32xf32>
    %474 = arith.subf %457, %473 : vector<16x32xf32>
    %cst_257 = arith.constant 9.99999996E-13 : f32
    %475 = vector.broadcast %cst_257 : f32 to vector<16x1xf32>
    %476 = arith.addf %472, %475 : vector<16x1xf32>
    %477 = math.rsqrt %476 : vector<16x1xf32>
    %478 = vector.broadcast %477 : vector<16x1xf32> to vector<16x32xf32>
    %479 = arith.mulf %474, %478 : vector<16x32xf32>
    %480 = vector.broadcast %459 : vector<1x32xf32> to vector<16x32xf32>
    %481 = arith.mulf %479, %480 : vector<16x32xf32>
    %482 = vector.broadcast %461 : vector<1x32xf32> to vector<16x32xf32>
    %483 = arith.addf %481, %482 : vector<16x32xf32>
    %484 = vector.extract_strided_slice %483 {offsets = [0, 0], sizes = [1, 32], strides = [1, 1]} : vector<16x32xf32> to vector<1x32xf32>
    %485 = vector.extract_strided_slice %483 {offsets = [8, 0], sizes = [1, 32], strides = [1, 1]} : vector<16x32xf32> to vector<1x32xf32>
    %486 = tpu.concatenate %484, %485 in 0 : vector<1x32xf32>, vector<1x32xf32> -> vector<2x32xf32>
    %487 = arith.truncf %486 : vector<2x32xf32> to vector<2x32xbf16>
    %c0_258 = arith.constant 0 : index
    %c0_259 = arith.constant 0 : index
    %488 = vector.load %arg24[%c0_258, %c0_259] : memref<32x32xbf16, #tpu.memory_space<vmem>>, vector<32x32xbf16>
    %cst_260 = arith.constant dense<0.000000e+00> : vector<2x32xf32>
    %489 = tpu.matmul %487, %488, %cst_260 {dimension_numbers = #tpu.dot_dimension_numbers<[1], [0], [0], [1], [0, 0, 1, 1], [], []>} : vector<2x32xbf16>, vector<32x32xbf16>, vector<2x32xf32> -> vector<2x32xf32>
    %c0_261 = arith.constant 0 : index
    %c0_262 = arith.constant 0 : index
    %490 = vector.load %arg25[%c0_261, %c0_262] : memref<1x32xf32, #tpu.memory_space<vmem>>, vector<1x32xf32>
    %491 = vector.broadcast %490 : vector<1x32xf32> to vector<2x32xf32>
    %492 = arith.addf %489, %491 : vector<2x32xf32>
    %493 = math.tanh %492 : vector<2x32xf32>
    %494 = arith.truncf %493 : vector<2x32xf32> to vector<2x32xbf16>
    %c0_263 = arith.constant 0 : index
    %c0_264 = arith.constant 0 : index
    %495 = vector.load %arg26[%c0_263, %c0_264] : memref<32x128xbf16, #tpu.memory_space<vmem>>, vector<32x128xbf16>
    %cst_265 = arith.constant dense<0.000000e+00> : vector<2x128xf32>
    %496 = tpu.matmul %494, %495, %cst_265 {dimension_numbers = #tpu.dot_dimension_numbers<[1], [0], [0], [1], [0, 0, 1, 1], [], []>} : vector<2x32xbf16>, vector<32x128xbf16>, vector<2x128xf32> -> vector<2x128xf32>
    %c0_266 = arith.constant 0 : index
    %c0_267 = arith.constant 0 : index
    %497 = vector.load %arg27[%c0_266, %c0_267] : memref<1x128xf32, #tpu.memory_space<vmem>>, vector<1x128xf32>
    %498 = vector.broadcast %497 : vector<1x128xf32> to vector<2x128xf32>
    %499 = arith.addf %496, %498 : vector<2x128xf32>
    %c0_268 = arith.constant 0 : index
    %c0_269 = arith.constant 0 : index
    %500 = vector.load %arg28[%c0_268, %c0_269] : memref<2x128xf32, #tpu.memory_space<vmem>>, vector<2x128xf32>
    tpu.vector_store %arg28[%c0_268, %c0_269], %499 {strides = array<i32>} : memref<2x128xf32, #tpu.memory_space<vmem>>, vector<2x128xf32>,
    return
  }
  func.func @transform_0(%arg0: i32, %arg1: memref<16xi32, #tpu.memory_space<smem>>) -> (i32, i32) {
    %c0_i32 = arith.constant 0 : i32
    %c0_i32_0 = arith.constant 0 : i32
    %c0_i32_1 = arith.constant 0 : i32
    return %c0_i32, %c0_i32_0 : i32, i32
  }
  func.func @transform_1(%arg0: i32, %arg1: memref<16xi32, #tpu.memory_space<smem>>) -> (i32, i32) {
    %c0_i32 = arith.constant 0 : i32
    %c0_i32_0 = arith.constant 0 : i32
    %c0_i32_1 = arith.constant 0 : i32
    return %c0_i32, %c0_i32_0 : i32, i32
  }
  func.func @transform_2(%arg0: i32, %arg1: memref<16xi32, #tpu.memory_space<smem>>) -> (i32, i32) {
    %c0_i32 = arith.constant 0 : i32
    %c0_i32_0 = arith.constant 0 : i32
    %c0_i32_1 = arith.constant 0 : i32
    return %c0_i32, %c0_i32_0 : i32, i32
  }
  func.func @transform_3(%arg0: i32, %arg1: memref<16xi32, #tpu.memory_space<smem>>) -> (i32, i32) {
    %c0_i32 = arith.constant 0 : i32
    %c0_i32_0 = arith.constant 0 : i32
    %c0_i32_1 = arith.constant 0 : i32
    return %c0_i32, %c0_i32_0 : i32, i32
  }
  func.func @transform_4(%arg0: i32, %arg1: memref<16xi32, #tpu.memory_space<smem>>) -> (i32, i32) {
    %c0_i32 = arith.constant 0 : i32
    %c0_i32_0 = arith.constant 0 : i32
    %c0_i32_1 = arith.constant 0 : i32
    return %c0_i32, %c0_i32_0 : i32, i32
  }
  func.func @transform_5(%arg0: i32, %arg1: memref<16xi32, #tpu.memory_space<smem>>) -> (i32, i32) {
    %c0_i32 = arith.constant 0 : i32
    %c0_i32_0 = arith.constant 0 : i32
    %c0_i32_1 = arith.constant 0 : i32
    return %c0_i32, %c0_i32_0 : i32, i32
  }
  func.func @transform_6(%arg0: i32, %arg1: memref<16xi32, #tpu.memory_space<smem>>) -> (i32, i32, i32, i32) {
    %c0_i32 = arith.constant 0 : i32
    %c0_i32_0 = arith.constant 0 : i32
    %c0_i32_1 = arith.constant 0 : i32
    %c0_i32_2 = arith.constant 0 : i32
    %c0_i32_3 = arith.constant 0 : i32
    return %c0_i32, %c0_i32_0, %c0_i32_1, %c0_i32_2 : i32, i32, i32, i32
  }
  func.func @transform_7(%arg0: i32, %arg1: memref<16xi32, #tpu.memory_space<smem>>) -> (i32, i32, i32, i32) {
    %c0_i32 = arith.constant 0 : i32
    %c0_i32_0 = arith.constant 0 : i32
    %c0_i32_1 = arith.constant 0 : i32
    %c0_i32_2 = arith.constant 0 : i32
    %c0_i32_3 = arith.constant 0 : i32
    return %c0_i32, %c0_i32_0, %c0_i32_1, %c0_i32_2 : i32, i32, i32, i32
  }
  func.func @transform_8(%arg0: i32, %arg1: memref<16xi32, #tpu.memory_space<smem>>) -> (i32, i32, i32, i32) {
    %c0_i32 = arith.constant 0 : i32
    %c0_i32_0 = arith.constant 0 : i32
    %c0_i32_1 = arith.constant 0 : i32
    %c0_i32_2 = arith.constant 0 : i32
    %c0_i32_3 = arith.constant 0 : i32
    return %c0_i32, %c0_i32_0, %c0_i32_1, %c0_i32_2 : i32, i32, i32, i32
  }
  func.func @transform_9(%arg0: i32, %arg1: memref<16xi32, #tpu.memory_space<smem>>) -> (i32, i32, i32, i32) {
    %c0_i32 = arith.constant 0 : i32
    %c0_i32_0 = arith.constant 0 : i32
    %c0_i32_1 = arith.constant 0 : i32
    %c0_i32_2 = arith.constant 0 : i32
    %c0_i32_3 = arith.constant 0 : i32
    return %c0_i32, %c0_i32_0, %c0_i32_1, %c0_i32_2 : i32, i32, i32, i32
  }
  func.func @transform_10(%arg0: i32, %arg1: memref<16xi32, #tpu.memory_space<smem>>) -> (i32, i32, i32, i32) {
    %c0_i32 = arith.constant 0 : i32
    %c0_i32_0 = arith.constant 0 : i32
    %c0_i32_1 = arith.constant 0 : i32
    %c0_i32_2 = arith.constant 0 : i32
    %c0_i32_3 = arith.constant 0 : i32
    return %c0_i32, %c0_i32_0, %c0_i32_1, %c0_i32_2 : i32, i32, i32, i32
  }
  func.func @transform_11(%arg0: i32, %arg1: memref<16xi32, #tpu.memory_space<smem>>) -> (i32, i32, i32, i32) {
    %c0_i32 = arith.constant 0 : i32
    %c0_i32_0 = arith.constant 0 : i32
    %c0_i32_1 = arith.constant 0 : i32
    %c0_i32_2 = arith.constant 0 : i32
    %c0_i32_3 = arith.constant 0 : i32
    return %c0_i32, %c0_i32_0, %c0_i32_1, %c0_i32_2 : i32, i32, i32, i32
  }
  func.func @transform_12(%arg0: i32, %arg1: memref<16xi32, #tpu.memory_space<smem>>) -> (i32, i32, i32, i32) {
    %c0_i32 = arith.constant 0 : i32
    %c0_i32_0 = arith.constant 0 : i32
    %c0_i32_1 = arith.constant 0 : i32
    %c0_i32_2 = arith.constant 0 : i32
    %c0_i32_3 = arith.constant 0 : i32
    return %c0_i32, %c0_i32_0, %c0_i32_1, %c0_i32_2 : i32, i32, i32, i32
  }
  func.func @transform_13(%arg0: i32, %arg1: memref<16xi32, #tpu.memory_space<smem>>) -> (i32, i32, i32) {
    %c0_i32 = arith.constant 0 : i32
    %c0_i32_0 = arith.constant 0 : i32
    %c0_i32_1 = arith.constant 0 : i32
    %c0_i32_2 = arith.constant 0 : i32
    return %c0_i32, %c0_i32_0, %c0_i32_1 : i32, i32, i32
  }
  func.func @transform_14(%arg0: i32, %arg1: memref<16xi32, #tpu.memory_space<smem>>) -> (i32, i32, i32) {
    %c0_i32 = arith.constant 0 : i32
    %c0_i32_0 = arith.constant 0 : i32
    %c0_i32_1 = arith.constant 0 : i32
    %c0_i32_2 = arith.constant 0 : i32
    return %c0_i32, %c0_i32_0, %c0_i32_1 : i32, i32, i32
  }
  func.func @transform_15(%arg0: i32, %arg1: memref<16xi32, #tpu.memory_space<smem>>) -> (i32, i32, i32) {
    %c0_i32 = arith.constant 0 : i32
    %c0_i32_0 = arith.constant 0 : i32
    %c0_i32_1 = arith.constant 0 : i32
    %c0_i32_2 = arith.constant 0 : i32
    return %c0_i32, %c0_i32_0, %c0_i32_1 : i32, i32, i32
  }
  func.func @transform_16(%arg0: i32, %arg1: memref<16xi32, #tpu.memory_space<smem>>) -> (i32, i32, i32) {
    %c0_i32 = arith.constant 0 : i32
    %c0_i32_0 = arith.constant 0 : i32
    %c0_i32_1 = arith.constant 0 : i32
    %c0_i32_2 = arith.constant 0 : i32
    return %c0_i32, %c0_i32_0, %c0_i32_1 : i32, i32, i32
  }
  func.func @transform_17(%arg0: i32, %arg1: memref<16xi32, #tpu.memory_space<smem>>) -> (i32, i32, i32) {
    %c0_i32 = arith.constant 0 : i32
    %c0_i32_0 = arith.constant 0 : i32
    %c0_i32_1 = arith.constant 0 : i32
    %c0_i32_2 = arith.constant 0 : i32
    return %c0_i32, %c0_i32_0, %c0_i32_1 : i32, i32, i32
  }
  func.func @transform_18(%arg0: i32, %arg1: memref<16xi32, #tpu.memory_space<smem>>) -> (i32, i32, i32) {
    %c0_i32 = arith.constant 0 : i32
    %c0_i32_0 = arith.constant 0 : i32
    %c0_i32_1 = arith.constant 0 : i32
    %c0_i32_2 = arith.constant 0 : i32
    return %c0_i32, %c0_i32_0, %c0_i32_1 : i32, i32, i32
  }
  func.func @transform_19(%arg0: i32, %arg1: memref<16xi32, #tpu.memory_space<smem>>) -> (i32, i32, i32) {
    %c0_i32 = arith.constant 0 : i32
    %c0_i32_0 = arith.constant 0 : i32
    %c0_i32_1 = arith.constant 0 : i32
    %c0_i32_2 = arith.constant 0 : i32
    return %c0_i32, %c0_i32_0, %c0_i32_1 : i32, i32, i32
  }
  func.func @transform_20(%arg0: i32, %arg1: memref<16xi32, #tpu.memory_space<smem>>) -> (i32, i32, i32) {
    %c0_i32 = arith.constant 0 : i32
    %c0_i32_0 = arith.constant 0 : i32
    %c0_i32_1 = arith.constant 0 : i32
    %c0_i32_2 = arith.constant 0 : i32
    return %c0_i32, %c0_i32_0, %c0_i32_1 : i32, i32, i32
  }
  func.func @transform_21(%arg0: i32, %arg1: memref<16xi32, #tpu.memory_space<smem>>) -> (i32, i32, i32) {
    %c0_i32 = arith.constant 0 : i32
    %c0_i32_0 = arith.constant 0 : i32
    %c0_i32_1 = arith.constant 0 : i32
    %c0_i32_2 = arith.constant 0 : i32
    return %c0_i32, %c0_i32_0, %c0_i32_1 : i32, i32, i32
  }
  func.func @transform_22(%arg0: i32, %arg1: memref<16xi32, #tpu.memory_space<smem>>) -> (i32, i32) {
    %c0_i32 = arith.constant 0 : i32
    %c0_i32_0 = arith.constant 0 : i32
    %c0_i32_1 = arith.constant 0 : i32
    return %c0_i32, %c0_i32_0 : i32, i32
  }
  func.func @transform_23(%arg0: i32, %arg1: memref<16xi32, #tpu.memory_space<smem>>) -> (i32, i32) {
    %c0_i32 = arith.constant 0 : i32
    %c0_i32_0 = arith.constant 0 : i32
    %c0_i32_1 = arith.constant 0 : i32
    return %c0_i32, %c0_i32_0 : i32, i32
  }
  func.func @transform_24(%arg0: i32, %arg1: memref<16xi32, #tpu.memory_space<smem>>) -> (i32, i32) {
    %c0_i32 = arith.constant 0 : i32
    %c0_i32_0 = arith.constant 0 : i32
    %c0_i32_1 = arith.constant 0 : i32
    return %c0_i32, %c0_i32_0 : i32, i32
  }
  func.func @transform_25(%arg0: i32, %arg1: memref<16xi32, #tpu.memory_space<smem>>) -> (i32, i32) {
    %c0_i32 = arith.constant 0 : i32
    %c0_i32_0 = arith.constant 0 : i32
    %c0_i32_1 = arith.constant 0 : i32
    return %c0_i32, %c0_i32_0 : i32, i32
  }
  func.func @transform_26(%arg0: i32, %arg1: memref<16xi32, #tpu.memory_space<smem>>) -> (i32, i32) {
    %c0_i32 = arith.constant 0 : i32
    %c0_i32_0 = arith.constant 0 : i32
    %c0_i32_1 = arith.constant 0 : i32
    return %c0_i32, %c0_i32_0 : i32, i32
  }
}

</mosaic_0001>

<bundles_post_ra>
// kernel: _lambda_.1
= control target key start
LH: loop header
LB: loop body
LE: loop exit
PB: predicated region body
PF: predicated region fallthrough
CT: control target
= control target key end

     0   :  { %s5706_s0 = inlined_call_operand.vmem [shape: s32[16], index: 0, kind: input, shape index: {}]   ;;  %s5707_s1 = inlined_call_operand.vmem [shape: s32[2,8], index: 1, kind: input, shape index: {}]   ;;  %s5708_s2 = inlined_call_operand.hbm [shape: f32[100,32], index: 2, kind: input, shape index: {}]   ;;  %s5709_s3 = inlined_call_operand.hbm [shape: f32[16,32], index: 3, kind: input, shape index: {}]   ;;  %s5710_s4 = inlined_call_operand.hbm [shape: f32[2,32], index: 4, kind: input, shape index: {}]   ;;  %s5711_s5 = inlined_call_operand.vmem [shape: f32[1,32], index: 5, kind: input, shape index: {}]   ;;  %s5712_s6 = inlined_call_operand.vmem [shape: f32[1,32], index: 6, kind: input, shape index: {}, may-alias: {6,24}]   ;;  %s5713_s7 = inlined_call_operand.hbm [shape: bf16[2,2,32,16], index: 7, kind: input, shape index: {}]   ;;  %s5714_s8 = inlined_call_operand.hbm [shape: bf16[2,2,32,16], index: 8, kind: input, shape index: {}]   ;;  %s5715_s9 = inlined_call_operand.vmem [shape: bf16[2,2,32,16], index: 9, kind: input, shape index: {}]   ;;  %s5716_s10 = inlined_call_operand.vmem [shape: f32[2,2,1,16], index: 10, kind: input, shape index: {}, may-alias: {10,11,12}]   ;;  %s5717_s11 = inlined_call_operand.vmem [shape: f32[2,2,1,16], index: 11, kind: input, shape index: {}, may-alias: {10,11,12}]   ;;  %s5718_s12 = inlined_call_operand.vmem [shape: f32[2,2,1,16], index: 12, kind: input, shape index: {}, may-alias: {10,11,12}]   ;;  %s5719_s13 = inlined_call_operand.hbm [shape: bf16[2,2,16,32], index: 13, kind: input, shape index: {}]   ;;  %s5720_s14 = inlined_call_operand.vmem [shape: f32[2,1,32], index: 14, kind: input, shape index: {}, may-alias: {14,16,20,22}]   ;;  %s5721_s15 = inlined_call_operand.vmem [shape: f32[2,1,32], index: 15, kind: input, shape index: {}, may-alias: {15,21}]   ;;  %s5722_s16 = inlined_call_operand.vmem [shape: f32[2,1,32], index: 16, kind: input, shape index: {}, may-alias: {14,16,20,22}]   ;;  %s5723_s17 = inlined_call_operand.vmem [shape: bf16[2,32,128], index: 17, kind: input, shape index: {}]   ;;  %s5724_s18 = inlined_call_operand.vmem [shape: f32[2,1,128], index: 18, kind: input, shape index: {}]   ;;  %s5725_s19 = inlined_call_operand.hbm [shape: bf16[2,128,32], index: 19, kind: input, shape index: {}]   ;;  %s5726_s20 = inlined_call_operand.vmem [shape: f32[2,1,32], index: 20, kind: input, shape index: {}, may-alias: {14,16,20,22}]   ;;  %s5727_s21 = inlined_call_operand.vmem [shape: f32[2,1,32], index: 21, kind: input, shape index: {}, may-alias: {15,21}]   ;;  %s5728_s22 = inlined_call_operand.vmem [shape: f32[2,1,32], index: 22, kind: input, shape index: {}, may-alias: {14,16,20,22}]   ;;  %s5729_s23 = inlined_call_operand.hbm [shape: bf16[32,32], index: 23, kind: input, shape index: {}]   ;;  %s5730_s24 = inlined_call_operand.vmem [shape: f32[1,32], index: 24, kind: input, shape index: {}, may-alias: {6,24}]   ;;  %s5731_s25 = inlined_call_operand.vmem [shape: bf16[32,128], index: 25, kind: input, shape index: {}]   ;;  %s5732_s26 = inlined_call_operand.vmem [shape: f32[1,128], index: 26, kind: input, shape index: {}]   ;;  %s5733_s27 = inlined_call_operand.hbm [shape: f32[2,128], index: 27, kind: output, shape index: {}]  }
   0x1   :  { %5750 = sst [smem:[#allocation27_spill]] %s5706_s0 }
   0x2   :  { %5751 = sst [smem:[#allocation28_spill]] %s5707_s1 }
   0x3   :  { %5752 = sst [smem:[#allocation29_spill]] %s5708_s2 }
   0x4   :  { %5753 = sst [smem:[#allocation30_spill]] %s5709_s3 }
   0x5   :  { %5754 = sst [smem:[#allocation31_spill]] %s5710_s4 }
   0x6   :  { %5755 = sst [smem:[#allocation32_spill]] %s5711_s5 }
   0x7   :  { %5756 = sst [smem:[#allocation33_spill]] %s5712_s6 }
   0x8   :  { %5757 = sst [smem:[#allocation34_spill]] %s5713_s7 }
   0x9   :  { %5758 = sst [smem:[#allocation35_spill]] %s5714_s8 }
   0xa   :  { %5759 = sst [smem:[#allocation36_spill]] %s5715_s9  ;;  %s5764_s8 = sld [smem:[#allocation27_spill]] }
   0xb   :  { %5760 = sst [smem:[#allocation37_spill]] %s5716_s10 }
   0xc   :  { %5761 = sst [smem:[#allocation38_spill]] %s5717_s11 }
   0xd   :  { %5762 = sst [smem:[#allocation39_spill]] %s5727_s21 }
   0xe   :  { %5763 = sst [smem:[#allocation40_spill]] %s5733_s27 }
  0x10   :  { %s32_s21 = sshll.u32 %s5764_s8, 4  ;;  %s33_s21 = int_to_ptr.vmem [resolvable:$true] %s32_s21 }
  0x11   :  { %s4576_s30 = scalar_lea.vmem %s33_s21, 16  ;;  %p4581_p1 = scmp.lt.s32.totalorder %s33_s21, %s33_s21 }
  0x12   :  { %p4577_p0 = scmp.ne.s32.totalorder %s33_s21, %s4576_s30  ;;  %p4582_p2 = scmp.lt.s32.totalorder %s4576_s30, %s4576_s30 }
  0x14   :  { %p4583_p3 = por %p4582_p2, %p4581_p1 }
  0x16   :  { %p4584_p4 = pnand %p4583_p3, %p4577_p0 }
  0x18   :  { %4587 = shalt.err (!%p4584_p4)  }
  0x19   :  { %s4800_s9 = smov [#allocation4]  }
  0x1a   :  { %35 = dma.vmem_to_smem %s33_s21, 16, %s4800_s9, [#allocation3] }
  0x1b   :  { %4786 = dma.done.wait [#allocation3], 16 }
  0x1c   :  { %4787 = vsyncadd [#allocation3], 4294967280 }
  0x1d   :  { %37 = sfence }
  0x1e   :  { %38 = vsyncpa [#allocation6], 0 }
  0x1f   :  { %39 = vsyncpa [#allocation9], 0 }
  0x20   :  { %40 = vsyncpa [#allocation12], 0 }
  0x21   :  { %41 = vsyncpa [#allocation15], 0 }
  0x22   :  { %42 = vsyncpa [#allocation18], 0 }
  0x23   :  { %43 = vsyncpa [#allocation7], 0  ;;  %s4801_s5 = smov [#allocation8]   ;;  %s4802_s0 = smov [#allocation11]  }
  0x24   :  { %s63_s28 = sshll.u32 %s4801_s5, 4  ;;  %s89_s10 = sshll.u32 %s4802_s0, 4  ;;  %s64_s28 = int_to_ptr.vmem [resolvable:$true] %s63_s28  ;;  %s4960_s10 = int_to_ptr.vmem [resolvable:$true] %s89_s10 }
  0x25   :  { %s5765_s6 = sld [smem:[#allocation30_spill]] }
  0x2b   :  { %s4588_s21 = scalar_lea.hbm %s5765_s6, 256 }
  0x2c   :  { %p4589_p5 = scmp.ne.s32.totalorder %s5765_s6, %s4588_s21  ;;  %p4592_p6 = scmp.lt.u32.totalorder %s4588_s21, %s5765_s6 }
  0x2e   :  { %p4594_p7 = pnand %p4592_p6, %p4589_p5 }
  0x30   :  { %4597 = shalt.err (!%p4594_p7)
}
  0x31   :  { %s4598_s4 = scalar_lea.vmem %s64_s28, 256  ;;  %p4603_p9 = scmp.lt.s32.totalorder %s64_s28, %s64_s28 }
  0x32   :  { %p4599_p8 = scmp.ne.s32.totalorder %s64_s28, %s4598_s4  ;;  %p4604_p10 = scmp.lt.s32.totalorder %s4598_s4, %s4598_s4 }
  0x34   :  { %p4605_p11 = por %p4604_p10, %p4603_p9 }
  0x36   :  { %p4606_p12 = pnand %p4605_p11, %p4599_p8 }
  0x38   :  { %4609 = shalt.err (!%p4606_p12)
}
  0x39   :  { %s5743_s8 = smov 128   ;;  %s5744_s30 = smov 8  }
  0x3a   :  { %69 = dma.hbm_to_vmem [thread:$0]  %s5765_s6, 256, %s64_s28, [#allocation9], %s5743_s8, %s5743_s8, %s5744_s30  }
  0x3b   :  { %s5766_s1 = sld [smem:[#allocation34_spill]] }
  0x41   :  { %s4610_s21 = scalar_lea.hbm %s5766_s1, 1024 }
  0x42   :  { %p4611_p13 = scmp.ne.s32.totalorder %s5766_s1, %s4610_s21  ;;  %p4614_p0 = scmp.lt.u32.totalorder %s4610_s21, %s5766_s1 }
  0x44   :  { %p4616_p1 = pnand %p4614_p0, %p4611_p13 }
  0x46   :  { %4619 = shalt.err (!%p4616_p1)
}
  0x47   :  { %s4620_s4 = scalar_lea.vmem %s4960_s10, 1024  ;;  %p4625_p3 = scmp.lt.s32.totalorder %s4960_s10, %s4960_s10 }
  0x48   :  { %p4621_p2 = scmp.ne.s32.totalorder %s4960_s10, %s4620_s4  ;;  %p4626_p4 = scmp.lt.s32.totalorder %s4620_s4, %s4620_s4 }
  0x4a   :  { %p4627_p5 = por %p4626_p4, %p4625_p3 }
  0x4c   :  { %p4628_p6 = pnand %p4627_p5, %p4621_p2 }
  0x4e   :  { %4631 = shalt.err (!%p4628_p6)
}
  0x4f   :  { %s5746_s28 = smov 64   ;;  %s5748_s6 = smov 4  }
  0x50   :  { %95 = dma.hbm_to_vmem [thread:$0]  %s5766_s1, 1024, %s4960_s10, [#allocation12], %s5746_s28, %s5746_s28, %s5748_s6  }
  0x51   :  { %s4807_s0 = smov [#allocation14]   ;;  %s4808_s21 = smov [#allocation5]  }
  0x52   :  { %s121_s29 = sshll.u32 %s4807_s0, 4  ;;  %s51_s11 = sshll.u32 %s4808_s21, 4  ;;  %s122_s29 = int_to_ptr.vmem [resolvable:$true] %s121_s29  ;;  %s4997_s11 = int_to_ptr.vmem [resolvable:$true] %s51_s11 }
  0x53   :  { %s4632_s7 = scalar_lea.hbm %s5719_s13, 512 }
  0x54   :  { %p4633_p7 = scmp.ne.s32.totalorder %s5719_s13, %s4632_s7  ;;  %p4636_p8 = scmp.lt.u32.totalorder %s4632_s7, %s5719_s13 }
  0x56   :  { %p4638_p9 = pnand %p4636_p8, %p4633_p7 }
  0x58   :  { %4641 = shalt.err (!%p4638_p9)
}
  0x59   :  { %s4642_s10 = scalar_lea.vmem %s122_s29, 512  ;;  %p4647_p11 = scmp.lt.s32.totalorder %s122_s29, %s122_s29 }
  0x5a   :  { %p4643_p10 = scmp.ne.s32.totalorder %s122_s29, %s4642_s10  ;;  %p4648_p12 = scmp.lt.s32.totalorder %s4642_s10, %s4642_s10 }
  0x5c   :  { %p4649_p13 = por %p4648_p12, %p4647_p11 }
  0x5e   :  { %p4650_p0 = pnand %p4649_p13, %p4643_p10 }
  0x60   :  { %4653 = shalt.err (!%p4650_p0)
}
  0x61   :  { %127 = dma.hbm_to_vmem [thread:$0]  %s5719_s13, 512, %s122_s29, [#allocation15], %s5746_s28, %s5746_s28, %s5748_s6  }
  0x62   :  { %s5767_s27 = sld [smem:[#allocation29_spill]] }
  0x68   :  { %s4654_s30 = scalar_lea.hbm %s5767_s27, 1664 }
  0x69   :  { %p4655_p1 = scmp.ne.s32.totalorder %s5767_s27, %s4654_s30  ;;  %p4658_p2 = scmp.lt.u32.totalorder %s4654_s30, %s5767_s27 }
  0x6b   :  { %p4660_p3 = pnand %p4658_p2, %p4655_p1 }
  0x6d   :  { %4663 = shalt.err (!%p4660_p3)
}
  0x6e   :  { %s4664_s7 = scalar_lea.vmem %s4997_s11, 1664  ;;  %p4669_p5 = scmp.lt.s32.totalorder %s4997_s11, %s4997_s11 }
  0x6f   :  { %p4665_p4 = scmp.ne.s32.totalorder %s4997_s11, %s4664_s7  ;;  %p4670_p6 = scmp.lt.s32.totalorder %s4664_s7, %s4664_s7 }
  0x71   :  { %p4671_p7 = por %p4670_p6, %p4669_p5 }
  0x73   :  { %p4672_p8 = pnand %p4671_p7, %p4665_p4 }
  0x75   :  { %4675 = shalt.err (!%p4672_p8)
}
  0x76   :  { %s5768_s13 = smov 8   ;;  %s5769_s29 = smov 128  }
  0x77   :  { %57 = dma.hbm_to_vmem [thread:$0]  %s5767_s27, 1664, %s4997_s11, [#allocation6], %s5769_s29, %s5769_s29, %s5768_s13  }
  0x78   :  { %s4809_s1 = smov [#allocation10]   ;;  %s4810_s8 = smov [#allocation13]  }
  0x79   :  { %s76_s9 = sshll.u32 %s4809_s1, 4  ;;  %s101_s5 = sshll.u32 %s4810_s8, 4  ;;  %s77_s9 = int_to_ptr.vmem [resolvable:$true] %s76_s9  ;;  %s5034_s5 = int_to_ptr.vmem [resolvable:$true] %s101_s5 }
  0x7a   :  { %s5770_s21 = sld [smem:[#allocation31_spill]] }
  0x80   :  { %s4676_s2 = scalar_lea.hbm %s5770_s21, 32 }
  0x81   :  { %p4677_p9 = scmp.ne.s32.totalorder %s5770_s21, %s4676_s2  ;;  %p4680_p10 = scmp.lt.u32.totalorder %s4676_s2, %s5770_s21 }
  0x83   :  { %p4682_p11 = pnand %p4680_p10, %p4677_p9 }
  0x85   :  { %4685 = shalt.err (!%p4682_p11)
}
  0x86   :  { %s4686_s11 = scalar_lea.vmem %s77_s9, 32  ;;  %p4691_p13 = scmp.lt.s32.totalorder %s77_s9, %s77_s9 }
  0x87   :  { %p4687_p12 = scmp.ne.s32.totalorder %s77_s9, %s4686_s11  ;;  %p4692_p0 = scmp.lt.s32.totalorder %s4686_s11, %s4686_s11 }
  0x89   :  { %p4693_p1 = por %p4692_p0, %p4691_p13 }
  0x8b   :  { %p4694_p2 = pnand %p4693_p1, %p4687_p12 }
  0x8d   :  { %4697 = shalt.err (!%p4694_p2)
}
  0x8e   :  { %79 = dma.hbm_to_vmem [thread:$0]  %s5770_s21, 32, %s77_s9, [#allocation9]  }
  0x8f   :  { %s5771_s10 = sld [smem:[#allocation35_spill]] }
  0x95   :  { %s4698_s1 = scalar_lea.hbm %s5771_s10, 1024 }
  0x96   :  { %p4699_p3 = scmp.ne.s32.totalorder %s5771_s10, %s4698_s1  ;;  %p4702_p4 = scmp.lt.u32.totalorder %s4698_s1, %s5771_s10 }
  0x98   :  { %p4704_p5 = pnand %p4702_p4, %p4699_p3 }
  0x9a   :  { %4707 = shalt.err (!%p4704_p5)
}
  0x9b   :  { %s4708_s0 = scalar_lea.vmem %s5034_s5, 1024  ;;  %p4713_p7 = scmp.lt.s32.totalorder %s5034_s5, %s5034_s5 }
  0x9c   :  { %p4709_p6 = scmp.ne.s32.totalorder %s5034_s5, %s4708_s0  ;;  %p4714_p8 = scmp.lt.s32.totalorder %s4708_s0, %s4708_s0 }
  0x9e   :  { %p4715_p9 = por %p4714_p8, %p4713_p7 }
  0xa0   :  { %p4716_p10 = pnand %p4715_p9, %p4709_p6 }
  0xa2   :  { %4719 = shalt.err (!%p4716_p10)
}
  0xa3   :  { %s5772_s9 = smov 4   ;;  %s5773_s21 = smov 64  }
  0xa4   :  { %107 = dma.hbm_to_vmem [thread:$0]  %s5771_s10, 1024, %s5034_s5, [#allocation12], %s5773_s21, %s5773_s21, %s5772_s9  }
  0xa5   :  { %s4811_s7 = smov [#allocation16]   ;;  %s4812_s27 = smov [#allocation17]  }
  0xa6   :  { %s143_s11 = sshll.u32 %s4811_s7, 4  ;;  %s161_s13 = sshll.u32 %s4812_s27, 4  ;;  %s144_s11 = int_to_ptr.vmem [resolvable:$true] %s143_s11  ;;  %s5068_s13 = int_to_ptr.vmem [resolvable:$true] %s161_s13 }
  0xa7   :  { %s4720_s1 = scalar_lea.hbm %s5725_s19, 2048 }
  0xa8   :  { %p4721_p11 = scmp.ne.s32.totalorder %s5725_s19, %s4720_s1  ;;  %p4724_p12 = scmp.lt.u32.totalorder %s4720_s1, %s5725_s19 }
  0xaa   :  { %p4726_p13 = pnand %p4724_p12, %p4721_p11 }
  0xac   :  { %4729 = shalt.err (!%p4726_p13)
}
  0xad   :  { %s4730_s5 = scalar_lea.vmem %s144_s11, 2048  ;;  %p4735_p1 = scmp.lt.s32.totalorder %s144_s11, %s144_s11 }
  0xae   :  { %p4731_p0 = scmp.ne.s32.totalorder %s144_s11, %s4730_s5  ;;  %p4736_p2 = scmp.lt.s32.totalorder %s4730_s5, %s4730_s5 }
  0xb0   :  { %p4737_p3 = por %p4736_p2, %p4735_p1 }
  0xb2   :  { %p4738_p4 = pnand %p4737_p3, %p4731_p0 }
  0xb4   :  { %4741 = shalt.err (!%p4738_p4)
}
  0xb5   :  { %149 = dma.hbm_to_vmem [thread:$0]  %s5725_s19, 2048, %s144_s11, [#allocation15], %s5773_s21, %s5773_s21, %s5772_s9  }
  0xb6   :  { %s4742_s7 = scalar_lea.hbm %s5729_s23, 256 }
  0xb7   :  { %p4743_p5 = scmp.ne.s32.totalorder %s5729_s23, %s4742_s7  ;;  %p4746_p6 = scmp.lt.u32.totalorder %s4742_s7, %s5729_s23 }
  0xb9   :  { %p4748_p7 = pnand %p4746_p6, %p4743_p5 }
  0xbb   :  { %4751 = shalt.err (!%p4748_p7)
}
  0xbc   :  { %s4752_s8 = scalar_lea.vmem %s5068_s13, 256  ;;  %p4757_p9 = scmp.lt.s32.totalorder %s5068_s13, %s5068_s13 }
  0xbd   :  { %p4753_p8 = scmp.ne.s32.totalorder %s5068_s13, %s4752_s8  ;;  %p4758_p10 = scmp.lt.s32.totalorder %s4752_s8, %s4752_s8 }
  0xbf   :  { %p4759_p11 = por %p4758_p10, %p4757_p9 }
  0xc1   :  { %p4760_p12 = pnand %p4759_p11, %p4753_p8 }
  0xc3   :  { %4763 = shalt.err (!%p4760_p12)
}
  0xc4   :  { %167 = dma.hbm_to_vmem [thread:$0]  %s5729_s23, 256, %s5068_s13, [#allocation18], %s5773_s21, %s5773_s21, %s5772_s9  }
  0xc5   :  { %4788 = dma.done.wait [#allocation6], 1664  }
  0xc6   :  { %4789 = vsyncadd [#allocation6], 4294965632 }
  0xc7   :  { %4790 = dma.done.wait [#allocation9], 288  }
  0xc8   :  { %4791 = vsyncadd [#allocation9], 4294967008 }
  0xc9   :  { %4792 = dma.done.wait [#allocation12], 2048  }
  0xca   :  { %4793 = vsyncadd [#allocation12], 4294965248 }
  0xcb   :  { %4794 = dma.done.wait [#allocation15], 2560  }
  0xcc   :  { %4795 = vsyncadd [#allocation15], 4294964736 }
  0xcd   :  { %4796 = dma.done.wait [#allocation18], 256  }
  0xce   :  { %4797 = vsyncadd [#allocation18], 4294967040  ;;  %s200_s28 = sld [smem:[#allocation4]]  ;;  %s3713_s6 = sld [smem:[#allocation4 + $0x1]]  ;;  %vm206_vm0 = vcmask 253952   ;;  %vm317_vm1 = vcmask 261120  }
  0xcf   :  { %s3714_s30 = sld [smem:[#allocation4 + $0x2]]  ;;  %s3715_s5 = sld [smem:[#allocation4 + $0x3]]  ;;  %v5121_v0 = vld [vmem:[#allocation10] sm:$0x1]  ;;  %v203_v1 = vld [vmem:[#allocation8] sm:$0x1] }
  0xd0   :  { %s5105_s10 = sld [smem:[#allocation4 + $0x4]]  ;;  %s5107_s0 = sld [smem:[#allocation4 + $0x5]]  ;;  %v211_v4 = vld [vmem:[#allocation8 + $0x1] sm:$0x1]  ;;  %v218_v7 = vld [vmem:[#allocation8 + $0x2] sm:$0x1] }
  0xd1   :  { %s5109_s2 = sld [smem:[#allocation4 + $0x6]]  ;;  %s5111_s23 = sld [smem:[#allocation4 + $0x7]]  ;;  %v225_v8 = vld [vmem:[#allocation8 + $0x3] sm:$0x1]  ;;  %v232_v16 = vld [vmem:[#allocation8 + $0x4] sm:$0x1] }
  0xd2   :  { %s5113_s9 = sld [smem:[#allocation4 + $0x8]]  ;;  %s5115_s21 = sld [smem:[#allocation4 + $0x9]]  ;;  %v239_v19 = vld [vmem:[#allocation8 + $0x5] sm:$0x1]  ;;  %v246_v20 = vld [vmem:[#allocation8 + $0x6] sm:$0x1] }
  0xd3   :  { %s5117_s13 = sld [smem:[#allocation4 + $0xa]]  ;;  %s5119_s3 = sld [smem:[#allocation4 + $0xb]]  ;;  %v253_v26 = vld [vmem:[#allocation8 + $0x7] sm:$0x1]  ;;  %v260_v30 = vld [vmem:[#allocation8] sm:$0x1] }
  0xd4   :  { %s201_s7 = scalar_lea.vmem [#allocation5], %s200_s28  ;;  %s209_s27 = scalar_lea.vmem [#allocation5], %s3713_s6  ;;  %v267_v31 = vld [vmem:[#allocation8 + $0x1] sm:$0x1]  ;;  %v274_v40 = vld [vmem:[#allocation8 + $0x2] sm:$0x1] }
  0xd5   :  { %v202_v2 = vld [vmem:[%s201_s7] sm:$0x1]  ;;  %s216_s29 = scalar_lea.vmem [#allocation5], %s3714_s30  ;;  %s223_s4 = scalar_lea.vmem [#allocation5], %s3715_s5  ;;  %v281_v43 = vld [vmem:[#allocation8 + $0x3] sm:$0x1] }
  0xd6   :  { %v210_v3 = vld [vmem:[%s209_s27] sm:$0x1]  ;;  %v204_v5 = vadd.f32 %v203_v1, %v202_v2  ;;  %s230_s1 = scalar_lea.vmem [#allocation5], %s5105_s10  ;;  %s237_s8 = scalar_lea.vmem [#allocation5], %s5107_s0  ;;  %v288_v49 = vld [vmem:[#allocation8 + $0x4] sm:$0x1] }
  0xd7   :  { %v212_v6 = vadd.f32 %v211_v4, %v210_v3  ;;  %v217_v9 = vld [vmem:[%s216_s29] sm:$0x1]  ;;  %s244_s19 = scalar_lea.vmem [#allocation5], %s5109_s2  ;;  %s251_s11 = scalar_lea.vmem [#allocation5], %s5111_s23  ;;  %v295_v50 = vld [vmem:[#allocation8 + $0x5] sm:$0x1] }
  0xd8   :  { %v224_v10 = vld [vmem:[%s223_s4] sm:$0x1]  ;;  %v205_v11 = vadd.f32 %v204_v5, %v5121_v0  ;;  %v219_v13 = vadd.f32 %v218_v7, %v217_v9  ;;  %s258_s28 = scalar_lea.vmem [#allocation5], %s5113_s9  ;;  %s265_s6 = scalar_lea.vmem [#allocation5], %s5115_s21  ;;  %v302_v51 = vld [vmem:[#allocation8 + $0x6] sm:$0x1] }
  0xd9   :  { %v213_v12 = vadd.f32 %v212_v6, %v5121_v0  ;;  %v226_v14 = vadd.f32 %v225_v8, %v224_v10  ;;  %v231_v15 = vld [vmem:[%s230_s1] sm:$0x1]  ;;  %s272_s30 = scalar_lea.vmem [#allocation5], %s5117_s13  ;;  %s279_s5 = scalar_lea.vmem [#allocation5], %s5119_s3  ;;  %v309_v52 = vld [vmem:[#allocation8 + $0x7] sm:$0x1] }
  0xda   :  { %v238_v17 = vld [vmem:[%s237_s8] sm:$0x1]  ;;  %v233_v18 = vadd.f32 %v232_v16, %v231_v15  ;;  %207 = vst.msk [vmem:[#allocation2] sm:$0x1] %vm206_vm0, %v205_v11  ;;  %v220_v21 = vadd.f32 %v219_v13, %v5121_v0  ;;  %s3724_s10 = sld [smem:[#allocation4 + $0xc]]  ;;  %s3725_s0 = sld [smem:[#allocation4 + $0xd]] }
  0xdb   :  { %214 = vst.msk [vmem:[#allocation2 + $0x1] sm:$0x1] %vm206_vm0, %v213_v12  ;;  %v227_v22 = vadd.f32 %v226_v14, %v5121_v0  ;;  %v240_v23 = vadd.f32 %v239_v19, %v238_v17  ;;  %v245_v24 = vld [vmem:[%s244_s19] sm:$0x1]  ;;  %s3726_s2 = sld [smem:[#allocation4 + $0xe]]  ;;  %s3727_s23 = sld [smem:[#allocation4 + $0xf]] }
  0xdc   :  { %v252_v25 = vld [vmem:[%s251_s11] sm:$0x1]  ;;  %v234_v27 = vadd.f32 %v233_v18, %v5121_v0  ;;  %v247_v28 = vadd.f32 %v246_v20, %v245_v24  ;;  %221 = vst.msk [vmem:[#allocation2 + $0x2] sm:$0x1] %vm206_vm0, %v220_v21  ;;  %v4462_v15 = vld [vmem:[#allocation11] sm:$0xff]   ;;  %v4813_v16 = vmov 0.0  }
  0xdd   :  { %v254_v29 = vadd.f32 %v253_v26, %v252_v25  ;;  %228 = vst.msk [vmem:[#allocation2 + $0x3] sm:$0x1] %vm206_vm0, %v227_v22  ;;  %v241_v32 = vadd.f32 %v240_v23, %v5121_v0  ;;  %v259_v33 = vld [vmem:[%s258_s28] sm:$0x1]  ;;  %4037 = vmatprep.subr.bf16.mxu1 %v4813_v16  ;;  %4053 = vmatprep.subr.bf16.mxu0 %v4813_v16  ;;  %v4463_v17 = vld [vmem:[#allocation11 + $0x8] sm:$0xff]   ;;  %vm4814_vm2 = vmmov 0  }
  0xde   :  { %v266_v34 = vld [vmem:[%s265_s6] sm:$0x1]  ;;  %235 = vst.msk [vmem:[#allocation2 + $0x4] sm:$0x1] %vm206_vm0, %v234_v27  ;;  %v248_v35 = vadd.f32 %v247_v28, %v5121_v0  ;;  %v261_v37 = vadd.f32 %v260_v30, %v259_v33  ;;  %4038 = vmatpush3.bf16.msra.mxu1 %v4462_v15  ;;  %4054 = vmatpush3.bf16.msra.mxu0 %v4462_v15  ;;  %s5774_s29 = sld [smem:[#allocation32_spill]]  ;;  %s5775_s8 = sld [smem:[#allocation33_spill]] }
  0xdf   :  { %v255_v36 = vadd.f32 %v254_v29, %v5121_v0  ;;  %v268_v38 = vadd.f32 %v267_v31, %v266_v34  ;;  %v273_v39 = vld [vmem:[%s272_s30] sm:$0x1]  ;;  %242 = vst.msk [vmem:[#allocation2 + $0x5] sm:$0x1] %vm206_vm0, %v241_v32  ;;  %4039 = vmatprep.subr.bf16.mxu1 %v4813_v16  ;;  %4055 = vmatprep.subr.bf16.mxu0 %v4813_v16  ;;  %v4465_v32 = vld [vmem:[#allocation11 + $0x18] sm:$0xff]   ;;  %s5776_s28 = sld [smem:[#allocation36_spill]] }
  0xe0   :  { %v280_v41 = vld [vmem:[%s279_s5] sm:$0x1]  ;;  %v275_v42 = vadd.f32 %v274_v40, %v273_v39  ;;  %249 = vst.msk [vmem:[#allocation2 + $0x6] sm:$0x1] %vm206_vm0, %v248_v35  ;;  %v262_v44 = vadd.f32 %v261_v37, %v5121_v0  ;;  %s286_s9 = scalar_lea.vmem [#allocation5], %s3724_s10  ;;  %s293_s21 = scalar_lea.vmem [#allocation5], %s3725_s0  ;;  %4041 = vmatprep.mubr.msk.bf16.mxu1 %vm4814_vm2, %v4813_v16  ;;  %4057 = vmatprep.mubr.msk.bf16.mxu0 %vm4814_vm2, %v4813_v16 }
  0xe1   :  { %256 = vst.msk [vmem:[#allocation2 + $0x7] sm:$0x1] %vm206_vm0, %v255_v36  ;;  %v269_v45 = vadd.f32 %v268_v38, %v5121_v0  ;;  %v282_v46 = vadd.f32 %v281_v43, %v280_v41  ;;  %v287_v53 = vld [vmem:[%s286_s9] sm:$0x1]  ;;  %s300_s13 = scalar_lea.vmem [#allocation5], %s3726_s2  ;;  %s307_s3 = scalar_lea.vmem [#allocation5], %s3727_s23 }
  0xe2   :  { %v276_v47 = vadd.f32 %v275_v42, %v5121_v0  ;;  %263 = vst.msk [vmem:[#allocation2 + $0x8] sm:$0x1] %vm206_vm0, %v262_v44  ;;  %v289_v55 = vadd.f32 %v288_v49, %v287_v53  ;;  %v294_v56 = vld [vmem:[%s293_s21] sm:$0x1]  ;;  %4040 = vmatpush3.bf16.msra.mxu1 %v4463_v17  ;;  %4056 = vmatpush3.bf16.msra.mxu0 %v4463_v17  ;;  %v4466_v37 = vld [vmem:[#allocation13] sm:$0xff]   ;;  %v4467_v40 = vld [vmem:[#allocation13 + $0x8] sm:$0xff]  }
  0xe3   :  { %270 = vst.msk [vmem:[#allocation2 + $0x9] sm:$0x1] %vm206_vm0, %v269_v45  ;;  %v283_v48 = vadd.f32 %v282_v46, %v5121_v0  ;;  %v301_v57 = vld [vmem:[%s300_s13] sm:$0x1]  ;;  %v296_v59 = vadd.f32 %v295_v50, %v294_v56  ;;  %4045 = vmatprep.subr.bf16.mxu1 %v4813_v16  ;;  %4069 = vmatprep.subr.bf16.mxu0 %v4813_v16  ;;  %v4469_v41 = vld [vmem:[#allocation13 + $0x18] sm:$0xff]   ;;  %s5777_s21 = sld [smem:[#allocation38_spill]] }
  0xe4   :  { %277 = vst.msk [vmem:[#allocation2 + $0xa] sm:$0x1] %vm206_vm0, %v276_v47  ;;  %v303_v60 = vadd.f32 %v302_v51, %v301_v57  ;;  %v308_v61 = vld [vmem:[%s307_s3] sm:$0x1]  ;;  %v290_v62 = vadd.f32 %v289_v55, %v5121_v0  ;;  %vm1026_vm3 = vcmask 130048   ;;  %vm1285_vm4 = vcmask 1043456  }
  0xe5   :  { %284 = vst.msk [vmem:[#allocation2 + $0xb] sm:$0x1] %vm206_vm0, %v283_v48  ;;  %v310_v63 = vadd.f32 %v309_v52, %v308_v61  ;;  %v297_v1 = vadd.f32 %v296_v59, %v5121_v0  ;;  %v3728_v24 = vld [vmem:[%s5774_s29] ss:$0 sm:$0xff]  ;;  %v4472_v43 = vld [vmem:[%s5776_s28 + $0x10] sm:$0xff]   ;;  %v4471_v44 = vld [vmem:[%s5776_s28 + $0x8] sm:$0xff]  }
  0xe6   :  { %v304_v2 = vadd.f32 %v303_v60, %v5121_v0  ;;  %291 = vst.msk [vmem:[#allocation2 + $0xc] sm:$0x1] %vm206_vm0, %v290_v62  ;;  %v3729_v27 = vld [vmem:[%s5775_s8] ss:$0 sm:$0xff]  ;;  %v4473_v45 = vld [vmem:[%s5776_s28 + $0x18] sm:$0xff]   ;;  %s5778_s29 = sld [smem:[#allocation37_spill]] }
  0xe7   :  { %v311_v3 = vadd.f32 %v310_v63, %v5121_v0  ;;  %298 = vst.msk [vmem:[#allocation2 + $0xd] sm:$0x1] %vm206_vm0, %v297_v1  ;;  %v4464_v30 = vld [vmem:[#allocation11 + $0x10] sm:$0xff]   ;;  %s5779_s10 = sld [smem:[#allocation28_spill]]  ;;  %vm1229_vm5 = vcmask 64512   ;;  %vm3540_vm6 = vcmask 1040384  }
  0xe8   :  { %v313_v54 = vld [vmem:[#allocation2] sm:$0xff]  ;;  %305 = vst.msk [vmem:[#allocation2 + $0xe] sm:$0x1] %vm206_vm0, %v304_v2 }
  0xe9   :  { %v318_v58 = vsel %vm317_vm1, %v313_v54, 0.0  ;;  %312 = vst.msk [vmem:[#allocation2 + $0xf] sm:$0x1] %vm206_vm0, %v311_v3  ;;  %v4468_v39 = vld [vmem:[#allocation13 + $0x10] sm:$0xff]  }
  0xea   :  { %319 = vadd.xlane.f32.xlu0 %v318_v58  ;;  %v4470_v42 = vld [vmem:[%s5776_s28] sm:$0xff]  }
  0xeb   :  { %v3740_v61 = vld [vmem:[%s5777_s21] ss:$0 sm:$0xff]  ;;  %v3741_v3 = vld [vmem:[%s5777_s21 + $0x1] ss:$0 sm:$0xff] }
  0xec   :  { %v3731_v15 = vld [vmem:[%s5778_s29 + $0x1] ss:$0 sm:$0xff] }
  0xf0   :  { %v314_v4 = vld [vmem:[#allocation2 + $0x8] sm:$0xff] }
  0xf1   :  { %v321_v5 = vsel %vm317_vm1, %v314_v4, 0.0 }
  0xf2   :  { %322 = vadd.xlane.f32.xlu0 %v321_v5 }
 0x177   :  { %v320_v6 = vpop.xlane.xlu0 %319 }
 0x178   :  { %v325_v7 = vmul.f32 0.03125, %v320_v6 }
 0x17a   :  { %v327_v8 = vsub.f32 %v313_v54, %v325_v7 }
 0x17c   :  { %v329_v9 = vmul.f32 %v327_v8, %v327_v8 }
 0x17e   :  { %v331_v10 = vsel %vm317_vm1, %v329_v9, 0.0 }
 0x17f   :  { %332 = vadd.xlane.f32.xlu1 %v331_v10  ;;  %v323_v11 = vpop.xlane.xlu0 %322 }
 0x180   :  { %v326_v12 = vmul.f32 0.03125, %v323_v11 }
 0x182   :  { %v328_v0 = vsub.f32 %v314_v4, %v326_v12 }
 0x184   :  { %v330_v13 = vmul.f32 %v328_v0, %v328_v0 }
 0x186   :  { %v334_v14 = vsel %vm317_vm1, %v330_v13, 0.0 }
 0x187   :  { %335 = vadd.xlane.f32.xlu1 %v334_v14 }
 0x20c   :  { %v333_v18 = vpop.xlane.xlu1 %332 }
 0x20d   :  { %v337_v19 = vmul.f32 0.03125, %v333_v18 }
 0x20f   :  { %v339_v20 = vadd.f32 1e-12, %v337_v19 }
 0x211   :  { %4514 = vrsqrt.f32 %v339_v20 }
 0x214   :  { %v336_v21 = vpop.xlane.xlu1 %335 }
 0x215   :  { %v338_v22 = vmul.f32 0.03125, %v336_v21 }
 0x217   :  { %v340_v26 = vadd.f32 1e-12, %v338_v22 }
 0x219   :  { %4516 = vrsqrt.f32 %v340_v26 }
 0x21b   :  { %v4515_v23 = vpop.eup %4514 }
 0x21c   :  { %v343_v25 = vmul.f32 %v4515_v23, %v327_v8  ;;  %v3730_v8 = vld [vmem:[%s5778_s29] ss:$0 sm:$0xff] }
 0x21e   :  { %v351_v28 = vmul.f32 %v3728_v24, %v343_v25 }
 0x220   :  { %v5183_v29 = vadd.f32 %v3729_v27, %v351_v28 }
 0x222   :  { %v5187_v31 = vpack.c.bf16 %v5183_v29, %v5183_v29 }
 0x223   :  { %v4517_v33 = vpop.eup %4516 }
 0x224   :  { %4042 = vmatmul.mubr.msk.bf16.vlgmr.msra.gmra.mrb[0].mxu1 %vm317_vm1, %v5187_v31  ;;  %v344_v34 = vmul.f32 %v4517_v33, %v328_v0  ;;  %v3750_v33 = vld [vmem:[%s5718_s12] ss:$0 sm:$0xff] }
 0x225   :  { %4046 = vmatpush3.bf16.msra.mxu1 %v4464_v30  ;;  %4049 = vmatprep.mubr.msk.bf16.mxu1 %vm4814_vm2, %v4813_v16 }
 0x226   :  { %4047 = vmatprep.subr.bf16.mxu1 %v4813_v16  ;;  %v352_v35 = vmul.f32 %v3728_v24, %v344_v34 }
 0x228   :  { %v5197_v36 = vadd.f32 %v3729_v27, %v352_v35 }
 0x229   :  { %4048 = vmatpush3.bf16.msra.mxu1 %v4465_v32 }
 0x22a   :  { %4061 = vmatprep.subr.bf16.mxu1 %v4813_v16  ;;  %v389_v38 = vpack.c.bf16 %v5197_v36, %v5197_v36 }
 0x22c   :  { %4050 = vmatmul.mubr.msk.bf16.vlgmr.msra.gmra.mrb[4].mxu1 %vm317_vm1, %v5187_v31  ;;  %4058 = vmatmul.mubr.msk.bf16.vlgmr.msra.gmra.mrb[0].mxu0 %vm317_vm1, %v389_v38 }
 0x22d   :  { %4062 = vmatpush3.bf16.msra.mxu1 %v4464_v30  ;;  %4065 = vmatprep.mubr.msk.bf16.mxu1 %vm4814_vm2, %v4813_v16 }
 0x22e   :  { %4063 = vmatprep.subr.bf16.mxu1 %v4813_v16  ;;  %4070 = vmatpush3.bf16.msra.mxu0 %v4466_v37 }
 0x22f   :  { %4073 = vmatprep.mubr.msk.bf16.mxu0 %vm4814_vm2, %v4813_v16  ;;  %4071 = vmatprep.subr.bf16.mxu0 %v4813_v16 }
 0x231   :  { %4064 = vmatpush3.bf16.msra.mxu1 %v4465_v32 }
 0x232   :  { %4077 = vmatprep.subr.bf16.mxu1 %v4813_v16  ;;  %4072 = vmatpush3.bf16.msra.mxu0 %v4467_v40 }
 0x233   :  { %4085 = vmatprep.subr.bf16.mxu0 %v4813_v16 }
 0x234   :  { %4066 = vmatmul.mubr.msk.bf16.vlgmr.msra.gmra.mrb[8].mxu1 %vm317_vm1, %v389_v38 }
 0x235   :  { %4078 = vmatpush3.bf16.msra.mxu1 %v4468_v39  ;;  %4081 = vmatprep.mubr.msk.bf16.mxu1 %vm4814_vm2, %v4813_v16 }
 0x236   :  { %4079 = vmatprep.subr.bf16.mxu1 %v4813_v16  ;;  %4074 = vmatmul.mubr.msk.bf16.vlgmr.msra.gmra.mrb[4].mxu0 %vm317_vm1, %v5187_v31 }
 0x237   :  { %4086 = vmatpush3.bf16.msra.mxu0 %v4466_v37  ;;  %4089 = vmatprep.mubr.msk.bf16.mxu0 %vm4814_vm2, %v4813_v16 }
 0x238   :  { %4087 = vmatprep.subr.bf16.mxu0 %v4813_v16 }
 0x239   :  { %4080 = vmatpush3.bf16.msra.mxu1 %v4469_v41 }
 0x23a   :  { %4093 = vmatprep.subr.bf16.mxu1 %v4813_v16 }
 0x23b   :  { %4088 = vmatpush3.bf16.msra.mxu0 %v4467_v40 }
 0x23c   :  { %4082 = vmatmul.mubr.msk.bf16.vlgmr.msra.gmra.mrb[12].mxu1 %vm317_vm1, %v5187_v31  ;;  %4101 = vmatprep.subr.bf16.mxu0 %v4813_v16 }
 0x23d   :  { %4094 = vmatpush3.bf16.msra.mxu1 %v4468_v39  ;;  %4097 = vmatprep.mubr.msk.bf16.mxu1 %vm4814_vm2, %v4813_v16 }
 0x23e   :  { %4095 = vmatprep.subr.bf16.mxu1 %v4813_v16  ;;  %4090 = vmatmul.mubr.msk.bf16.vlgmr.msra.gmra.mrb[8].mxu0 %vm317_vm1, %v389_v38 }
 0x23f   :  { %4102 = vmatpush3.bf16.msra.mxu0 %v4470_v42  ;;  %4105 = vmatprep.mubr.msk.bf16.mxu0 %vm4814_vm2, %v4813_v16 }
 0x240   :  { %4103 = vmatprep.subr.bf16.mxu0 %v4813_v16 }
 0x241   :  { %4096 = vmatpush3.bf16.msra.mxu1 %v4469_v41 }
 0x242   :  { %4109 = vmatprep.subr.bf16.mxu1 %v4813_v16 }
 0x243   :  { %4104 = vmatpush3.bf16.msra.mxu0 %v4471_v44 }
 0x244   :  { %4098 = vmatmul.mubr.msk.bf16.vlgmr.msra.gmra.mrb[16].mxu1 %vm317_vm1, %v389_v38  ;;  %4117 = vmatprep.subr.bf16.mxu0 %v4813_v16 }
 0x245   :  { %4110 = vmatpush3.bf16.msra.mxu1 %v4472_v43  ;;  %4113 = vmatprep.mubr.msk.bf16.mxu1 %vm4814_vm2, %v4813_v16 }
 0x246   :  { %4111 = vmatprep.subr.bf16.mxu1 %v4813_v16  ;;  %4106 = vmatmul.mubr.msk.bf16.vlgmr.msra.gmra.mrb[12].mxu0 %vm317_vm1, %v5187_v31 }
 0x247   :  { %4118 = vmatpush3.bf16.msra.mxu0 %v4470_v42  ;;  %4121 = vmatprep.mubr.msk.bf16.mxu0 %vm4814_vm2, %v4813_v16  ;;  %v3751_v42 = vld [vmem:[%s5718_s12 + $0x1] ss:$0 sm:$0xff] }
 0x248   :  { %4119 = vmatprep.subr.bf16.mxu0 %v4813_v16 }
 0x249   :  { %4112 = vmatpush3.bf16.msra.mxu1 %v4473_v45 }
 0x24a   :  { %4125 = vmatprep.subr.bf16.mxu1 %v4813_v16 }
 0x24b   :  { %4120 = vmatpush3.bf16.msra.mxu0 %v4471_v44 }
 0x24c   :  { %4114 = vmatmul.mubr.msk.bf16.vlgmr.msra.gmra.mrb[20].mxu1 %vm317_vm1, %v5187_v31  ;;  %4133 = vmatprep.subr.bf16.mxu0 %v4813_v16 }
 0x24d   :  { %4126 = vmatpush3.bf16.msra.mxu1 %v4472_v43  ;;  %4129 = vmatprep.mubr.msk.bf16.mxu1 %vm4814_vm2, %v4813_v16 }
 0x24e   :  { %4127 = vmatprep.subr.bf16.mxu1 %v4813_v16  ;;  %4122 = vmatmul.mubr.msk.bf16.vlgmr.msra.gmra.mrb[16].mxu0 %vm317_vm1, %v389_v38 }
 0x24f   :  { %4135 = vmatprep.mubr.msk.bf16.mxu0 %vm4814_vm2, %v4813_v16 }
 0x251   :  { %4128 = vmatpush3.bf16.msra.mxu1 %v4473_v45 }
 0x252   :  { %4139 = vmatprep.subr.bf16.mxu1 %v4813_v16 }
 0x254   :  { %4130 = vmatmul.mubr.msk.bf16.vlgmr.msra.gmra.mrb[24].mxu1 %vm317_vm1, %v389_v38 }
 0x255   :  { %4141 = vmatprep.mubr.msk.bf16.mxu1 %vm4814_vm2, %v4813_v16 }
 0x2f7   :  { %v485_v46 = vpop.f32.mrb[0].mxu1 }
 0x2f8   :  { %v4043_v47 = vpop.f32.mrb[1].mxu1  ;;  %v486_v14 = vadd.f32 %v3730_v8, %v485_v46 }
 0x2f9   :  { %v488_v48 = vpop.f32.mrb[2].mxu1 }
 0x2fa   :  { %v4044_v49 = vpop.f32.mrb[3].mxu1  ;;  %v1018_v23 = vpack.c.bf16 %v486_v14, %v486_v14 }
 0x2ff   :  { %v537_v50 = vpop.f32.mrb[4].mxu1  ;;  %v580_v54 = vpop.f32.mrb[0].mxu0 }
 0x300   :  { %v4051_v51 = vpop.f32.mrb[5].mxu1  ;;  %v4059_v55 = vpop.f32.mrb[1].mxu0  ;;  %v538_v21 = vadd.f32 %v3731_v15, %v537_v50  ;;  %v581_v37 = vadd.f32 %v3730_v8, %v580_v54  ;;  %v369_v8 = vlaneseq }
 0x301   :  { %v540_v52 = vpop.f32.mrb[6].mxu1  ;;  %v583_v56 = vpop.f32.mrb[2].mxu0 }
 0x302   :  { %v4052_v53 = vpop.f32.mrb[7].mxu1  ;;  %v4060_v57 = vpop.f32.mrb[3].mxu0  ;;  %v1019_v32 = vpack.c.bf16 %v538_v21, %v538_v21  ;;  %v1020_v45 = vpack.c.bf16 %v581_v37, %v581_v37 }
 0x307   :  { %v620_v58 = vpop.f32.mrb[8].mxu1 }
 0x308   :  { %v4067_v59 = vpop.f32.mrb[9].mxu1  ;;  %v621_v43 = vadd.f32 %v3731_v15, %v620_v58 }
 0x309   :  { %v623_v60 = vpop.f32.mrb[10].mxu1  ;;  %v684_v63 = vpop.f32.mrb[4].mxu0 }
 0x30a   :  { %v4068_v62 = vpop.f32.mrb[11].mxu1  ;;  %v685_v1 = vadd.f32 %v3740_v61, %v684_v63  ;;  %v4075_v2 = vpop.f32.mrb[5].mxu0  ;;  %v1021_v53 = vpack.c.bf16 %v621_v43, %v621_v43 }
 0x30b   :  { %v687_v4 = vpop.f32.mrb[6].mxu0 }
 0x30c   :  { %v1022_v5 = vpack.c.bf16 %v685_v1, %v685_v1  ;;  %v4076_v6 = vpop.f32.mrb[7].mxu0  ;;  %v361_v4 = vld [vmem:[%s5779_s10] sm:$0x3]  ;;  %s5780_s10 = sld [smem:[#allocation39_spill]] }
 0x30d   :  { %v4815_v6 = vmov 1966171168  }
 0x30e   :  { %v1031_v11 = vsel %vm1026_vm3, %v1022_v5, 0  ;;  %v362_v5 = vcvt.s32.f32 %v361_v4 }
 0x30f   :  { %v736_v7 = vpop.f32.mrb[12].mxu1  ;;  %4134 = vmatpush3.bf16.xpose.msra.mxu0 %v1031_v11  ;;  %v370_v11 = vshrl.u32 %v369_v8, 7 }
 0x310   :  { %v737_v9 = vadd.f32 %v3741_v3, %v736_v7  ;;  %v4083_v10 = vpop.f32.mrb[13].mxu1  ;;  %4145 = vmatprep.subr.bf16.mxu0 %v4813_v16  ;;  %v367_v7 = vunpack.c.l.s4 %v4815_v6 }
 0x311   :  { %v739_v12 = vpop.f32.mrb[14].mxu1  ;;  %v776_v17 = vpop.f32.mrb[8].mxu0  ;;  %v1217_v15 = vsub.s32 0, %v370_v11 }
 0x312   :  { %v1023_v0 = vpack.c.bf16 %v737_v9, %v737_v9  ;;  %v4084_v13 = vpop.f32.mrb[15].mxu1  ;;  %v777_v19 = vadd.f32 %v3740_v61, %v776_v17  ;;  %v4091_v20 = vpop.f32.mrb[9].mxu0  ;;  %v363_v9 = vsub.f32 1.0, %v362_v5  ;;  %v368_v10 = vunpack.c.0.s8 %v367_v7 }
 0x313   :  { %v779_v22 = vpop.f32.mrb[10].mxu0 }
 0x314   :  { %v1077_v18 = vsel %vm1026_vm3, %v1023_v0, 0  ;;  %v1024_v24 = vpack.c.bf16 %v777_v19, %v777_v19  ;;  %v4092_v25 = vpop.f32.mrb[11].mxu0  ;;  %v364_v12 = vmul.f32 -10000.0, %v363_v9  ;;  %v371_v0 = vsub.s32 %v368_v10, %v370_v11 }
 0x315   :  { %4140 = vmatpush3.bf16.xpose.msra.mxu1 %v1077_v18 }
 0x316   :  { %4151 = vmatprep.subr.bf16.mxu1 %v4813_v16  ;;  %v1123_v30 = vsel %vm1026_vm3, %v1024_v24, 0  ;;  %4136 = vmatmul.mubr.msk.bf16.vlgmr.msra.gmra.mrb[20].mxu0 %vm1026_vm3, %v1018_v23  ;;  %v372_v13 = vrot.slane %v364_v12, %v371_v0 }
 0x317   :  { %v816_v26 = vpop.f32.mrb[16].mxu1  ;;  %4146 = vmatpush3.bf16.xpose.msra.mxu0 %v1123_v30  ;;  %4147 = vmatprep.mubr.msk.bf16.mxu0 %vm4814_vm2, %v4813_v16 }
 0x318   :  { %v817_v27 = vadd.f32 %v3741_v3, %v816_v26  ;;  %v4099_v28 = vpop.f32.mrb[17].mxu1  ;;  %4157 = vmatprep.subr.bf16.mxu0 %v4813_v16  ;;  %v380_v14 = vrot.slane %v372_v13, %v371_v0  ;;  %v373_v18 = vcombine.high %v372_v13, %v372_v13 }
 0x319   :  { %v819_v31 = vpop.f32.mrb[18].mxu1  ;;  %v880_v38 = vpop.f32.mrb[12].mxu0 }
 0x31a   :  { %v1025_v34 = vpack.c.bf16 %v817_v27, %v817_v27  ;;  %v4100_v35 = vpop.f32.mrb[19].mxu1  ;;  %v881_v40 = vadd.f32 %v3750_v33, %v880_v38  ;;  %v4107_v41 = vpop.f32.mrb[13].mxu0  ;;  %v5316_v17 = vrot.slane %v380_v14, %v1217_v15  ;;  %v387_v26 = vrot.slane %v373_v18, %v371_v0 }
 0x31b   :  { %v883_v44 = vpop.f32.mrb[14].mxu0 }
 0x31c   :  { %v1169_v39 = vsel %vm1026_vm3, %v1025_v34, 0  ;;  %4142 = vmatmul.mubr.msk.bf16.vlgmr.msra.gmra.mrb[28].mxu1 %vm1026_vm3, %v1019_v32  ;;  %v1278_v46 = vpack.c.bf16 %v881_v40, %v881_v40  ;;  %v4108_v47 = vpop.f32.mrb[15].mxu0  ;;  %v5321_v34 = vrot.slane %v387_v26, %v1217_v15 }
 0x31d   :  { %4152 = vmatpush3.bf16.xpose.msra.mxu1 %v1169_v39  ;;  %4153 = vmatprep.mubr.msk.bf16.mxu1 %vm4814_vm2, %v4813_v16 }
 0x31e   :  { %4163 = vmatprep.subr.bf16.mxu1 %v4813_v16  ;;  %v1287_v51 = vsel %vm1285_vm4, %v1278_v46, 0  ;;  %4148 = vmatmul.mubr.msk.bf16.vlgmr.msra.gmra.mrb[24].mxu0 %vm1026_vm3, %v1020_v45 }
 0x31f   :  { %v932_v48 = vpop.f32.mrb[20].mxu1  ;;  %4158 = vmatpush3.bf16.msra.mxu0 %v1287_v51  ;;  %4159 = vmatprep.mubr.msk.bf16.mxu0 %vm4814_vm2, %v4813_v16 }
 0x320   :  { %v933_v49 = vadd.f32 %v3751_v42, %v932_v48  ;;  %v4115_v50 = vpop.f32.mrb[21].mxu1  ;;  %4169 = vmatprep.subr.bf16.mxu0 %v4813_v16 }
 0x321   :  { %v935_v52 = vpop.f32.mrb[22].mxu1  ;;  %v972_v56 = vpop.f32.mrb[16].mxu0 }
 0x322   :  { %v1279_v54 = vpack.c.bf16 %v933_v49, %v933_v49  ;;  %v4116_v55 = vpop.f32.mrb[23].mxu1  ;;  %v5306_v58 = vadd.f32 %v3750_v33, %v972_v56  ;;  %v4123_v59 = vpop.f32.mrb[17].mxu0 }
 0x323   :  { %v975_v60 = vpop.f32.mrb[18].mxu0 }
 0x324   :  { %v1333_v57 = vsel %vm1285_vm4, %v1279_v54, 0  ;;  %4154 = vmatmul.mubr.msk.bf16.vlgmr.msra.gmra.mrb[32].mxu1 %vm1026_vm3, %v1021_v53  ;;  %v4124_v61 = vpop.f32.mrb[19].mxu0  ;;  %v1280_v14 = vpack.c.bf16 %v5306_v58, %v5306_v58 }
 0x325   :  { %4164 = vmatpush3.bf16.msra.mxu1 %v1333_v57  ;;  %4165 = vmatprep.mubr.msk.bf16.mxu1 %vm4814_vm2, %v4813_v16 }
 0x326   :  { %4175 = vmatprep.subr.bf16.mxu1 %v4813_v16 }
 0x327   :  { %v1012_v62 = vpop.f32.mrb[24].mxu1 }
 0x328   :  { %v5311_v63 = vadd.f32 %v3751_v42, %v1012_v62  ;;  %v4131_v1 = vpop.f32.mrb[25].mxu1 }
 0x329   :  { %v1015_v2 = vpop.f32.mrb[26].mxu1 }
 0x32a   :  { %v4132_v3 = vpop.f32.mrb[27].mxu1 }
 0x3e9   :  { %v1067_v19 = vpop.f32.mrb[20].mxu0 }
 0x3ea   :  { %v1211_v20 = vmul.f32 0.25, %v1067_v19  ;;  %v4137_v21 = vpop.f32.mrb[21].mxu0 }
 0x3eb   :  { %v1070_v22 = vpop.f32.mrb[22].mxu0 }
 0x3ec   :  { %v4138_v23 = vpop.f32.mrb[23].mxu0  ;;  %v1225_v24 = vadd.f32 %v5316_v17, %v1211_v20  ;;  %v1281_v20 = vpack.c.bf16 %v5311_v63, %v5311_v63  ;;  %v1379_v22 = vsel %vm1285_vm4, %v1280_v14, 0 }
 0x3ee   :  { %v1230_v30 = vsel %vm1229_vm5, %v1225_v24, -inf }
 0x3ef   :  { %v1113_v25 = vpop.f32.mrb[28].mxu1  ;;  %1231 = vmax.xlane.f32.xlu0 %v1230_v30  ;;  %v4474_v30 = vld [vmem:[#allocation14] sm:$0xff]  }
 0x3f0   :  { %v1212_v27 = vmul.f32 0.25, %v1113_v25  ;;  %v4143_v28 = vpop.f32.mrb[29].mxu1 }
 0x3f1   :  { %v1116_v31 = vpop.f32.mrb[30].mxu1  ;;  %v1159_v35 = vpop.f32.mrb[24].mxu0 }
 0x3f2   :  { %v4144_v32 = vpop.f32.mrb[31].mxu1  ;;  %v1226_v33 = vadd.f32 %v5316_v17, %v1212_v27  ;;  %v1213_v38 = vmul.f32 0.25, %v1159_v35  ;;  %v4149_v39 = vpop.f32.mrb[25].mxu0  ;;  %v4475_v31 = vld [vmem:[#allocation14 + $0x8] sm:$0xff]  }
 0x3f3   :  { %v1162_v40 = vpop.f32.mrb[26].mxu0 }
 0x3f4   :  { %v1233_v37 = vsel %vm1229_vm5, %v1226_v33, -inf  ;;  %v4150_v41 = vpop.f32.mrb[27].mxu0  ;;  %v1227_v42 = vadd.f32 %v5321_v34, %v1213_v38 }
 0x3f5   :  { %1234 = vmax.xlane.f32.xlu1 %v1233_v37 }
 0x3f6   :  { %v1236_v46 = vsel %vm1229_vm5, %v1227_v42, -inf }
 0x3f7   :  { %v1205_v43 = vpop.f32.mrb[32].mxu1  ;;  %1237 = vmax.xlane.f32.xlu0 %v1236_v46 }
 0x3f8   :  { %v1214_v44 = vmul.f32 0.25, %v1205_v43  ;;  %v4155_v45 = vpop.f32.mrb[33].mxu1 }
 0x3f9   :  { %v1208_v47 = vpop.f32.mrb[34].mxu1 }
 0x3fa   :  { %v4156_v48 = vpop.f32.mrb[35].mxu1  ;;  %v1228_v49 = vadd.f32 %v5321_v34, %v1214_v44 }
 0x3fc   :  { %v1239_v50 = vsel %vm1229_vm5, %v1228_v49, -inf }
 0x3fd   :  { %1240 = vmax.xlane.f32.xlu1 %v1239_v50 }
 0x47c   :  { %v1232_v51 = vpop.xlane.xlu0 %1231 }
 0x47d   :  { %v1242_v52 = vsub.f32 %v1225_v24, %v1232_v51  ;;  %v1425_v24 = vsel %vm1285_vm4, %v1281_v20, 0 }
 0x47f   :  { %v1246_v53 = vmul.f32 1.442695, %v1242_v52 }
 0x481   :  { %4518 = vpow2.f32 %v1246_v53 }
 0x482   :  { %v1235_v54 = vpop.xlane.xlu1 %1234 }
 0x483   :  { %v1243_v55 = vsub.f32 %v1226_v33, %v1235_v54 }
 0x484   :  { %v1238_v57 = vpop.xlane.xlu0 %1237 }
 0x485   :  { %v1248_v56 = vmul.f32 1.442695, %v1243_v55  ;;  %v1244_v59 = vsub.f32 %v1227_v42, %v1238_v57 }
 0x487   :  { %4520 = vpow2.f32 %v1248_v56  ;;  %v1250_v60 = vmul.f32 1.442695, %v1244_v59 }
 0x489   :  { %4522 = vpow2.f32 %v1250_v60 }
 0x48a   :  { %v1241_v61 = vpop.xlane.xlu1 %1240 }
 0x48b   :  { %v1245_v62 = vsub.f32 %v1228_v49, %v1241_v61  ;;  %v4519_v2 = vpop.eup %4518 }
 0x48c   :  { %v1254_v3 = vsel %vm1229_vm5, %v4519_v2, 0.0 }
 0x48d   :  { %v1252_v1 = vmul.f32 1.442695, %v1245_v62  ;;  %1255 = vadd.xlane.f32.xlu0 %v1254_v3  ;;  %v3774_v62 = vld [vmem:[%s5720_s14] ss:$0 sm:$0xff] }
 0x48f   :  { %4524 = vpow2.f32 %v1252_v1 }
 0x491   :  { %v4521_v4 = vpop.eup %4520 }
 0x492   :  { %v1257_v5 = vsel %vm1229_vm5, %v4521_v4, 0.0 }
 0x493   :  { %1258 = vadd.xlane.f32.xlu1 %v1257_v5  ;;  %v4523_v6 = vpop.eup %4522 }
 0x494   :  { %v1260_v7 = vsel %vm1229_vm5, %v4523_v6, 0.0 }
 0x495   :  { %1261 = vadd.xlane.f32.xlu0 %v1260_v7 }
 0x499   :  { %v4525_v8 = vpop.eup %4524 }
 0x49a   :  { %v1263_v9 = vsel %vm1229_vm5, %v4525_v8, 0.0 }
 0x49b   :  { %1264 = vadd.xlane.f32.xlu1 %v1263_v9 }
 0x51a   :  { %v1256_v10 = vpop.xlane.xlu0 %1255 }
 0x51b   :  { %4526 = vrcp.f32 %v1256_v10 }
 0x520   :  { %v1259_v11 = vpop.xlane.xlu1 %1258 }
 0x521   :  { %4528 = vrcp.f32 %v1259_v11 }
 0x522   :  { %v1262_v12 = vpop.xlane.xlu0 %1261 }
 0x523   :  { %4530 = vrcp.f32 %v1262_v12 }
 0x525   :  { %v4527_v0 = vpop.eup %4526 }
 0x526   :  { %v1270_v15 = vmul.f32 %v4527_v0, %v4519_v2 }
 0x528   :  { %v1265_v13 = vpop.xlane.xlu1 %1264  ;;  %v1274_v19 = vpack.c.bf16 %v1270_v15, %v1270_v15 }
 0x529   :  { %4532 = vrcp.f32 %v1265_v13 }
 0x52a   :  { %4160 = vmatmul.mubr.msk.bf16.vlgmr.msra.gmra.mrb[28].mxu0 %vm1229_vm5, %v1274_v19 }
 0x52b   :  { %v4529_v18 = vpop.eup %4528  ;;  %4170 = vmatpush3.bf16.msra.mxu0 %v1379_v22  ;;  %4171 = vmatprep.mubr.msk.bf16.mxu0 %vm4814_vm2, %v4813_v16 }
 0x52c   :  { %v1271_v21 = vmul.f32 %v4529_v18, %v4521_v4  ;;  %4181 = vmatprep.subr.bf16.mxu0 %v4813_v16 }
 0x52d   :  { %v4531_v58 = vpop.eup %4530 }
 0x52e   :  { %v1275_v23 = vpack.c.bf16 %v1271_v21, %v1271_v21  ;;  %v1272_v25 = vmul.f32 %v4531_v58, %v4523_v6 }
 0x530   :  { %4166 = vmatmul.mubr.msk.bf16.vlgmr.msra.gmra.mrb[36].mxu1 %vm1229_vm5, %v1275_v23  ;;  %v1276_v26 = vpack.c.bf16 %v1272_v25, %v1272_v25 }
 0x531   :  { %4176 = vmatpush3.bf16.msra.mxu1 %v1425_v24  ;;  %4177 = vmatprep.mubr.msk.bf16.mxu1 %vm4814_vm2, %v4813_v16 }
 0x532   :  { %4187 = vmatprep.subr.bf16.mxu1 %v4813_v16  ;;  %4172 = vmatmul.mubr.msk.bf16.vlgmr.msra.gmra.mrb[32].mxu0 %vm1229_vm5, %v1276_v26 }
 0x533   :  { %v4533_v63 = vpop.eup %4532  ;;  %4183 = vmatprep.mubr.msk.bf16.mxu0 %vm4814_vm2, %v4813_v16  ;;  %4182 = vmatpush3.bf16.msra.mxu0 %v4474_v30 }
 0x534   :  { %v1273_v27 = vmul.f32 %v4533_v63, %v4525_v8  ;;  %4193 = vmatprep.subr.bf16.mxu0 %v4813_v16 }
 0x536   :  { %v1277_v28 = vpack.c.bf16 %v1273_v27, %v1273_v27 }
 0x538   :  { %4178 = vmatmul.mubr.msk.bf16.vlgmr.msra.gmra.mrb[40].mxu1 %vm1229_vm5, %v1277_v28 }
 0x539   :  { %4189 = vmatprep.mubr.msk.bf16.mxu1 %vm4814_vm2, %v4813_v16  ;;  %4188 = vmatpush3.bf16.msra.mxu1 %v4475_v31 }
 0x53a   :  { %4199 = vmatprep.subr.bf16.mxu1 %v4813_v16 }
 0x5fd   :  { %v1323_v32 = vpop.f32.mrb[28].mxu0 }
 0x5fe   :  { %v1467_v33 = vpack.c.bf16 %v1323_v32, %v1323_v32  ;;  %v4161_v35 = vpop.f32.mrb[29].mxu0 }
 0x5ff   :  { %v1326_v37 = vpop.f32.mrb[30].mxu0 }
 0x600   :  { %v4162_v38 = vpop.f32.mrb[31].mxu0  ;;  %4184 = vmatmul.mubr.msk.bf16.vlgmr.msra.gmra.mrb[36].mxu0 %vm1026_vm3, %v1467_v33 }
 0x601   :  { %4194 = vmatpush3.bf16.msra.mxu0 %v4474_v30  ;;  %4195 = vmatprep.mubr.msk.bf16.mxu0 %vm4814_vm2, %v4813_v16 }
 0x602   :  { %4205 = vmatprep.subr.bf16.mxu0 %v4813_v16 }
 0x603   :  { %v1369_v39 = vpop.f32.mrb[36].mxu1 }
 0x604   :  { %v1468_v40 = vpack.c.bf16 %v1369_v39, %v1369_v39  ;;  %v4167_v41 = vpop.f32.mrb[37].mxu1 }
 0x605   :  { %v1372_v42 = vpop.f32.mrb[38].mxu1  ;;  %v1415_v44 = vpop.f32.mrb[32].mxu0 }
 0x606   :  { %v4168_v43 = vpop.f32.mrb[39].mxu1  ;;  %4190 = vmatmul.mubr.msk.bf16.vlgmr.msra.gmra.mrb[44].mxu1 %vm1026_vm3, %v1468_v40  ;;  %v1469_v45 = vpack.c.bf16 %v1415_v44, %v1415_v44  ;;  %v4173_v46 = vpop.f32.mrb[33].mxu0  ;;  %v3775_v42 = vld [vmem:[%s5721_s15] ss:$0 sm:$0xff] }
 0x607   :  { %4200 = vmatpush3.bf16.msra.mxu1 %v4475_v31  ;;  %4201 = vmatprep.mubr.msk.bf16.mxu1 %vm4814_vm2, %v4813_v16  ;;  %v1418_v47 = vpop.f32.mrb[34].mxu0  ;;  %v4477_v31 = vld [vmem:[%s5723_s17 + $0x8] sm:$0xff]   ;;  %v3776_v46 = vld [vmem:[%s5722_s16] ss:$0 sm:$0xff] }
 0x608   :  { %4213 = vmatprep.subr.bf16.mxu1 %v4813_v16  ;;  %v4174_v48 = vpop.f32.mrb[35].mxu0  ;;  %4196 = vmatmul.mubr.msk.bf16.vlgmr.msra.gmra.mrb[40].mxu0 %vm1026_vm3, %v1469_v45 }
 0x609   :  { %4209 = vmatprep.mubr.msk.bf16.mxu0 %vm4814_vm2, %v4813_v16 }
 0x60b   :  { %v1461_v49 = vpop.f32.mrb[40].mxu1 }
 0x60c   :  { %v1470_v50 = vpack.c.bf16 %v1461_v49, %v1461_v49  ;;  %v4179_v51 = vpop.f32.mrb[41].mxu1 }
 0x60d   :  { %v1464_v52 = vpop.f32.mrb[42].mxu1  ;;  %v4478_v51 = vld [vmem:[#allocation16] sm:$0xff]  }
 0x60e   :  { %v4180_v53 = vpop.f32.mrb[43].mxu1  ;;  %4202 = vmatmul.mubr.msk.bf16.vlgmr.msra.gmra.mrb[48].mxu1 %vm1026_vm3, %v1470_v50  ;;  %v4479_v52 = vld [vmem:[#allocation16 + $0x8] sm:$0xff]  }
 0x60f   :  { %4229 = vmatprep.mubr.msk.bf16.mxu1 %vm4814_vm2, %v4813_v16  ;;  %4214 = vmatpush3.bf16.msra.mxu1 %v4478_v51  ;;  %v4480_v53 = vld [vmem:[#allocation16 + $0x10] sm:$0xff]  }
 0x610   :  { %4215 = vmatprep.subr.bf16.mxu1 %v4813_v16 }
 0x613   :  { %4216 = vmatpush3.bf16.msra.mxu1 %v4479_v52 }
 0x614   :  { %4217 = vmatprep.subr.bf16.mxu1 %v4813_v16 }
 0x617   :  { %4218 = vmatpush3.bf16.msra.mxu1 %v4480_v53 }
 0x618   :  { %4219 = vmatprep.subr.bf16.mxu1 %v4813_v16 }
 0x6d3   :  { %v1514_v54 = vpop.f32.mrb[36].mxu0 }
 0x6d4   :  { %v4185_v55 = vpop.f32.mrb[37].mxu0  ;;  %v1655_v60 = vsel %vm317_vm1, %v1514_v54, 0.0  ;;  %v4481_v54 = vld [vmem:[#allocation16 + $0x18] sm:$0xff]  }
 0x6d5   :  { %v1517_v56 = vpop.f32.mrb[38].mxu0  ;;  %4220 = vmatpush3.bf16.msra.mxu1 %v4481_v54  ;;  %v4482_v55 = vld [vmem:[#allocation16 + $0x20] sm:$0xff]  }
 0x6d6   :  { %v4186_v57 = vpop.f32.mrb[39].mxu0  ;;  %4221 = vmatprep.subr.bf16.mxu1 %v4813_v16  ;;  %v4483_v56 = vld [vmem:[#allocation16 + $0x28] sm:$0xff]  }
 0x6d7   :  { %v4484_v57 = vld [vmem:[#allocation16 + $0x30] sm:$0xff]  }
 0x6d9   :  { %v1563_v59 = vpop.f32.mrb[44].mxu1  ;;  %4222 = vmatpush3.bf16.msra.mxu1 %v4482_v55 }
 0x6da   :  { %v1656_v61 = vsel %vm317_vm1, %v1563_v59, 0.0  ;;  %v4191_v1 = vpop.f32.mrb[45].mxu1  ;;  %4223 = vmatprep.subr.bf16.mxu1 %v4813_v16  ;;  %v4485_v59 = vld [vmem:[#allocation16 + $0x38] sm:$0xff]  }
 0x6db   :  { %v1657_v2 = vadd.f32 %v1656_v61, %v1655_v60  ;;  %v1566_v3 = vpop.f32.mrb[46].mxu1  ;;  %v1606_v6 = vpop.f32.mrb[40].mxu0  ;;  %v3777_v60 = vld [vmem:[%s5724_s18] ss:$0 sm:$0xff] }
 0x6dc   :  { %v4192_v4 = vpop.f32.mrb[47].mxu1  ;;  %v4197_v7 = vpop.f32.mrb[41].mxu0  ;;  %v1658_v0 = vsel %vm317_vm1, %v1606_v6, 0.0 }
 0x6dd   :  { %v1668_v5 = vadd.f32 %v3774_v62, %v1657_v2  ;;  %v1609_v9 = vpop.f32.mrb[42].mxu0  ;;  %4224 = vmatpush3.bf16.msra.mxu1 %v4483_v56  ;;  %v3790_v56 = vld [vmem:[%s5780_s10] ss:$0 sm:$0xff] }
 0x6de   :  { %v4198_v10 = vpop.f32.mrb[43].mxu0  ;;  %4225 = vmatprep.subr.bf16.mxu1 %v4813_v16 }
 0x6df   :  { %v1670_v8 = vadd.f32 %v1668_v5, %v5183_v29 }
 0x6e1   :  { %v1649_v11 = vpop.f32.mrb[48].mxu1  ;;  %v1674_v12 = vsel %vm317_vm1, %v1670_v8, 0.0  ;;  %4226 = vmatpush3.bf16.msra.mxu1 %v4484_v57 }
 0x6e2   :  { %v1659_v13 = vsel %vm317_vm1, %v1649_v11, 0.0  ;;  %v4203_v14 = vpop.f32.mrb[49].mxu1  ;;  %1675 = vadd.xlane.f32.xlu0 %v1674_v12  ;;  %4227 = vmatprep.subr.bf16.mxu1 %v4813_v16 }
 0x6e3   :  { %v1660_v15 = vadd.f32 %v1659_v13, %v1658_v0  ;;  %v1652_v18 = vpop.f32.mrb[50].mxu1 }
 0x6e4   :  { %v4204_v19 = vpop.f32.mrb[51].mxu1 }
 0x6e5   :  { %v1669_v20 = vadd.f32 %v3774_v62, %v1660_v15  ;;  %4228 = vmatpush3.bf16.msra.mxu1 %v4485_v59 }
 0x6e6   :  { %4265 = vmatprep.subr.bf16.mxu1 %v4813_v16 }
 0x6e7   :  { %v1671_v21 = vadd.f32 %v1669_v20, %v5197_v36  ;;  %v4476_v36 = vld [vmem:[%s5723_s17] sm:$0xff]  }
 0x6e8   :  { %4206 = vmatpush3.bf16.msra.mxu0 %v4476_v36 }
 0x6e9   :  { %v1677_v22 = vsel %vm317_vm1, %v1671_v21, 0.0  ;;  %4207 = vmatprep.subr.bf16.mxu0 %v4813_v16 }
 0x6ea   :  { %1678 = vadd.xlane.f32.xlu1 %v1677_v22 }
 0x6ec   :  { %4208 = vmatpush3.bf16.msra.mxu0 %v4477_v31 }
 0x6ed   :  { %4233 = vmatprep.subr.bf16.mxu0 %v4813_v16 }
 0x76f   :  { %v1676_v29 = vpop.xlane.xlu0 %1675 }
 0x770   :  { %v1680_v23 = vmul.f32 0.03125, %v1676_v29 }
 0x772   :  { %v1682_v58 = vsub.f32 %v1670_v8, %v1680_v23 }
 0x774   :  { %v1684_v24 = vmul.f32 %v1682_v58, %v1682_v58 }
 0x776   :  { %v1686_v25 = vsel %vm317_vm1, %v1684_v24, 0.0 }
 0x777   :  { %1687 = vadd.xlane.f32.xlu0 %v1686_v25  ;;  %v1679_v63 = vpop.xlane.xlu1 %1678 }
 0x778   :  { %v1681_v26 = vmul.f32 0.03125, %v1679_v63 }
 0x77a   :  { %v1683_v27 = vsub.f32 %v1671_v21, %v1681_v26 }
 0x77c   :  { %v1685_v28 = vmul.f32 %v1683_v27, %v1683_v27 }
 0x77e   :  { %v1689_v30 = vsel %vm317_vm1, %v1685_v28, 0.0 }
 0x77f   :  { %1690 = vadd.xlane.f32.xlu1 %v1689_v30 }
 0x804   :  { %v1688_v32 = vpop.xlane.xlu0 %1687 }
 0x805   :  { %v1692_v33 = vmul.f32 0.03125, %v1688_v32 }
 0x807   :  { %v1694_v35 = vadd.f32 1e-12, %v1692_v33 }
 0x809   :  { %4534 = vrsqrt.f32 %v1694_v35 }
 0x80c   :  { %v1691_v37 = vpop.xlane.xlu1 %1690 }
 0x80d   :  { %v1693_v38 = vmul.f32 0.03125, %v1691_v37 }
 0x80f   :  { %v1695_v39 = vadd.f32 1e-12, %v1693_v38 }
 0x811   :  { %4536 = vrsqrt.f32 %v1695_v39 }
 0x813   :  { %v4535_v40 = vpop.eup %4534 }
 0x814   :  { %v1698_v41 = vmul.f32 %v4535_v40, %v1682_v58  ;;  %v3781_v58 = vld [vmem:[%s5726_s20] ss:$0 sm:$0xff] }
 0x816   :  { %v1706_v44 = vmul.f32 %v3775_v42, %v1698_v41 }
 0x818   :  { %v5395_v48 = vadd.f32 %v3776_v46, %v1706_v44 }
 0x81b   :  { %v4537_v43 = vpop.eup %4536 }
 0x81c   :  { %v1699_v45 = vmul.f32 %v4537_v43, %v1683_v27 }
 0x81e   :  { %v1707_v47 = vmul.f32 %v3775_v42, %v1699_v45  ;;  %v4486_v45 = vld [vmem:[#allocation11 + $0x20] sm:$0xff]  }
 0x820   :  { %v5397_v49 = vadd.f32 %v3776_v46, %v1707_v47  ;;  %v4487_v46 = vld [vmem:[#allocation13 + $0x20] sm:$0xff]   ;;  %v4488_v47 = vld [vmem:[#allocation11 + $0x28] sm:$0xff]  }
 0x822   :  { %v1716_v50 = vpack.c.bf16 %v5397_v49, %v5395_v48 }
 0x824   :  { %4210 = vmatmul.mubr.msk.bf16.vlgmr.msra.gmra.mrb[44].mxu0 %vm317_vm1, %v1716_v50 }
 0x825   :  { %4237 = vmatprep.mubr.msk.bf16.mxu0 %vm4814_vm2, %v4813_v16  ;;  %4234 = vmatpush3.bf16.msra.mxu0 %v4486_v45 }
 0x826   :  { %4235 = vmatprep.subr.bf16.mxu0 %v4813_v16 }
 0x829   :  { %4236 = vmatpush3.bf16.msra.mxu0 %v4488_v47 }
 0x82a   :  { %4241 = vmatprep.subr.bf16.mxu0 %v4813_v16 }
 0x8f7   :  { %v1777_v61 = vpop.f32.mrb[44].mxu0 }
 0x8f8   :  { %v1778_v62 = vadd.f32 %v3777_v60, %v1777_v61  ;;  %v4211_v1 = vpop.f32.mrb[45].mxu0 }
 0x8f9   :  { %v1780_v2 = vpop.f32.mrb[46].mxu0 }
 0x8fa   :  { %v1784_v3 = vmul.f32 %v1778_v62, %v1778_v62  ;;  %v1781_v4 = vadd.f32 %v3777_v60, %v1780_v2  ;;  %v4212_v5 = vpop.f32.mrb[47].mxu0  ;;  %v3791_v60 = vld [vmem:[%s5728_s22] ss:$0 sm:$0xff] }
 0x8fb   :  { %v4490_v2 = vld [vmem:[#allocation11 + $0x30] sm:$0xff]   ;;  %v4491_v5 = vld [vmem:[#allocation11 + $0x38] sm:$0xff]  }
 0x8fc   :  { %v1786_v6 = vmul.f32 %v1784_v3, %v1778_v62  ;;  %v1785_v7 = vmul.f32 %v1781_v4, %v1781_v4 }
 0x8fe   :  { %v1788_v8 = vmul.f32 0.044715, %v1786_v6  ;;  %v1787_v9 = vmul.f32 %v1785_v7, %v1781_v4  ;;  %v4492_v7 = vld [vmem:[%s5776_s28 + $0x20] sm:$0xff]  }
 0x900   :  { %v1790_v10 = vadd.f32 %v1788_v8, %v1778_v62  ;;  %v1789_v11 = vmul.f32 0.044715, %v1787_v9  ;;  %v4493_v9 = vld [vmem:[%s5776_s28 + $0x28] sm:$0xff]  }
 0x902   :  { %v1792_v12 = vmul.f32 0.7978846, %v1790_v10  ;;  %v1791_v0 = vadd.f32 %v1789_v11, %v1781_v4  ;;  %v4494_v10 = vld [vmem:[#allocation13 + $0x30] sm:$0xff]   ;;  %v4495_v11 = vld [vmem:[#allocation13 + $0x38] sm:$0xff]  }
 0x904   :  { %4538 = vtanh.f32 %v1792_v12  ;;  %v1793_v13 = vmul.f32 0.7978846, %v1791_v0  ;;  %v4496_v12 = vld [vmem:[%s5776_s28 + $0x30] sm:$0xff]   ;;  %v4497_v0 = vld [vmem:[%s5776_s28 + $0x38] sm:$0xff]  }
 0x906   :  { %4540 = vtanh.f32 %v1793_v13  ;;  %v3816_v13 = vld [vmem:[%s5777_s21 + $0x2] ss:$0 sm:$0xff] }
 0x90e   :  { %v4539_v14 = vpop.eup %4538 }
 0x90f   :  { %v1796_v15 = vadd.f32 1.0, %v4539_v14 }
 0x910   :  { %v4541_v18 = vpop.eup %4540 }
 0x911   :  { %v1798_v19 = vmul.f32 0.5, %v1796_v15  ;;  %v1797_v20 = vadd.f32 1.0, %v4541_v18 }
 0x913   :  { %v1799_v21 = vmul.f32 0.5, %v1797_v20  ;;  %v1800_v22 = vmul.f32 %v1798_v19, %v1778_v62 }
 0x915   :  { %v1801_v29 = vmul.f32 %v1799_v21, %v1781_v4 }
 0x917   :  { %v1802_v23 = vpack.c.bf16 %v1801_v29, %v1800_v22 }
 0x919   :  { %4230 = vmatmul.mubr.bf16.vlgmr.msra.gmra.mrb[52].mxu1 %v1802_v23 }
 0x91a   :  { %4269 = vmatprep.mubr.msk.bf16.mxu1 %vm4814_vm2, %v4813_v16  ;;  %4266 = vmatpush3.bf16.msra.mxu1 %v4487_v46 }
 0x91b   :  { %4267 = vmatprep.subr.bf16.mxu1 %v4813_v16 }
 0x9ec   :  { %v1908_v24 = vpop.f32.mrb[52].mxu1 }
 0x9ed   :  { %v1909_v25 = vadd.f32 %v3781_v58, %v1908_v24  ;;  %v4231_v63 = vpop.f32.mrb[53].mxu1  ;;  %v3806_v24 = vld [vmem:[%s5778_s29 + $0x2] ss:$0 sm:$0xff] }
 0x9ee   :  { %v1911_v26 = vpop.f32.mrb[54].mxu1 }
 0x9ef   :  { %v1912_v27 = vadd.f32 %v3781_v58, %v1911_v26  ;;  %v4232_v28 = vpop.f32.mrb[55].mxu1  ;;  %v1915_v30 = vadd.f32 %v1909_v25, %v5395_v48  ;;  %v4489_v48 = vld [vmem:[#allocation13 + $0x28] sm:$0xff]  }
 0x9f0   :  { %4268 = vmatpush3.bf16.msra.mxu1 %v4489_v48 }
 0x9f1   :  { %v1919_v36 = vsel %vm317_vm1, %v1915_v30, 0.0  ;;  %v1916_v31 = vadd.f32 %v1912_v27, %v5397_v49  ;;  %4281 = vmatprep.subr.bf16.mxu1 %v4813_v16 }
 0x9f2   :  { %1920 = vadd.xlane.f32.xlu0 %v1919_v36 }
 0x9f3   :  { %v1922_v32 = vsel %vm317_vm1, %v1916_v31, 0.0 }
 0x9f4   :  { %1923 = vadd.xlane.f32.xlu1 %v1922_v32 }
 0xa7f   :  { %v1921_v33 = vpop.xlane.xlu0 %1920 }
 0xa80   :  { %v1925_v35 = vmul.f32 0.03125, %v1921_v33 }
 0xa81   :  { %v1924_v37 = vpop.xlane.xlu1 %1923 }
 0xa82   :  { %v1927_v38 = vsub.f32 %v1915_v30, %v1925_v35  ;;  %v1926_v39 = vmul.f32 0.03125, %v1924_v37 }
 0xa84   :  { %v1928_v40 = vsub.f32 %v1916_v31, %v1926_v39  ;;  %v1929_v41 = vmul.f32 %v1927_v38, %v1927_v38 }
 0xa86   :  { %v1931_v42 = vsel %vm317_vm1, %v1929_v41, 0.0  ;;  %v1930_v43 = vmul.f32 %v1928_v40, %v1928_v40 }
 0xa87   :  { %1932 = vadd.xlane.f32.xlu0 %v1931_v42 }
 0xa88   :  { %v1934_v44 = vsel %vm317_vm1, %v1930_v43, 0.0 }
 0xa89   :  { %1935 = vadd.xlane.f32.xlu1 %v1934_v44 }
 0xb14   :  { %v1933_v49 = vpop.xlane.xlu0 %1932 }
 0xb15   :  { %v1937_v50 = vmul.f32 0.03125, %v1933_v49 }
 0xb16   :  { %v1936_v51 = vpop.xlane.xlu1 %1935 }
 0xb17   :  { %v1939_v52 = vadd.f32 1e-12, %v1937_v50  ;;  %v1938_v53 = vmul.f32 0.03125, %v1936_v51 }
 0xb19   :  { %4542 = vrsqrt.f32 %v1939_v52  ;;  %v1940_v54 = vadd.f32 1e-12, %v1938_v53 }
 0xb1b   :  { %4544 = vrsqrt.f32 %v1940_v54 }
 0xb23   :  { %v4543_v55 = vpop.eup %4542 }
 0xb24   :  { %v1943_v57 = vmul.f32 %v4543_v55, %v1927_v38 }
 0xb25   :  { %v4545_v59 = vpop.eup %4544 }
 0xb26   :  { %v1951_v61 = vmul.f32 %v3790_v56, %v1943_v57  ;;  %v1944_v62 = vmul.f32 %v4545_v59, %v1928_v40  ;;  %v3826_v40 = vld [vmem:[%s5718_s12 + $0x2] ss:$0 sm:$0xff] }
 0xb28   :  { %v5436_v1 = vadd.f32 %v3791_v60, %v1951_v61  ;;  %v1952_v3 = vmul.f32 %v3790_v56, %v1944_v62 }
 0xb2a   :  { %v5440_v4 = vpack.c.bf16 %v5436_v1, %v5436_v1  ;;  %v5446_v6 = vadd.f32 %v3791_v60, %v1952_v3  ;;  %v3817_v3 = vld [vmem:[%s5777_s21 + $0x3] ss:$0 sm:$0xff] }
 0xb2c   :  { %4238 = vmatmul.mubr.msk.bf16.vlgmr.msra.gmra.mrb[48].mxu0 %vm317_vm1, %v5440_v4  ;;  %4270 = vmatmul.mubr.msk.bf16.vlgmr.msra.gmra.mrb[56].mxu1 %vm317_vm1, %v5440_v4  ;;  %v1962_v8 = vpack.c.bf16 %v5446_v6, %v5446_v6 }
 0xb2d   :  { %4242 = vmatpush3.bf16.msra.mxu0 %v4490_v2  ;;  %4282 = vmatpush3.bf16.msra.mxu1 %v4487_v46 }
 0xb2e   :  { %4243 = vmatprep.subr.bf16.mxu0 %v4813_v16  ;;  %4283 = vmatprep.subr.bf16.mxu1 %v4813_v16 }
 0xb2f   :  { %4245 = vmatprep.mubr.msk.bf16.mxu0 %vm4814_vm2, %v4813_v16  ;;  %4285 = vmatprep.mubr.msk.bf16.mxu1 %vm4814_vm2, %v4813_v16 }
 0xb31   :  { %4244 = vmatpush3.bf16.msra.mxu0 %v4491_v5  ;;  %4284 = vmatpush3.bf16.msra.mxu1 %v4489_v48 }
 0xb32   :  { %4249 = vmatprep.subr.bf16.mxu0 %v4813_v16  ;;  %4297 = vmatprep.subr.bf16.mxu1 %v4813_v16 }
 0xb34   :  { %4246 = vmatmul.mubr.msk.bf16.vlgmr.msra.gmra.mrb[52].mxu0 %vm317_vm1, %v5440_v4  ;;  %4286 = vmatmul.mubr.msk.bf16.vlgmr.msra.gmra.mrb[60].mxu1 %vm317_vm1, %v1962_v8 }
 0xb35   :  { %4250 = vmatpush3.bf16.msra.mxu0 %v4486_v45  ;;  %4298 = vmatpush3.bf16.msra.mxu1 %v4492_v7 }
 0xb36   :  { %4251 = vmatprep.subr.bf16.mxu0 %v4813_v16  ;;  %4299 = vmatprep.subr.bf16.mxu1 %v4813_v16 }
 0xb37   :  { %4253 = vmatprep.mubr.msk.bf16.mxu0 %vm4814_vm2, %v4813_v16  ;;  %4301 = vmatprep.mubr.msk.bf16.mxu1 %vm4814_vm2, %v4813_v16 }
 0xb39   :  { %4252 = vmatpush3.bf16.msra.mxu0 %v4488_v47  ;;  %4300 = vmatpush3.bf16.msra.mxu1 %v4493_v9 }
 0xb3a   :  { %4257 = vmatprep.subr.bf16.mxu0 %v4813_v16  ;;  %4313 = vmatprep.subr.bf16.mxu1 %v4813_v16 }
 0xb3c   :  { %4254 = vmatmul.mubr.msk.bf16.vlgmr.msra.gmra.mrb[56].mxu0 %vm317_vm1, %v1962_v8  ;;  %4302 = vmatmul.mubr.msk.bf16.vlgmr.msra.gmra.mrb[64].mxu1 %vm317_vm1, %v5440_v4 }
 0xb3d   :  { %4258 = vmatpush3.bf16.msra.mxu0 %v4490_v2  ;;  %4314 = vmatpush3.bf16.msra.mxu1 %v4492_v7 }
 0xb3e   :  { %4259 = vmatprep.subr.bf16.mxu0 %v4813_v16  ;;  %4315 = vmatprep.subr.bf16.mxu1 %v4813_v16 }
 0xb3f   :  { %4261 = vmatprep.mubr.msk.bf16.mxu0 %vm4814_vm2, %v4813_v16  ;;  %4317 = vmatprep.mubr.msk.bf16.mxu1 %vm4814_vm2, %v4813_v16 }
 0xb41   :  { %4260 = vmatpush3.bf16.msra.mxu0 %v4491_v5  ;;  %4316 = vmatpush3.bf16.msra.mxu1 %v4493_v9 }
 0xb42   :  { %4273 = vmatprep.subr.bf16.mxu0 %v4813_v16  ;;  %4329 = vmatprep.subr.bf16.mxu1 %v4813_v16 }
 0xb44   :  { %4262 = vmatmul.mubr.msk.bf16.vlgmr.msra.gmra.mrb[60].mxu0 %vm317_vm1, %v1962_v8  ;;  %4318 = vmatmul.mubr.msk.bf16.vlgmr.msra.gmra.mrb[68].mxu1 %vm317_vm1, %v1962_v8 }
 0xb45   :  { %4274 = vmatpush3.bf16.msra.mxu0 %v4494_v10  ;;  %4277 = vmatprep.mubr.msk.bf16.mxu0 %vm4814_vm2, %v4813_v16 }
 0xb46   :  { %4275 = vmatprep.subr.bf16.mxu0 %v4813_v16  ;;  %4331 = vmatprep.mubr.msk.bf16.mxu1 %vm4814_vm2, %v4813_v16 }
 0xb49   :  { %4276 = vmatpush3.bf16.msra.mxu0 %v4495_v11 }
 0xb4a   :  { %4289 = vmatprep.subr.bf16.mxu0 %v4813_v16 }
 0xb4c   :  { %4278 = vmatmul.mubr.msk.bf16.vlgmr.msra.gmra.mrb[64].mxu0 %vm317_vm1, %v5440_v4 }
 0xb4d   :  { %4290 = vmatpush3.bf16.msra.mxu0 %v4494_v10  ;;  %4293 = vmatprep.mubr.msk.bf16.mxu0 %vm4814_vm2, %v4813_v16 }
 0xb4e   :  { %4291 = vmatprep.subr.bf16.mxu0 %v4813_v16 }
 0xb51   :  { %4292 = vmatpush3.bf16.msra.mxu0 %v4495_v11  ;;  %v3807_v11 = vld [vmem:[%s5778_s29 + $0x3] ss:$0 sm:$0xff] }
 0xb52   :  { %4305 = vmatprep.subr.bf16.mxu0 %v4813_v16 }
 0xb54   :  { %4294 = vmatmul.mubr.msk.bf16.vlgmr.msra.gmra.mrb[68].mxu0 %vm317_vm1, %v1962_v8 }
 0xb55   :  { %4306 = vmatpush3.bf16.msra.mxu0 %v4496_v12  ;;  %4309 = vmatprep.mubr.msk.bf16.mxu0 %vm4814_vm2, %v4813_v16 }
 0xb56   :  { %4307 = vmatprep.subr.bf16.mxu0 %v4813_v16 }
 0xb59   :  { %4308 = vmatpush3.bf16.msra.mxu0 %v4497_v0 }
 0xb5a   :  { %4321 = vmatprep.subr.bf16.mxu0 %v4813_v16 }
 0xb5c   :  { %4310 = vmatmul.mubr.msk.bf16.vlgmr.msra.gmra.mrb[72].mxu0 %vm317_vm1, %v5440_v4 }
 0xb5d   :  { %4322 = vmatpush3.bf16.msra.mxu0 %v4496_v12  ;;  %4325 = vmatprep.mubr.msk.bf16.mxu0 %vm4814_vm2, %v4813_v16 }
 0xb5e   :  { %4323 = vmatprep.subr.bf16.mxu0 %v4813_v16 }
 0xb61   :  { %4324 = vmatpush3.bf16.msra.mxu0 %v4497_v0 }
 0xb62   :  { %4335 = vmatprep.subr.bf16.mxu0 %v4813_v16 }
 0xb64   :  { %4326 = vmatmul.mubr.msk.bf16.vlgmr.msra.gmra.mrb[76].mxu0 %vm317_vm1, %v1962_v8 }
 0xb65   :  { %4337 = vmatprep.mubr.msk.bf16.mxu0 %vm4814_vm2, %v4813_v16 }
 0xbff   :  { %v2065_v14 = vpop.f32.mrb[48].mxu0  ;;  %v2264_v15 = vpop.f32.mrb[56].mxu1 }
 0xc00   :  { %v2265_v18 = vadd.f32 %v3816_v13, %v2264_v15  ;;  %v4239_v19 = vpop.f32.mrb[49].mxu0  ;;  %v4271_v20 = vpop.f32.mrb[57].mxu1  ;;  %v2066_v63 = vadd.f32 %v3806_v24, %v2065_v14 }
 0xc01   :  { %v2068_v21 = vpop.f32.mrb[50].mxu0  ;;  %v2267_v22 = vpop.f32.mrb[58].mxu1 }
 0xc02   :  { %v2602_v29 = vpack.c.bf16 %v2265_v18, %v2265_v18  ;;  %v4240_v23 = vpop.f32.mrb[51].mxu0  ;;  %v4272_v58 = vpop.f32.mrb[59].mxu1  ;;  %v2598_v33 = vpack.c.bf16 %v2066_v63, %v2066_v63 }
 0xc04   :  { %v2610_v25 = vsel %vm1026_vm3, %v2602_v29, 0  ;;  %v3827_v29 = vld [vmem:[%s5718_s12 + $0x3] ss:$0 sm:$0xff] }
 0xc05   :  { %4330 = vmatpush3.bf16.xpose.msra.mxu1 %v2610_v25 }
 0xc06   :  { %4341 = vmatprep.subr.bf16.mxu1 %v4813_v16 }
 0xc07   :  { %v2117_v26 = vpop.f32.mrb[52].mxu0  ;;  %v2356_v27 = vpop.f32.mrb[60].mxu1 }
 0xc08   :  { %v2357_v28 = vadd.f32 %v3816_v13, %v2356_v27  ;;  %v4247_v30 = vpop.f32.mrb[53].mxu0  ;;  %v4287_v36 = vpop.f32.mrb[61].mxu1  ;;  %v2118_v0 = vadd.f32 %v3807_v11, %v2117_v26 }
 0xc09   :  { %v2120_v31 = vpop.f32.mrb[54].mxu0  ;;  %v2359_v32 = vpop.f32.mrb[62].mxu1 }
 0xc0a   :  { %v2604_v35 = vpack.c.bf16 %v2357_v28, %v2357_v28  ;;  %v4248_v37 = vpop.f32.mrb[55].mxu0  ;;  %v4288_v38 = vpop.f32.mrb[63].mxu1  ;;  %v2599_v19 = vpack.c.bf16 %v2118_v0, %v2118_v0 }
 0xc0c   :  { %v2702_v39 = vsel %vm1026_vm3, %v2604_v35, 0  ;;  %4332 = vmatmul.mubr.msk.bf16.vlgmr.msra.gmra.mrb[72].mxu1 %vm1026_vm3, %v2598_v33 }
 0xc0d   :  { %4342 = vmatpush3.bf16.xpose.msra.mxu1 %v2702_v39  ;;  %4343 = vmatprep.mubr.msk.bf16.mxu1 %vm4814_vm2, %v4813_v16 }
 0xc0e   :  { %4353 = vmatprep.subr.bf16.mxu1 %v4813_v16 }
 0xc0f   :  { %v2160_v41 = vpop.f32.mrb[56].mxu0  ;;  %v2460_v42 = vpop.f32.mrb[64].mxu1 }
 0xc10   :  { %v2161_v43 = vadd.f32 %v3806_v24, %v2160_v41  ;;  %v2461_v44 = vadd.f32 %v3826_v40, %v2460_v42  ;;  %v4255_v45 = vpop.f32.mrb[57].mxu0  ;;  %v4303_v46 = vpop.f32.mrb[65].mxu1 }
 0xc11   :  { %v2163_v47 = vpop.f32.mrb[58].mxu0  ;;  %v2463_v48 = vpop.f32.mrb[66].mxu1 }
 0xc12   :  { %v2600_v49 = vpack.c.bf16 %v2161_v43, %v2161_v43  ;;  %v2846_v50 = vpack.c.bf16 %v2461_v44, %v2461_v44  ;;  %v4256_v51 = vpop.f32.mrb[59].mxu0  ;;  %v4304_v52 = vpop.f32.mrb[67].mxu1 }
 0xc14   :  { %v2854_v53 = vsel %vm1285_vm4, %v2846_v50, 0  ;;  %4344 = vmatmul.mubr.msk.bf16.vlgmr.msra.gmra.mrb[76].mxu1 %vm1026_vm3, %v2600_v49 }
 0xc15   :  { %4354 = vmatpush3.bf16.msra.mxu1 %v2854_v53  ;;  %4355 = vmatprep.mubr.msk.bf16.mxu1 %vm4814_vm2, %v4813_v16 }
 0xc16   :  { %4365 = vmatprep.subr.bf16.mxu1 %v4813_v16 }
 0xc17   :  { %v2200_v54 = vpop.f32.mrb[60].mxu0  ;;  %v2552_v55 = vpop.f32.mrb[68].mxu1 }
 0xc18   :  { %v5541_v56 = vadd.f32 %v3826_v40, %v2552_v55  ;;  %v4263_v57 = vpop.f32.mrb[61].mxu0  ;;  %v4319_v59 = vpop.f32.mrb[69].mxu1  ;;  %v2201_v23 = vadd.f32 %v3807_v11, %v2200_v54 }
 0xc19   :  { %v2203_v60 = vpop.f32.mrb[62].mxu0  ;;  %v2555_v61 = vpop.f32.mrb[70].mxu1 }
 0xc1a   :  { %v4264_v62 = vpop.f32.mrb[63].mxu0  ;;  %v4320_v2 = vpop.f32.mrb[71].mxu1  ;;  %v2601_v26 = vpack.c.bf16 %v2201_v23, %v2201_v23 }
 0xc1f   :  { %v2316_v4 = vpop.f32.mrb[64].mxu0 }
 0xc20   :  { %v2317_v5 = vadd.f32 %v3817_v3, %v2316_v4  ;;  %v4279_v7 = vpop.f32.mrb[65].mxu0 }
 0xc21   :  { %v2319_v8 = vpop.f32.mrb[66].mxu0 }
 0xc22   :  { %v2603_v9 = vpack.c.bf16 %v2317_v5, %v2317_v5  ;;  %v4280_v10 = vpop.f32.mrb[67].mxu0 }
 0xc24   :  { %v2656_v12 = vsel %vm1026_vm3, %v2603_v9, 0 }
 0xc25   :  { %4336 = vmatpush3.bf16.xpose.msra.mxu0 %v2656_v12 }
 0xc26   :  { %4347 = vmatprep.subr.bf16.mxu0 %v4813_v16 }
 0xc27   :  { %v2396_v13 = vpop.f32.mrb[68].mxu0 }
 0xc28   :  { %v2397_v14 = vadd.f32 %v3817_v3, %v2396_v13  ;;  %v4295_v15 = vpop.f32.mrb[69].mxu0 }
 0xc29   :  { %v2399_v18 = vpop.f32.mrb[70].mxu0 }
 0xc2a   :  { %v2605_v20 = vpack.c.bf16 %v2397_v14, %v2397_v14  ;;  %v4296_v21 = vpop.f32.mrb[71].mxu0 }
 0xc2c   :  { %v2748_v22 = vsel %vm1026_vm3, %v2605_v20, 0  ;;  %4338 = vmatmul.mubr.msk.bf16.vlgmr.msra.gmra.mrb[80].mxu0 %vm1026_vm3, %v2599_v19 }
 0xc2d   :  { %4348 = vmatpush3.bf16.xpose.msra.mxu0 %v2748_v22  ;;  %4349 = vmatprep.mubr.msk.bf16.mxu0 %vm4814_vm2, %v4813_v16 }
 0xc2e   :  { %4359 = vmatprep.subr.bf16.mxu0 %v4813_v16 }
 0xc2f   :  { %v2512_v58 = vpop.f32.mrb[72].mxu0 }
 0xc30   :  { %v2513_v24 = vadd.f32 %v3827_v29, %v2512_v58  ;;  %v4311_v25 = vpop.f32.mrb[73].mxu0 }
 0xc31   :  { %v2515_v63 = vpop.f32.mrb[74].mxu0 }
 0xc32   :  { %v2847_v27 = vpack.c.bf16 %v2513_v24, %v2513_v24  ;;  %v4312_v28 = vpop.f32.mrb[75].mxu0 }
 0xc34   :  { %v2900_v30 = vsel %vm1285_vm4, %v2847_v27, 0  ;;  %4350 = vmatmul.mubr.msk.bf16.vlgmr.msra.gmra.mrb[84].mxu0 %vm1026_vm3, %v2601_v26  ;;  %v2848_v26 = vpack.c.bf16 %v5541_v56, %v5541_v56 }
 0xc35   :  { %4360 = vmatpush3.bf16.msra.mxu0 %v2900_v30  ;;  %4361 = vmatprep.mubr.msk.bf16.mxu0 %vm4814_vm2, %v4813_v16 }
 0xc36   :  { %4371 = vmatprep.subr.bf16.mxu0 %v4813_v16  ;;  %v2946_v30 = vsel %vm1285_vm4, %v2848_v26, 0 }
 0xc37   :  { %v2592_v36 = vpop.f32.mrb[76].mxu0 }
 0xc38   :  { %v5564_v31 = vadd.f32 %v3827_v29, %v2592_v36  ;;  %v4327_v32 = vpop.f32.mrb[77].mxu0 }
 0xc39   :  { %v2595_v33 = vpop.f32.mrb[78].mxu0 }
 0xc3a   :  { %v4328_v35 = vpop.f32.mrb[79].mxu0 }
 0xcdf   :  { %v2646_v37 = vpop.f32.mrb[72].mxu1 }
 0xce0   :  { %v2790_v38 = vmul.f32 0.25, %v2646_v37  ;;  %v4333_v39 = vpop.f32.mrb[73].mxu1 }
 0xce1   :  { %v2649_v40 = vpop.f32.mrb[74].mxu1 }
 0xce2   :  { %v4334_v41 = vpop.f32.mrb[75].mxu1  ;;  %v2794_v42 = vadd.f32 %v2790_v38, %v5316_v17  ;;  %v2849_v38 = vpack.c.bf16 %v5564_v31, %v5564_v31  ;;  %v4498_v31 = vld [vmem:[#allocation14 + $0x10] sm:$0xff]  }
 0xce4   :  { %v2798_v43 = vsel %vm1229_vm5, %v2794_v42, -inf  ;;  %v2992_v41 = vsel %vm1285_vm4, %v2849_v38, 0 }
 0xce5   :  { %2799 = vmax.xlane.f32.xlu0 %v2798_v43 }
 0xce7   :  { %v2738_v44 = vpop.f32.mrb[76].mxu1 }
 0xce8   :  { %v2792_v45 = vmul.f32 0.25, %v2738_v44  ;;  %v4345_v46 = vpop.f32.mrb[77].mxu1 }
 0xce9   :  { %v2741_v47 = vpop.f32.mrb[78].mxu1 }
 0xcea   :  { %v4346_v48 = vpop.f32.mrb[79].mxu1  ;;  %v2796_v49 = vadd.f32 %v2792_v45, %v5321_v34  ;;  %v4499_v45 = vld [vmem:[#allocation14 + $0x18] sm:$0xff]  }
 0xcec   :  { %v2804_v50 = vsel %vm1229_vm5, %v2796_v49, -inf }
 0xced   :  { %2805 = vmax.xlane.f32.xlu0 %v2804_v50 }
 0xcff   :  { %v2692_v51 = vpop.f32.mrb[80].mxu0 }
 0xd00   :  { %v2791_v52 = vmul.f32 0.25, %v2692_v51  ;;  %v4339_v53 = vpop.f32.mrb[81].mxu0 }
 0xd01   :  { %v2695_v54 = vpop.f32.mrb[82].mxu0 }
 0xd02   :  { %v4340_v55 = vpop.f32.mrb[83].mxu0  ;;  %v2795_v57 = vadd.f32 %v2791_v52, %v5316_v17 }
 0xd04   :  { %v2801_v59 = vsel %vm1229_vm5, %v2795_v57, -inf }
 0xd05   :  { %2802 = vmax.xlane.f32.xlu1 %v2801_v59 }
 0xd07   :  { %v2784_v60 = vpop.f32.mrb[84].mxu0 }
 0xd08   :  { %v2793_v61 = vmul.f32 0.25, %v2784_v60  ;;  %v4351_v62 = vpop.f32.mrb[85].mxu0 }
 0xd09   :  { %v2787_v2 = vpop.f32.mrb[86].mxu0 }
 0xd0a   :  { %v4352_v3 = vpop.f32.mrb[87].mxu0  ;;  %v2797_v4 = vadd.f32 %v2793_v61, %v5321_v34 }
 0xd0c   :  { %v2807_v5 = vsel %vm1229_vm5, %v2797_v4, -inf }
 0xd0d   :  { %2808 = vmax.xlane.f32.xlu1 %v2807_v5 }
 0xd72   :  { %v2800_v7 = vpop.xlane.xlu0 %2799 }
 0xd73   :  { %v2810_v8 = vsub.f32 %v2794_v42, %v2800_v7 }
 0xd75   :  { %v2814_v9 = vmul.f32 1.442695, %v2810_v8 }
 0xd77   :  { %4546 = vpow2.f32 %v2814_v9 }
 0xd7a   :  { %v2806_v10 = vpop.xlane.xlu0 %2805 }
 0xd7b   :  { %v2812_v11 = vsub.f32 %v2796_v49, %v2806_v10 }
 0xd7d   :  { %v2818_v17 = vmul.f32 1.442695, %v2812_v11 }
 0xd7f   :  { %4548 = vpow2.f32 %v2818_v17 }
 0xd81   :  { %v4547_v12 = vpop.eup %4546 }
 0xd82   :  { %v2822_v0 = vsel %vm1229_vm5, %v4547_v12, 0.0 }
 0xd83   :  { %2823 = vadd.xlane.f32.xlu0 %v2822_v0 }
 0xd89   :  { %v4549_v13 = vpop.eup %4548 }
 0xd8a   :  { %v2828_v14 = vsel %vm1229_vm5, %v4549_v13, 0.0 }
 0xd8b   :  { %2829 = vadd.xlane.f32.xlu0 %v2828_v14 }
 0xd92   :  { %v2803_v34 = vpop.xlane.xlu1 %2802 }
 0xd93   :  { %v2811_v15 = vsub.f32 %v2795_v57, %v2803_v34 }
 0xd95   :  { %v2816_v18 = vmul.f32 1.442695, %v2811_v15 }
 0xd97   :  { %4550 = vpow2.f32 %v2816_v18  ;;  %v3851_v18 = vld [vmem:[%s5720_s14 + $0x1] ss:$0 sm:$0xff] }
 0xd9a   :  { %v2809_v19 = vpop.xlane.xlu1 %2808 }
 0xd9b   :  { %v2813_v20 = vsub.f32 %v2797_v4, %v2809_v19 }
 0xd9d   :  { %v2820_v21 = vmul.f32 1.442695, %v2813_v20 }
 0xd9f   :  { %4552 = vpow2.f32 %v2820_v21 }
 0xda1   :  { %v4551_v22 = vpop.eup %4550 }
 0xda2   :  { %v2825_v29 = vsel %vm1229_vm5, %v4551_v22, 0.0 }
 0xda3   :  { %2826 = vadd.xlane.f32.xlu1 %v2825_v29 }
 0xda9   :  { %v4553_v23 = vpop.eup %4552 }
 0xdaa   :  { %v2831_v58 = vsel %vm1229_vm5, %v4553_v23, 0.0 }
 0xdab   :  { %2832 = vadd.xlane.f32.xlu1 %v2831_v58 }
 0xe10   :  { %v2824_v24 = vpop.xlane.xlu0 %2823 }
 0xe11   :  { %4554 = vrcp.f32 %v2824_v24 }
 0xe18   :  { %v2830_v25 = vpop.xlane.xlu0 %2829 }
 0xe19   :  { %4556 = vrcp.f32 %v2830_v25 }
 0xe1b   :  { %v4555_v63 = vpop.eup %4554 }
 0xe1c   :  { %v2838_v27 = vmul.f32 %v4555_v63, %v4547_v12 }
 0xe1e   :  { %v2842_v28 = vpack.c.bf16 %v2838_v27, %v2838_v27 }
 0xe20   :  { %4356 = vmatmul.mubr.msk.bf16.vlgmr.msra.gmra.mrb[80].mxu1 %vm1229_vm5, %v2842_v28 }
 0xe21   :  { %4366 = vmatpush3.bf16.msra.mxu1 %v2946_v30  ;;  %4367 = vmatprep.mubr.msk.bf16.mxu1 %vm4814_vm2, %v4813_v16 }
 0xe22   :  { %4377 = vmatprep.subr.bf16.mxu1 %v4813_v16 }
 0xe23   :  { %v4557_v36 = vpop.eup %4556 }
 0xe24   :  { %v2840_v32 = vmul.f32 %v4557_v36, %v4549_v13 }
 0xe26   :  { %v2844_v33 = vpack.c.bf16 %v2840_v32, %v2840_v32 }
 0xe28   :  { %4368 = vmatmul.mubr.msk.bf16.vlgmr.msra.gmra.mrb[84].mxu1 %vm1229_vm5, %v2844_v33 }
 0xe29   :  { %4379 = vmatprep.mubr.msk.bf16.mxu1 %vm4814_vm2, %v4813_v16  ;;  %4378 = vmatpush3.bf16.msra.mxu1 %v4498_v31 }
 0xe2a   :  { %4389 = vmatprep.subr.bf16.mxu1 %v4813_v16 }
 0xe30   :  { %v2827_v56 = vpop.xlane.xlu1 %2826 }
 0xe31   :  { %4558 = vrcp.f32 %v2827_v56 }
 0xe38   :  { %v2833_v35 = vpop.xlane.xlu1 %2832 }
 0xe39   :  { %4560 = vrcp.f32 %v2833_v35 }
 0xe3b   :  { %v4559_v37 = vpop.eup %4558 }
 0xe3c   :  { %v2839_v39 = vmul.f32 %v4559_v37, %v4551_v22 }
 0xe3e   :  { %v2843_v40 = vpack.c.bf16 %v2839_v39, %v2839_v39 }
 0xe40   :  { %4362 = vmatmul.mubr.msk.bf16.vlgmr.msra.gmra.mrb[88].mxu0 %vm1229_vm5, %v2843_v40 }
 0xe41   :  { %4372 = vmatpush3.bf16.msra.mxu0 %v2992_v41  ;;  %4373 = vmatprep.mubr.msk.bf16.mxu0 %vm4814_vm2, %v4813_v16 }
 0xe42   :  { %4383 = vmatprep.subr.bf16.mxu0 %v4813_v16 }
 0xe43   :  { %v4561_v42 = vpop.eup %4560 }
 0xe44   :  { %v2841_v43 = vmul.f32 %v4561_v42, %v4553_v23 }
 0xe46   :  { %v2845_v44 = vpack.c.bf16 %v2841_v43, %v2841_v43 }
 0xe48   :  { %4374 = vmatmul.mubr.msk.bf16.vlgmr.msra.gmra.mrb[92].mxu0 %vm1229_vm5, %v2845_v44  ;;  %v4501_v44 = vld [vmem:[%s5723_s17 + $0x18] sm:$0xff]  }
 0xe49   :  { %4385 = vmatprep.mubr.msk.bf16.mxu0 %vm4814_vm2, %v4813_v16  ;;  %4384 = vmatpush3.bf16.msra.mxu0 %v4499_v45 }
 0xe4a   :  { %4395 = vmatprep.subr.bf16.mxu0 %v4813_v16 }
 0xef3   :  { %v2890_v46 = vpop.f32.mrb[80].mxu1 }
 0xef4   :  { %v3034_v47 = vpack.c.bf16 %v2890_v46, %v2890_v46  ;;  %v4357_v48 = vpop.f32.mrb[81].mxu1 }
 0xef5   :  { %v2893_v49 = vpop.f32.mrb[82].mxu1 }
 0xef6   :  { %v4358_v50 = vpop.f32.mrb[83].mxu1  ;;  %4380 = vmatmul.mubr.msk.bf16.vlgmr.msra.gmra.mrb[88].mxu1 %vm1026_vm3, %v3034_v47 }
 0xef7   :  { %4390 = vmatpush3.bf16.msra.mxu1 %v4498_v31  ;;  %4391 = vmatprep.mubr.msk.bf16.mxu1 %vm4814_vm2, %v4813_v16 }
 0xef8   :  { %4401 = vmatprep.subr.bf16.mxu1 %v4813_v16 }
 0xefb   :  { %v2982_v51 = vpop.f32.mrb[84].mxu1 }
 0xefc   :  { %v3036_v52 = vpack.c.bf16 %v2982_v51, %v2982_v51  ;;  %v4369_v53 = vpop.f32.mrb[85].mxu1 }
 0xefd   :  { %v2985_v54 = vpop.f32.mrb[86].mxu1 }
 0xefe   :  { %v4370_v55 = vpop.f32.mrb[87].mxu1  ;;  %4392 = vmatmul.mubr.msk.bf16.vlgmr.msra.gmra.mrb[92].mxu1 %vm1026_vm3, %v3036_v52  ;;  %v3854_v52 = vld [vmem:[%s5721_s15 + $0x1] ss:$0 sm:$0xff] }
 0xeff   :  { %4405 = vmatprep.mubr.msk.bf16.mxu1 %vm4814_vm2, %v4813_v16 }
 0xf13   :  { %v2936_v57 = vpop.f32.mrb[88].mxu0 }
 0xf14   :  { %v3035_v59 = vpack.c.bf16 %v2936_v57, %v2936_v57  ;;  %v4363_v60 = vpop.f32.mrb[89].mxu0  ;;  %v3855_v57 = vld [vmem:[%s5722_s16 + $0x1] ss:$0 sm:$0xff] }
 0xf15   :  { %v2939_v61 = vpop.f32.mrb[90].mxu0 }
 0xf16   :  { %v4364_v62 = vpop.f32.mrb[91].mxu0  ;;  %4386 = vmatmul.mubr.msk.bf16.vlgmr.msra.gmra.mrb[96].mxu0 %vm1026_vm3, %v3035_v59 }
 0xf17   :  { %4396 = vmatpush3.bf16.msra.mxu0 %v4499_v45  ;;  %4397 = vmatprep.mubr.msk.bf16.mxu0 %vm4814_vm2, %v4813_v16 }
 0xf18   :  { %4409 = vmatprep.subr.bf16.mxu0 %v4813_v16 }
 0xf1b   :  { %v3028_v2 = vpop.f32.mrb[92].mxu0 }
 0xf1c   :  { %v3037_v3 = vpack.c.bf16 %v3028_v2, %v3028_v2  ;;  %v4375_v4 = vpop.f32.mrb[93].mxu0  ;;  %v4502_v2 = vld [vmem:[#allocation16 + $0x40] sm:$0xff]  }
 0xf1d   :  { %v3031_v5 = vpop.f32.mrb[94].mxu0  ;;  %v4504_v4 = vld [vmem:[#allocation16 + $0x50] sm:$0xff]  }
 0xf1e   :  { %v4376_v7 = vpop.f32.mrb[95].mxu0  ;;  %4398 = vmatmul.mubr.msk.bf16.vlgmr.msra.gmra.mrb[100].mxu0 %vm1026_vm3, %v3037_v3  ;;  %v4503_v3 = vld [vmem:[#allocation16 + $0x48] sm:$0xff]   ;;  %v4505_v5 = vld [vmem:[#allocation16 + $0x58] sm:$0xff]  }
 0xf1f   :  { %4425 = vmatprep.mubr.msk.bf16.mxu0 %vm4814_vm2, %v4813_v16  ;;  %4410 = vmatpush3.bf16.msra.mxu0 %v4502_v2  ;;  %v4506_v7 = vld [vmem:[#allocation16 + $0x60] sm:$0xff]  }
 0xf20   :  { %4411 = vmatprep.subr.bf16.mxu0 %v4813_v16 }
 0xf23   :  { %4412 = vmatpush3.bf16.msra.mxu0 %v4503_v3 }
 0xf24   :  { %4413 = vmatprep.subr.bf16.mxu0 %v4813_v16 }
 0xf27   :  { %4414 = vmatpush3.bf16.msra.mxu0 %v4504_v4 }
 0xf28   :  { %4415 = vmatprep.subr.bf16.mxu0 %v4813_v16 }
 0xf2b   :  { %4416 = vmatpush3.bf16.msra.mxu0 %v4505_v5  ;;  %v3877_v5 = vld [vmem:[%s5780_s10 + $0x1] ss:$0 sm:$0xff] }
 0xf2c   :  { %4417 = vmatprep.subr.bf16.mxu0 %v4813_v16 }
 0xf2f   :  { %4418 = vmatpush3.bf16.msra.mxu0 %v4506_v7 }
 0xf30   :  { %4419 = vmatprep.subr.bf16.mxu0 %v4813_v16 }
 0xfc9   :  { %v3081_v8 = vpop.f32.mrb[88].mxu1 }
 0xfca   :  { %v4381_v9 = vpop.f32.mrb[89].mxu1  ;;  %v3222_v34 = vsel %vm317_vm1, %v3081_v8, 0.0  ;;  %v4507_v8 = vld [vmem:[#allocation16 + $0x68] sm:$0xff]  }
 0xfcb   :  { %v3084_v10 = vpop.f32.mrb[90].mxu1  ;;  %4420 = vmatpush3.bf16.msra.mxu0 %v4507_v8  ;;  %v4508_v9 = vld [vmem:[#allocation16 + $0x70] sm:$0xff]  }
 0xfcc   :  { %v4382_v11 = vpop.f32.mrb[91].mxu1  ;;  %4421 = vmatprep.subr.bf16.mxu0 %v4813_v16  ;;  %v4509_v10 = vld [vmem:[#allocation16 + $0x78] sm:$0xff]  }
 0xfcd   :  { %v3861_v11 = vld [vmem:[%s5724_s18 + $0x1] ss:$0 sm:$0xff] }
 0xfcf   :  { %4422 = vmatpush3.bf16.msra.mxu0 %v4508_v9 }
 0xfd0   :  { %4423 = vmatprep.subr.bf16.mxu0 %v4813_v16 }
 0xfd1   :  { %v3173_v17 = vpop.f32.mrb[92].mxu1 }
 0xfd2   :  { %v4393_v12 = vpop.f32.mrb[93].mxu1  ;;  %v3225_v25 = vsel %vm317_vm1, %v3173_v17, 0.0 }
 0xfd3   :  { %v3176_v0 = vpop.f32.mrb[94].mxu1  ;;  %4424 = vmatpush3.bf16.msra.mxu0 %v4509_v10  ;;  %v3878_v10 = vld [vmem:[%s5728_s22 + $0x1] ss:$0 sm:$0xff] }
 0xfd4   :  { %v4394_v13 = vpop.f32.mrb[95].mxu1 }
 0xfe9   :  { %v3130_v14 = vpop.f32.mrb[96].mxu0 }
 0xfea   :  { %v3223_v15 = vsel %vm317_vm1, %v3130_v14, 0.0  ;;  %v4387_v19 = vpop.f32.mrb[97].mxu0 }
 0xfeb   :  { %v3224_v20 = vadd.f32 %v3223_v15, %v3222_v34  ;;  %v3133_v21 = vpop.f32.mrb[98].mxu0 }
 0xfec   :  { %v4388_v22 = vpop.f32.mrb[99].mxu0 }
 0xfed   :  { %v3236_v29 = vadd.f32 %v3851_v18, %v3224_v20 }
 0xfef   :  { %v3238_v23 = vadd.f32 %v3236_v29, %v5436_v1 }
 0xff1   :  { %v3216_v58 = vpop.f32.mrb[100].mxu0  ;;  %v3244_v24 = vsel %vm317_vm1, %v3238_v23, 0.0 }
 0xff2   :  { %v3226_v63 = vsel %vm317_vm1, %v3216_v58, 0.0  ;;  %3245 = vadd.xlane.f32.xlu0 %v3244_v24  ;;  %v4399_v26 = vpop.f32.mrb[101].mxu0 }
 0xff3   :  { %v3227_v27 = vadd.f32 %v3226_v63, %v3225_v25  ;;  %v3219_v28 = vpop.f32.mrb[102].mxu0 }
 0xff4   :  { %v4400_v30 = vpop.f32.mrb[103].mxu0 }
 0xff5   :  { %v3237_v36 = vadd.f32 %v3851_v18, %v3227_v27 }
 0xff7   :  { %v3239_v32 = vadd.f32 %v3237_v36, %v5446_v6  ;;  %v4500_v6 = vld [vmem:[%s5723_s17 + $0x10] sm:$0xff]  }
 0xff8   :  { %4402 = vmatpush3.bf16.msra.mxu1 %v4500_v6 }
 0xff9   :  { %v3247_v33 = vsel %vm317_vm1, %v3239_v32, 0.0  ;;  %4403 = vmatprep.subr.bf16.mxu1 %v4813_v16 }
 0xffa   :  { %3248 = vadd.xlane.f32.xlu1 %v3247_v33 }
 0xffc   :  { %4404 = vmatpush3.bf16.msra.mxu1 %v4501_v44 }
 0xffd   :  { %4429 = vmatprep.subr.bf16.mxu1 %v4813_v16 }
0x107f   :  { %v3246_v56 = vpop.xlane.xlu0 %3245 }
0x1080   :  { %v3250_v1 = vmul.f32 0.03125, %v3246_v56  ;;  %v3866_v56 = vld [vmem:[%s5726_s20 + $0x1] ss:$0 sm:$0xff] }
0x1082   :  { %v3252_v35 = vsub.f32 %v3238_v23, %v3250_v1 }
0x1084   :  { %v3254_v37 = vmul.f32 %v3252_v35, %v3252_v35 }
0x1086   :  { %v3256_v38 = vsel %vm317_vm1, %v3254_v37, 0.0 }
0x1087   :  { %3257 = vadd.xlane.f32.xlu0 %v3256_v38  ;;  %v3249_v39 = vpop.xlane.xlu1 %3248 }
0x1088   :  { %v3251_v40 = vmul.f32 0.03125, %v3249_v39 }
0x108a   :  { %v3253_v41 = vsub.f32 %v3239_v32, %v3251_v40 }
0x108c   :  { %v3255_v42 = vmul.f32 %v3253_v41, %v3253_v41 }
0x108e   :  { %v3259_v43 = vsel %vm317_vm1, %v3255_v42, 0.0 }
0x108f   :  { %3260 = vadd.xlane.f32.xlu1 %v3259_v43 }
0x1114   :  { %v3258_v31 = vpop.xlane.xlu0 %3257 }
0x1115   :  { %v3262_v45 = vmul.f32 0.03125, %v3258_v31 }
0x1117   :  { %v3264_v46 = vadd.f32 1e-12, %v3262_v45 }
0x1119   :  { %4562 = vrsqrt.f32 %v3264_v46 }
0x111c   :  { %v3261_v47 = vpop.xlane.xlu1 %3260 }
0x111d   :  { %v3263_v48 = vmul.f32 0.03125, %v3261_v47 }
0x111f   :  { %v3265_v49 = vadd.f32 1e-12, %v3263_v48 }
0x1121   :  { %4564 = vrsqrt.f32 %v3265_v49 }
0x1123   :  { %v4563_v50 = vpop.eup %4562 }
0x1124   :  { %v3268_v51 = vmul.f32 %v4563_v50, %v3252_v35 }
0x1126   :  { %v3276_v54 = vmul.f32 %v3854_v52, %v3268_v51 }
0x1128   :  { %v5641_v60 = vadd.f32 %v3855_v57, %v3276_v54  ;;  %v4511_v54 = vld [vmem:[#allocation17 + $0x8] sm:$0xff]  }
0x112b   :  { %v4565_v53 = vpop.eup %4564 }
0x112c   :  { %v3269_v55 = vmul.f32 %v4565_v53, %v3253_v41  ;;  %v4510_v53 = vld [vmem:[#allocation17] sm:$0xff]  }
0x112e   :  { %v3277_v59 = vmul.f32 %v3854_v52, %v3269_v55 }
0x1130   :  { %v5643_v61 = vadd.f32 %v3855_v57, %v3277_v59 }
0x1132   :  { %v3286_v62 = vpack.c.bf16 %v5643_v61, %v5641_v60 }
0x1134   :  { %4406 = vmatmul.mubr.msk.bf16.vlgmr.msra.gmra.mrb[96].mxu1 %vm317_vm1, %v3286_v62 }
0x1135   :  { %4433 = vmatprep.mubr.msk.bf16.mxu1 %vm4814_vm2, %v4813_v16  ;;  %4430 = vmatpush3.bf16.msra.mxu1 %v4510_v53 }
0x1136   :  { %4431 = vmatprep.subr.bf16.mxu1 %v4813_v16 }
0x1139   :  { %4432 = vmatpush3.bf16.msra.mxu1 %v4511_v54 }
0x113a   :  { %4437 = vmatprep.subr.bf16.mxu1 %v4813_v16 }
0x1207   :  { %v3349_v17 = vpop.f32.mrb[96].mxu1 }
0x1208   :  { %v3350_v12 = vadd.f32 %v3861_v11, %v3349_v17  ;;  %v4407_v0 = vpop.f32.mrb[97].mxu1 }
0x1209   :  { %v3352_v13 = vpop.f32.mrb[98].mxu1 }
0x120a   :  { %v3356_v14 = vmul.f32 %v3350_v12, %v3350_v12  ;;  %v3353_v34 = vadd.f32 %v3861_v11, %v3352_v13  ;;  %v4408_v15 = vpop.f32.mrb[99].mxu1 }
0x120b   :  { %v3879_v15 = vld [vmem:[%s5730_s24] ss:$0 sm:$0xff] }
0x120c   :  { %v3358_v18 = vmul.f32 %v3356_v14, %v3350_v12  ;;  %v3357_v19 = vmul.f32 %v3353_v34, %v3353_v34  ;;  %v4512_v14 = vld [vmem:[%s5731_s25] sm:$0xff]  }
0x120e   :  { %v3360_v20 = vmul.f32 0.044715, %v3358_v18  ;;  %v3359_v21 = vmul.f32 %v3357_v19, %v3353_v34 }
0x1210   :  { %v3362_v22 = vadd.f32 %v3360_v20, %v3350_v12  ;;  %v3361_v29 = vmul.f32 0.044715, %v3359_v21 }
0x1212   :  { %v3364_v23 = vmul.f32 0.7978846, %v3362_v22  ;;  %v3363_v58 = vadd.f32 %v3361_v29, %v3353_v34 }
0x1214   :  { %4566 = vtanh.f32 %v3364_v23  ;;  %v3365_v24 = vmul.f32 0.7978846, %v3363_v58  ;;  %v3883_v58 = vld [vmem:[%s5732_s26] ss:$0 sm:$0xff] }
0x1216   :  { %4568 = vtanh.f32 %v3365_v24 }
0x121e   :  { %v4567_v25 = vpop.eup %4566 }
0x121f   :  { %v3368_v63 = vadd.f32 1.0, %v4567_v25 }
0x1220   :  { %v4569_v26 = vpop.eup %4568 }
0x1221   :  { %v3370_v27 = vmul.f32 0.5, %v3368_v63  ;;  %v3369_v28 = vadd.f32 1.0, %v4569_v26 }
0x1223   :  { %v3371_v30 = vmul.f32 0.5, %v3369_v28  ;;  %v3372_v36 = vmul.f32 %v3370_v27, %v3350_v12 }
0x1225   :  { %v3373_v32 = vmul.f32 %v3371_v30, %v3353_v34  ;;  %v4513_v34 = vld [vmem:[%s5731_s25 + $0x8] sm:$0xff]   ;;  %s4816_s25 = smov [#allocation19]  }
0x1226   :  { %s3684_s21 = sshll.u32 %s4816_s25, 4  ;;  %s3685_s21 = int_to_ptr.vmem [resolvable:$true] %s3684_s21 }
0x1227   :  { %v3374_v33 = vpack.c.bf16 %v3373_v32, %v3372_v36  ;;  %s4764_s24 = scalar_lea.vmem %s3685_s21, 32  ;;  %p4769_p0 = scmp.lt.s32.totalorder %s3685_s21, %s3685_s21 }
0x1228   :  { %p4765_p13 = scmp.ne.s32.totalorder %s3685_s21, %s4764_s24  ;;  %p4770_p1 = scmp.lt.s32.totalorder %s4764_s24, %s4764_s24 }
0x1229   :  { %4426 = vmatmul.mubr.bf16.vlgmr.msra.gmra.mrb[104].mxu0 %v3374_v33 }
0x122a   :  { %p4771_p2 = por %p4770_p1, %p4769_p0 }
0x122c   :  { %p4772_p3 = pnand %p4771_p2, %p4765_p13 }
0x12fc   :  { %v3482_v1 = vpop.f32.mrb[104].mxu0 }
0x12fd   :  { %v3483_v35 = vadd.f32 %v3866_v56, %v3482_v1  ;;  %v4427_v37 = vpop.f32.mrb[105].mxu0 }
0x12fe   :  { %v3485_v38 = vpop.f32.mrb[106].mxu0 }
0x12ff   :  { %v3486_v39 = vadd.f32 %v3866_v56, %v3485_v38  ;;  %v4428_v40 = vpop.f32.mrb[107].mxu0  ;;  %v3489_v41 = vadd.f32 %v3483_v35, %v5641_v60 }
0x1301   :  { %v3495_v42 = vsel %vm317_vm1, %v3489_v41, 0.0  ;;  %v3490_v43 = vadd.f32 %v3486_v39, %v5643_v61 }
0x1302   :  { %3496 = vadd.xlane.f32.xlu1 %v3495_v42 }
0x1303   :  { %v3498_v6 = vsel %vm317_vm1, %v3490_v43, 0.0 }
0x1304   :  { %3499 = vadd.xlane.f32.xlu0 %v3498_v6 }
0x138f   :  { %v3497_v44 = vpop.xlane.xlu1 %3496 }
0x1390   :  { %v3501_v31 = vmul.f32 0.03125, %v3497_v44 }
0x1391   :  { %v3500_v45 = vpop.xlane.xlu0 %3499 }
0x1392   :  { %v3503_v46 = vsub.f32 %v3489_v41, %v3501_v31  ;;  %v3502_v47 = vmul.f32 0.03125, %v3500_v45 }
0x1394   :  { %v3504_v48 = vsub.f32 %v3490_v43, %v3502_v47  ;;  %v3505_v49 = vmul.f32 %v3503_v46, %v3503_v46 }
0x1396   :  { %v3507_v50 = vsel %vm317_vm1, %v3505_v49, 0.0  ;;  %v3506_v51 = vmul.f32 %v3504_v48, %v3504_v48 }
0x1397   :  { %3508 = vadd.xlane.f32.xlu1 %v3507_v50 }
0x1398   :  { %v3510_v52 = vsel %vm317_vm1, %v3506_v51, 0.0 }
0x1399   :  { %3511 = vadd.xlane.f32.xlu0 %v3510_v52 }
0x1424   :  { %v3509_v55 = vpop.xlane.xlu1 %3508 }
0x1425   :  { %v3513_v57 = vmul.f32 0.03125, %v3509_v55 }
0x1426   :  { %v3512_v59 = vpop.xlane.xlu0 %3511 }
0x1427   :  { %v3515_v60 = vadd.f32 1e-12, %v3513_v57  ;;  %v3514_v61 = vmul.f32 0.03125, %v3512_v59 }
0x1429   :  { %4570 = vrsqrt.f32 %v3515_v60  ;;  %v3516_v62 = vadd.f32 1e-12, %v3514_v61 }
0x142b   :  { %4572 = vrsqrt.f32 %v3516_v62 }
0x1433   :  { %v4571_v2 = vpop.eup %4570 }
0x1434   :  { %v3519_v3 = vmul.f32 %v4571_v2, %v3503_v46 }
0x1435   :  { %v4573_v4 = vpop.eup %4572 }
0x1436   :  { %v3520_v7 = vmul.f32 %v4573_v4, %v3504_v48  ;;  %v3527_v8 = vmul.f32 %v3877_v5, %v3519_v3 }
0x1438   :  { %v3528_v9 = vmul.f32 %v3877_v5, %v3520_v7  ;;  %v3535_v17 = vadd.f32 %v3878_v10, %v3527_v8 }
0x143a   :  { %v3536_v11 = vadd.f32 %v3878_v10, %v3528_v9 }
0x143c   :  { %v3538_v12 = vrot.slane %v3536_v11, 7 }
0x143e   :  { %v3541_v0 = vsel %vm3540_vm6, %v3535_v17, %v3538_v12 }
0x143f   :  { %v3542_v13 = vpack.c.bf16 %v3541_v0, %v3541_v0 }
0x1441   :  { %4434 = vmatmul.mubr.msk.bf16.vlgmr.msra.gmra.mrb[100].mxu1 %vm317_vm1, %v3542_v13 }
0x1442   :  { %4441 = vmatprep.mubr.msk.bf16.mxu1 %vm4814_vm2, %v4813_v16  ;;  %4438 = vmatpush3.bf16.msra.mxu1 %v4512_v14 }
0x1443   :  { %4439 = vmatprep.subr.bf16.mxu1 %v4813_v16 }
0x1446   :  { %4440 = vmatpush3.bf16.msra.mxu1 %v4513_v34 }
0x1514   :  { %v3603_v18 = vpop.f32.mrb[100].mxu1 }
0x1515   :  { %v3604_v19 = vadd.f32 %v3879_v15, %v3603_v18  ;;  %v4435_v20 = vpop.f32.mrb[101].mxu1 }
0x1516   :  { %v3606_v21 = vpop.f32.mrb[102].mxu1 }
0x1517   :  { %4574 = vtanh.f32 %v3604_v19  ;;  %v4436_v22 = vpop.f32.mrb[103].mxu1 }
0x1521   :  { %v4575_v29 = vpop.eup %4574 }
0x1522   :  { %v3610_v23 = vpack.c.bf16 %v4575_v29, %v4575_v29 }
0x1524   :  { %4442 = vmatmul.mubr.msk.bf16.vlgmr.msra.gmra.mrb[104].mxu1 %vm317_vm1, %v3610_v23 }
0x15f7   :  { %v3671_v16 = vpop.f32.mrb[104].mxu1 }
0x15f8   :  { %v3672_v24 = vadd.f32 %v3883_v58, %v3671_v16  ;;  %v4443_v25 = vpop.f32.mrb[105].mxu1 }
0x15f9   :  { %v3674_v63 = vpop.f32.mrb[106].mxu1 }
0x15fa   :  { %3677 = vst [vmem:[#allocation19] sm:$0x3] %v3672_v24  ;;  %v4444_v26 = vpop.f32.mrb[107].mxu1 }
0x15fb   :  { %4775 = shalt.err (!%p4772_p3)
}
0x15fc   :  { %s5781_s9 = sld [smem:[#allocation40_spill]] }
0x1602   :  { %s4776_s26 = scalar_lea.hbm %s5781_s9, 32 }
0x1603   :  { %p4777_p4 = scmp.ne.s32.totalorder %s5781_s9, %s4776_s26  ;;  %p4780_p5 = scmp.lt.u32.totalorder %s4776_s26, %s5781_s9 }
0x1605   :  { %p4782_p6 = pnand %p4780_p5, %p4777_p4 }
0x1607   :  { %4785 = shalt.err (!%p4782_p6)
}
0x1608   :  { %3687 = dma.vmem_to_hbm [thread:$0]  %s3685_s21, 32, %s5781_s9, [#allocation7]  }
0x1609   :  { %4798 = dma.done.wait [#allocation7], 32  }
0x160a   :  { %4799 = vsyncadd [#allocation7], 4294967264 }
0x160b   :  { %3691 = vsyncpa [#allocation6], 1 }
0x160c   :  { %3692 = vsyncpa [#allocation9], 1 }
0x160d   :  { %3693 = vsyncpa [#allocation12], 1 }
0x160e   :  { %3694 = vsyncpa [#allocation15], 1 }
0x160f   :  { %3695 = vsyncpa [#allocation18], 1 }
0x1610   :  { %3696 = vsyncpa [#allocation7], 1 }

</bundles_post_ra>
